<compile_context>
chip_gen: v7x
topology: tpu7x:2x2x1
jax: 0.10.0
libtpu: 0.0.40
codegen_flags: <defaults>
</compile_context>

<pallas_src>
import functools

import jax
import jax.numpy as jnp
from jax import lax
from jax.experimental import pallas as pl
from jax.experimental.pallas import tpu as pltpu

NEG_BIG = -1.0e30


def _conv_layer(x, ea_sl, bias, row_valid, w_all, b_all, we_exp,
                *, heads, head_dim, edge_dim, concat, relu):
    """One PyG-style TransformerConv layer, entirely in VMEM/vregs.

    x:        [N, Fin] activations (f32 or bf16)
    ea_sl:    list of edge_dim [N, N] f32 dense edge-attribute slices (0 where no edge)
    bias:     [N, N] f32 additive mask (0 on edges, -1e30 elsewhere)
    row_valid:[N, 1] f32, 1.0 if the dst node has at least one incoming edge
    w_all:    [Fin, 3*hd + skip_dim] bf16 packed [Wq | Wk | Wv | Wskip]
    b_all:    [1, 3*hd + skip_dim]  f32  packed biases
    we_exp:   [heads*edge_dim, hd]  bf16 block-diagonal expanded W_e
    """
    hd = heads * head_dim
    scale = 1.0 / (float(head_dim) ** 0.5)

    xb = x.astype(jnp.bfloat16)

    # Fused q|k|v|skip projection: one bf16 MXU matmul, f32 accumulation.
    z = jnp.dot(xb, w_all, preferred_element_type=jnp.float32) + b_all
    q = z[:, 0:hd] * scale            # fold 1/sqrt(D) into q once (not per-head [N,N])
    k = z[:, hd:2 * hd]
    v = z[:, 2 * hd:3 * hd]
    skip = z[:, 3 * hd:]

    qb = q.astype(jnp.bfloat16)
    kb = k.astype(jnp.bfloat16)
    vb = v.astype(jnp.bfloat16)

    # Per-(dst, head, edge-feature) score projection q_h . W_e[c], all heads in one
    # MXU matmul against the block-diagonal expanded edge weights.
    p_all = lax.dot_general(qb, we_exp, (((1,), (1,)), ((), ())),
                            preferred_element_type=jnp.float32)        # [N, heads*edge_dim]

    msgs = []
    ae_cols = []
    for h in range(heads):
        d0 = h * head_dim
        qh = qb[:, d0:d0 + head_dim]
        kh = kb[:, d0:d0 + head_dim]
        vh = vb[:, d0:d0 + head_dim]

        # scores: s[i, j] = q_i . (k_j + W_e e_ij) / sqrt(D)   (scale already in q)
        s = lax.dot_general(qh, kh, (((1,), (1,)), ((), ())),
                            preferred_element_type=jnp.float32)        # [N, N]
        for c in range(edge_dim):
            s = s + ea_sl[c] * p_all[:, h * edge_dim + c:h * edge_dim + c + 1]
        s = s + bias

        # masked softmax: masked entries underflow to exactly 0 via the -1e30 bias;
        # denom >= 1 always (the row max contributes exp(0) = 1).
        m = jnp.max(s, axis=1, keepdims=True)
        e = jnp.exp(s - m)
        denom = jnp.sum(e, axis=1, keepdims=True)
        alpha = e * pl.reciprocal(denom, approx=True)                   # [N, N]

        # out_i = sum_j alpha_ij * v_j   (edge-value term added below for all heads)
        msgs.append(jnp.dot(alpha.astype(jnp.bfloat16), vh,
                            preferred_element_type=jnp.float32))        # [N, D]
        for c in range(edge_dim):
            ae_cols.append(jnp.sum(alpha * ea_sl[c], axis=1, keepdims=True))

    msg = jnp.concatenate(msgs, axis=1) if heads > 1 else msgs[0]        # [N, hd]
    a_e = jnp.concatenate(ae_cols, axis=1)                               # [N, heads*edge_dim]
    # sum_j alpha_ij W_e e_ij for all heads in one MXU matmul (block-diagonal W_e).
    msg = msg + jnp.dot(a_e.astype(jnp.bfloat16), we_exp,
                        preferred_element_type=jnp.float32)
    # dst nodes with no incoming edge receive no message (PyG scatter-softmax semantics)
    msg = msg * row_valid

    if concat:
        out = msg + skip                                                 # [N, heads*D]
    else:
        acc = msg[:, 0:head_dim]
        for h in range(1, heads):
            acc = acc + msg[:, h * head_dim:(h + 1) * head_dim]
        out = acc * (1.0 / float(heads)) + skip                          # [N, D]
    if relu:
        out = jnp.maximum(out, 0.0)
    return out


def gnn_kernel(*refs, layer_cfgs, edge_dim):
    # refs = (x, ea_dense, attn_bias, row_valid, [w_all, b_all, we_exp] * 3, out)
    x_ref, ea_ref, bias_ref, rv_ref = refs[0], refs[1], refs[2], refs[3]
    out_ref = refs[-1]
    w_refs = refs[4:-1]

    ea = ea_ref[...]                                   # [edge_dim, N, N] f32
    ea_sl = [ea[c] for c in range(edge_dim)]           # leading-dim slices (vreg picks)
    bias = bias_ref[...]                               # [N, N] f32
    row_valid = rv_ref[...]                            # [N, 1] f32

    h = x_ref[...]
    for li, cfg in enumerate(layer_cfgs):
        w_all = w_refs[3 * li][...]
        b_all = w_refs[3 * li + 1][...]
        we_exp = w_refs[3 * li + 2][...]
        h = _conv_layer(h, ea_sl, bias, row_valid, w_all, b_all, we_exp,
                        edge_dim=edge_dim, **cfg)
    out_ref[...] = h.astype(out_ref.dtype)


def init_layer(key, fan_in, out_channels, heads, edge_dim, concat):
    hd = heads * out_channels
    skip_dim = hd if concat else out_channels
    keys = jax.random.split(key, 5)

    def glorot(k, shape):
        lim = (6.0 / (shape[0] + shape[1])) ** 0.5
        return jax.random.uniform(k, shape, jnp.float32, -lim, lim)

    return {
        "wq": glorot(keys[0], (fan_in, hd)),
        "bq": jnp.zeros((1, hd), jnp.float32),
        "wk": glorot(keys[1], (fan_in, hd)),
        "bk": jnp.zeros((1, hd), jnp.float32),
        "wv": glorot(keys[2], (fan_in, hd)),
        "bv": jnp.zeros((1, hd), jnp.float32),
        "we": glorot(keys[3], (edge_dim, hd)),          # lin_edge (bias=False in PyG)
        "wskip": glorot(keys[4], (fan_in, skip_dim)),
        "bskip": jnp.zeros((1, skip_dim), jnp.float32),
    }


def _pack_layer(p, heads, head_dim, edge_dim):
    """Pack per-layer weights: fused [Wq|Wk|Wv|Wskip], fused bias, block-diag W_e."""
    w_all = jnp.concatenate([p["wq"], p["wk"], p["wv"], p["wskip"]],
                            axis=1).astype(jnp.bfloat16)
    b_all = jnp.concatenate([p["bq"], p["bk"], p["bv"], p["bskip"]], axis=1)  # f32
    hd = heads * head_dim
    we_exp = jnp.zeros((heads * edge_dim, hd), jnp.float32)
    for h in range(heads):
        we_exp = we_exp.at[h * edge_dim:(h + 1) * edge_dim,
                           h * head_dim:(h + 1) * head_dim].set(
            p["we"][:, h * head_dim:(h + 1) * head_dim])
    return w_all, b_all, we_exp.astype(jnp.bfloat16)


def gnn_edge_attr_forward(x, edge_index, edge_attr, params, num_nodes,
                          *, heads=4, hidden_dim=128, embedding_dim=64):
    # Input sanitization (mirrors the module's torch.nan_to_num guards) on the raw
    # small arrays, so the kernel never scrubs the dense O(N^2) tensor.
    x = jnp.nan_to_num(x, nan=0.0, posinf=1.0e6, neginf=-1.0e6)
    edge_attr = jnp.nan_to_num(edge_attr, nan=0.0, posinf=1.0e6, neginf=-1.0e6)

    src, dst = edge_index[0], edge_index[1]
    edge_dim = edge_attr.shape[1]

    adj = jnp.zeros((num_nodes, num_nodes), jnp.float32).at[dst, src].set(1.0)
    attn_bias = jnp.where(adj > 0.0, 0.0, NEG_BIG).astype(jnp.float32)       # [N, N]
    row_valid = (jnp.sum(adj, axis=1, keepdims=True) > 0.0).astype(jnp.float32)  # [N, 1]
    ea_nn = jnp.zeros((num_nodes, num_nodes, edge_dim), jnp.float32).at[dst, src].set(edge_attr)
    ea_dense = jnp.transpose(ea_nn, (2, 0, 1))                               # [edge_dim, N, N]

    flat_weights = []
    flat_weights.extend(_pack_layer(params["conv1"], heads, hidden_dim, edge_dim))
    flat_weights.extend(_pack_layer(params["conv2"], heads, hidden_dim, edge_dim))
    flat_weights.extend(_pack_layer(params["conv3"], 1, embedding_dim, edge_dim))

    layer_cfgs = (
        dict(heads=heads, head_dim=hidden_dim, concat=True, relu=True),
        dict(heads=heads, head_dim=hidden_dim, concat=True, relu=True),
        dict(heads=1, head_dim=embedding_dim, concat=False, relu=False),
    )

    kern = functools.partial(gnn_kernel, layer_cfgs=layer_cfgs, edge_dim=edge_dim)
    vm = pl.BlockSpec(memory_space=pltpu.MemorySpace.VMEM)
    n_in = 4 + len(flat_weights)

    return pl.pallas_call(
        kern,
        out_shape=jax.ShapeDtypeStruct((num_nodes, embedding_dim), jnp.float32),
        in_specs=[vm] * n_in,
        out_specs=vm,
        compiler_params=pltpu.CompilerParams(vmem_limit_bytes=32 * 1024 * 1024),
    )(x.astype(jnp.bfloat16), ea_dense, attn_bias, row_valid, *flat_weights)


if __name__ == "__main__":
    num_nodes = 16          # small version of the module's 100 nodes
    num_features = 5        # [demand, service_time, x, y, demand_dist_ratio]
    hidden_dim = 128
    embedding_dim = 64
    num_heads = 4
    edge_feature_dim = 2

    key = jax.random.PRNGKey(0)
    k_x, k_ea, k1, k2, k3 = jax.random.split(key, 5)

    # Min-max-normalized-like node features in [0, 1].
    x = jax.random.uniform(k_x, (num_nodes, num_features), jnp.float32)

    # Bidirectional ring graph (every node has incoming edges).
    idx = jnp.arange(num_nodes)
    src = jnp.concatenate([idx, (idx + 1) % num_nodes])
    dst = jnp.concatenate([(idx + 1) % num_nodes, idx])
    edge_index = jnp.stack([src, dst], axis=0)                     # [2, E]
    edge_attr = jax.random.uniform(k_ea, (edge_index.shape[1], edge_feature_dim), jnp.float32)

    params = {
        "conv1": init_layer(k1, num_features, hidden_dim, num_heads, edge_feature_dim, concat=True),
        "conv2": init_layer(k2, hidden_dim * num_heads, hidden_dim, num_heads, edge_feature_dim, concat=True),
        "conv3": init_layer(k3, hidden_dim * num_heads, embedding_dim, 1, edge_feature_dim, concat=False),
    }

    out = gnn_edge_attr_forward(x, edge_index, edge_attr, params, num_nodes,
                                heads=num_heads, hidden_dim=hidden_dim,
                                embedding_dim=embedding_dim)
    out = jax.block_until_ready(out)
    assert out.shape == (num_nodes, embedding_dim), out.shape
    assert jnp.all(jnp.isfinite(out))
    print("KERNEL_OK")
</pallas_src>

<mosaic_0001>
module attributes {stable_mosaic.version = 11 : i64} {
  func.func @gnn_kernel(%arg0: memref<16x5xbf16, #tpu.memory_space<vmem>>, %arg1: memref<2x16x16xf32, #tpu.memory_space<vmem>>, %arg2: memref<16x16xf32, #tpu.memory_space<vmem>>, %arg3: memref<16x1xf32, #tpu.memory_space<vmem>>, %arg4: memref<5x2048xbf16, #tpu.memory_space<vmem>>, %arg5: memref<1x2048xf32, #tpu.memory_space<vmem>>, %arg6: memref<8x512xbf16, #tpu.memory_space<vmem>>, %arg7: memref<512x2048xbf16, #tpu.memory_space<vmem>>, %arg8: memref<1x2048xf32, #tpu.memory_space<vmem>>, %arg9: memref<8x512xbf16, #tpu.memory_space<vmem>>, %arg10: memref<512x256xbf16, #tpu.memory_space<vmem>>, %arg11: memref<1x256xf32, #tpu.memory_space<vmem>>, %arg12: memref<2x64xbf16, #tpu.memory_space<vmem>>, %arg13: memref<16x64xf32, #tpu.memory_space<vmem>>) attributes {dimension_semantics = [], scalar_prefetch = 0 : i64, scratch_operands = 0 : i64, tpu.core_type = #tpu.core_type<tc>} {
    %c0 = arith.constant 0 : index
    %c0_0 = arith.constant 0 : index
    %c0_1 = arith.constant 0 : index
    %0 = vector.load %arg1[%c0, %c0_0, %c0_1] : memref<2x16x16xf32, #tpu.memory_space<vmem>>, vector<2x16x16xf32>
    %1 = vector.extract_strided_slice %0 {offsets = [0, 0, 0], sizes = [1, 16, 16], strides = [1, 1, 1]} : vector<2x16x16xf32> to vector<1x16x16xf32>
    %2 = vector.shape_cast %1 : vector<1x16x16xf32> to vector<16x16xf32>
    %3 = vector.extract_strided_slice %0 {offsets = [1, 0, 0], sizes = [1, 16, 16], strides = [1, 1, 1]} : vector<2x16x16xf32> to vector<1x16x16xf32>
    %4 = vector.shape_cast %3 : vector<1x16x16xf32> to vector<16x16xf32>
    %c0_2 = arith.constant 0 : index
    %c0_3 = arith.constant 0 : index
    %5 = vector.load %arg2[%c0_2, %c0_3] : memref<16x16xf32, #tpu.memory_space<vmem>>, vector<16x16xf32>
    %c0_4 = arith.constant 0 : index
    %c0_5 = arith.constant 0 : index
    %6 = vector.load %arg3[%c0_4, %c0_5] : memref<16x1xf32, #tpu.memory_space<vmem>>, vector<16x1xf32>
    %c0_6 = arith.constant 0 : index
    %c0_7 = arith.constant 0 : index
    %7 = vector.load %arg0[%c0_6, %c0_7] : memref<16x5xbf16, #tpu.memory_space<vmem>>, vector<16x5xbf16>
    %c0_8 = arith.constant 0 : index
    %c0_9 = arith.constant 0 : index
    %8 = vector.load %arg4[%c0_8, %c0_9] : memref<5x2048xbf16, #tpu.memory_space<vmem>>, vector<5x2048xbf16>
    %c0_10 = arith.constant 0 : index
    %c0_11 = arith.constant 0 : index
    %9 = vector.load %arg5[%c0_10, %c0_11] : memref<1x2048xf32, #tpu.memory_space<vmem>>, vector<1x2048xf32>
    %c0_12 = arith.constant 0 : index
    %c0_13 = arith.constant 0 : index
    %10 = vector.load %arg6[%c0_12, %c0_13] : memref<8x512xbf16, #tpu.memory_space<vmem>>, vector<8x512xbf16>
    %cst = arith.constant dense<0.000000e+00> : vector<16x2048xf32>
    %11 = tpu.matmul %7, %8, %cst {dimension_numbers = #tpu.dot_dimension_numbers<[1], [0], [0], [1], [0, 0, 1, 1], [], []>} : vector<16x5xbf16>, vector<5x2048xbf16>, vector<16x2048xf32> -> vector<16x2048xf32>
    %12 = vector.broadcast %9 : vector<1x2048xf32> to vector<16x2048xf32>
    %13 = arith.addf %11, %12 : vector<16x2048xf32>
    %14 = vector.extract_strided_slice %13 {offsets = [0, 0], sizes = [16, 512], strides = [1, 1]} : vector<16x2048xf32> to vector<16x512xf32>
    %cst_14 = arith.constant 0.0883883461 : f32
    %15 = vector.broadcast %cst_14 : f32 to vector<16x512xf32>
    %16 = arith.mulf %14, %15 : vector<16x512xf32>
    %17 = vector.extract_strided_slice %13 {offsets = [0, 512], sizes = [16, 512], strides = [1, 1]} : vector<16x2048xf32> to vector<16x512xf32>
    %18 = vector.extract_strided_slice %13 {offsets = [0, 1024], sizes = [16, 512], strides = [1, 1]} : vector<16x2048xf32> to vector<16x512xf32>
    %19 = vector.extract_strided_slice %13 {offsets = [0, 1536], sizes = [16, 512], strides = [1, 1]} : vector<16x2048xf32> to vector<16x512xf32>
    %20 = arith.truncf %16 : vector<16x512xf32> to vector<16x512xbf16>
    %21 = arith.truncf %17 : vector<16x512xf32> to vector<16x512xbf16>
    %22 = arith.truncf %18 : vector<16x512xf32> to vector<16x512xbf16>
    %cst_15 = arith.constant dense<0.000000e+00> : vector<16x8xf32>
    %23 = tpu.matmul %20, %10, %cst_15 {dimension_numbers = #tpu.dot_dimension_numbers<[1], [1], [0], [0], [0, 0, 1, 0], [], []>} : vector<16x512xbf16>, vector<8x512xbf16>, vector<16x8xf32> -> vector<16x8xf32>
    %24 = vector.extract_strided_slice %20 {offsets = [0, 0], sizes = [16, 128], strides = [1, 1]} : vector<16x512xbf16> to vector<16x128xbf16>
    %25 = vector.extract_strided_slice %21 {offsets = [0, 0], sizes = [16, 128], strides = [1, 1]} : vector<16x512xbf16> to vector<16x128xbf16>
    %26 = vector.extract_strided_slice %22 {offsets = [0, 0], sizes = [16, 128], strides = [1, 1]} : vector<16x512xbf16> to vector<16x128xbf16>
    %cst_16 = arith.constant dense<0.000000e+00> : vector<16x16xf32>
    %27 = tpu.matmul %24, %25, %cst_16 {dimension_numbers = #tpu.dot_dimension_numbers<[1], [1], [0], [0], [0, 0, 1, 0], [], []>} : vector<16x128xbf16>, vector<16x128xbf16>, vector<16x16xf32> -> vector<16x16xf32>
    %28 = vector.extract_strided_slice %23 {offsets = [0, 0], sizes = [16, 1], strides = [1, 1]} : vector<16x8xf32> to vector<16x1xf32>
    %29 = vector.broadcast %28 : vector<16x1xf32> to vector<16x16xf32>
    %30 = arith.mulf %2, %29 : vector<16x16xf32>
    %31 = arith.addf %27, %30 : vector<16x16xf32>
    %32 = vector.extract_strided_slice %23 {offsets = [0, 1], sizes = [16, 1], strides = [1, 1]} : vector<16x8xf32> to vector<16x1xf32>
    %33 = vector.broadcast %32 : vector<16x1xf32> to vector<16x16xf32>
    %34 = arith.mulf %4, %33 : vector<16x16xf32>
    %35 = arith.addf %31, %34 : vector<16x16xf32>
    %36 = arith.addf %35, %5 : vector<16x16xf32>
    %cst_17 = arith.constant dense<0xFF800000> : vector<16xf32>
    %37 = vector.multi_reduction <maximumf>, %36, %cst_17 [1] : vector<16x16xf32> to vector<16xf32>
    %38 = vector.shape_cast %37 : vector<16xf32> to vector<16x1xf32>
    %39 = vector.broadcast %38 : vector<16x1xf32> to vector<16x16xf32>
    %40 = arith.subf %36, %39 : vector<16x16xf32>
    %41 = math.exp %40 : vector<16x16xf32>
    %cst_18 = arith.constant dense<0.000000e+00> : vector<16xf32>
    %42 = vector.multi_reduction <add>, %41, %cst_18 [1] : vector<16x16xf32> to vector<16xf32>
    %43 = vector.shape_cast %42 : vector<16xf32> to vector<16x1xf32>
    %44 = tpu.reciprocal %43 {approx = true} : vector<16x1xf32> -> vector<16x1xf32>
    %45 = vector.broadcast %44 : vector<16x1xf32> to vector<16x16xf32>
    %46 = arith.mulf %41, %45 : vector<16x16xf32>
    %47 = arith.truncf %46 : vector<16x16xf32> to vector<16x16xbf16>
    %cst_19 = arith.constant dense<0.000000e+00> : vector<16x128xf32>
    %48 = tpu.matmul %47, %26, %cst_19 {dimension_numbers = #tpu.dot_dimension_numbers<[1], [0], [0], [1], [0, 0, 1, 1], [], []>} : vector<16x16xbf16>, vector<16x128xbf16>, vector<16x128xf32> -> vector<16x128xf32>
    %49 = arith.mulf %46, %2 : vector<16x16xf32>
    %cst_20 = arith.constant dense<0.000000e+00> : vector<16xf32>
    %50 = vector.multi_reduction <add>, %49, %cst_20 [1] : vector<16x16xf32> to vector<16xf32>
    %51 = vector.shape_cast %50 : vector<16xf32> to vector<16x1xf32>
    %52 = arith.mulf %46, %4 : vector<16x16xf32>
    %cst_21 = arith.constant dense<0.000000e+00> : vector<16xf32>
    %53 = vector.multi_reduction <add>, %52, %cst_21 [1] : vector<16x16xf32> to vector<16xf32>
    %54 = vector.shape_cast %53 : vector<16xf32> to vector<16x1xf32>
    %55 = vector.extract_strided_slice %20 {offsets = [0, 128], sizes = [16, 128], strides = [1, 1]} : vector<16x512xbf16> to vector<16x128xbf16>
    %56 = vector.extract_strided_slice %21 {offsets = [0, 128], sizes = [16, 128], strides = [1, 1]} : vector<16x512xbf16> to vector<16x128xbf16>
    %57 = vector.extract_strided_slice %22 {offsets = [0, 128], sizes = [16, 128], strides = [1, 1]} : vector<16x512xbf16> to vector<16x128xbf16>
    %cst_22 = arith.constant dense<0.000000e+00> : vector<16x16xf32>
    %58 = tpu.matmul %55, %56, %cst_22 {dimension_numbers = #tpu.dot_dimension_numbers<[1], [1], [0], [0], [0, 0, 1, 0], [], []>} : vector<16x128xbf16>, vector<16x128xbf16>, vector<16x16xf32> -> vector<16x16xf32>
    %59 = vector.extract_strided_slice %23 {offsets = [0, 2], sizes = [16, 1], strides = [1, 1]} : vector<16x8xf32> to vector<16x1xf32>
    %60 = vector.broadcast %59 : vector<16x1xf32> to vector<16x16xf32>
    %61 = arith.mulf %2, %60 : vector<16x16xf32>
    %62 = arith.addf %58, %61 : vector<16x16xf32>
    %63 = vector.extract_strided_slice %23 {offsets = [0, 3], sizes = [16, 1], strides = [1, 1]} : vector<16x8xf32> to vector<16x1xf32>
    %64 = vector.broadcast %63 : vector<16x1xf32> to vector<16x16xf32>
    %65 = arith.mulf %4, %64 : vector<16x16xf32>
    %66 = arith.addf %62, %65 : vector<16x16xf32>
    %67 = arith.addf %66, %5 : vector<16x16xf32>
    %cst_23 = arith.constant dense<0xFF800000> : vector<16xf32>
    %68 = vector.multi_reduction <maximumf>, %67, %cst_23 [1] : vector<16x16xf32> to vector<16xf32>
    %69 = vector.shape_cast %68 : vector<16xf32> to vector<16x1xf32>
    %70 = vector.broadcast %69 : vector<16x1xf32> to vector<16x16xf32>
    %71 = arith.subf %67, %70 : vector<16x16xf32>
    %72 = math.exp %71 : vector<16x16xf32>
    %cst_24 = arith.constant dense<0.000000e+00> : vector<16xf32>
    %73 = vector.multi_reduction <add>, %72, %cst_24 [1] : vector<16x16xf32> to vector<16xf32>
    %74 = vector.shape_cast %73 : vector<16xf32> to vector<16x1xf32>
    %75 = tpu.reciprocal %74 {approx = true} : vector<16x1xf32> -> vector<16x1xf32>
    %76 = vector.broadcast %75 : vector<16x1xf32> to vector<16x16xf32>
    %77 = arith.mulf %72, %76 : vector<16x16xf32>
    %78 = arith.truncf %77 : vector<16x16xf32> to vector<16x16xbf16>
    %cst_25 = arith.constant dense<0.000000e+00> : vector<16x128xf32>
    %79 = tpu.matmul %78, %57, %cst_25 {dimension_numbers = #tpu.dot_dimension_numbers<[1], [0], [0], [1], [0, 0, 1, 1], [], []>} : vector<16x16xbf16>, vector<16x128xbf16>, vector<16x128xf32> -> vector<16x128xf32>
    %80 = arith.mulf %77, %2 : vector<16x16xf32>
    %cst_26 = arith.constant dense<0.000000e+00> : vector<16xf32>
    %81 = vector.multi_reduction <add>, %80, %cst_26 [1] : vector<16x16xf32> to vector<16xf32>
    %82 = vector.shape_cast %81 : vector<16xf32> to vector<16x1xf32>
    %83 = arith.mulf %77, %4 : vector<16x16xf32>
    %cst_27 = arith.constant dense<0.000000e+00> : vector<16xf32>
    %84 = vector.multi_reduction <add>, %83, %cst_27 [1] : vector<16x16xf32> to vector<16xf32>
    %85 = vector.shape_cast %84 : vector<16xf32> to vector<16x1xf32>
    %86 = vector.extract_strided_slice %20 {offsets = [0, 256], sizes = [16, 128], strides = [1, 1]} : vector<16x512xbf16> to vector<16x128xbf16>
    %87 = vector.extract_strided_slice %21 {offsets = [0, 256], sizes = [16, 128], strides = [1, 1]} : vector<16x512xbf16> to vector<16x128xbf16>
    %88 = vector.extract_strided_slice %22 {offsets = [0, 256], sizes = [16, 128], strides = [1, 1]} : vector<16x512xbf16> to vector<16x128xbf16>
    %cst_28 = arith.constant dense<0.000000e+00> : vector<16x16xf32>
    %89 = tpu.matmul %86, %87, %cst_28 {dimension_numbers = #tpu.dot_dimension_numbers<[1], [1], [0], [0], [0, 0, 1, 0], [], []>} : vector<16x128xbf16>, vector<16x128xbf16>, vector<16x16xf32> -> vector<16x16xf32>
    %90 = vector.extract_strided_slice %23 {offsets = [0, 4], sizes = [16, 1], strides = [1, 1]} : vector<16x8xf32> to vector<16x1xf32>
    %91 = vector.broadcast %90 : vector<16x1xf32> to vector<16x16xf32>
    %92 = arith.mulf %2, %91 : vector<16x16xf32>
    %93 = arith.addf %89, %92 : vector<16x16xf32>
    %94 = vector.extract_strided_slice %23 {offsets = [0, 5], sizes = [16, 1], strides = [1, 1]} : vector<16x8xf32> to vector<16x1xf32>
    %95 = vector.broadcast %94 : vector<16x1xf32> to vector<16x16xf32>
    %96 = arith.mulf %4, %95 : vector<16x16xf32>
    %97 = arith.addf %93, %96 : vector<16x16xf32>
    %98 = arith.addf %97, %5 : vector<16x16xf32>
    %cst_29 = arith.constant dense<0xFF800000> : vector<16xf32>
    %99 = vector.multi_reduction <maximumf>, %98, %cst_29 [1] : vector<16x16xf32> to vector<16xf32>
    %100 = vector.shape_cast %99 : vector<16xf32> to vector<16x1xf32>
    %101 = vector.broadcast %100 : vector<16x1xf32> to vector<16x16xf32>
    %102 = arith.subf %98, %101 : vector<16x16xf32>
    %103 = math.exp %102 : vector<16x16xf32>
    %cst_30 = arith.constant dense<0.000000e+00> : vector<16xf32>
    %104 = vector.multi_reduction <add>, %103, %cst_30 [1] : vector<16x16xf32> to vector<16xf32>
    %105 = vector.shape_cast %104 : vector<16xf32> to vector<16x1xf32>
    %106 = tpu.reciprocal %105 {approx = true} : vector<16x1xf32> -> vector<16x1xf32>
    %107 = vector.broadcast %106 : vector<16x1xf32> to vector<16x16xf32>
    %108 = arith.mulf %103, %107 : vector<16x16xf32>
    %109 = arith.truncf %108 : vector<16x16xf32> to vector<16x16xbf16>
    %cst_31 = arith.constant dense<0.000000e+00> : vector<16x128xf32>
    %110 = tpu.matmul %109, %88, %cst_31 {dimension_numbers = #tpu.dot_dimension_numbers<[1], [0], [0], [1], [0, 0, 1, 1], [], []>} : vector<16x16xbf16>, vector<16x128xbf16>, vector<16x128xf32> -> vector<16x128xf32>
    %111 = arith.mulf %108, %2 : vector<16x16xf32>
    %cst_32 = arith.constant dense<0.000000e+00> : vector<16xf32>
    %112 = vector.multi_reduction <add>, %111, %cst_32 [1] : vector<16x16xf32> to vector<16xf32>
    %113 = vector.shape_cast %112 : vector<16xf32> to vector<16x1xf32>
    %114 = arith.mulf %108, %4 : vector<16x16xf32>
    %cst_33 = arith.constant dense<0.000000e+00> : vector<16xf32>
    %115 = vector.multi_reduction <add>, %114, %cst_33 [1] : vector<16x16xf32> to vector<16xf32>
    %116 = vector.shape_cast %115 : vector<16xf32> to vector<16x1xf32>
    %117 = vector.extract_strided_slice %20 {offsets = [0, 384], sizes = [16, 128], strides = [1, 1]} : vector<16x512xbf16> to vector<16x128xbf16>
    %118 = vector.extract_strided_slice %21 {offsets = [0, 384], sizes = [16, 128], strides = [1, 1]} : vector<16x512xbf16> to vector<16x128xbf16>
    %119 = vector.extract_strided_slice %22 {offsets = [0, 384], sizes = [16, 128], strides = [1, 1]} : vector<16x512xbf16> to vector<16x128xbf16>
    %cst_34 = arith.constant dense<0.000000e+00> : vector<16x16xf32>
    %120 = tpu.matmul %117, %118, %cst_34 {dimension_numbers = #tpu.dot_dimension_numbers<[1], [1], [0], [0], [0, 0, 1, 0], [], []>} : vector<16x128xbf16>, vector<16x128xbf16>, vector<16x16xf32> -> vector<16x16xf32>
    %121 = vector.extract_strided_slice %23 {offsets = [0, 6], sizes = [16, 1], strides = [1, 1]} : vector<16x8xf32> to vector<16x1xf32>
    %122 = vector.broadcast %121 : vector<16x1xf32> to vector<16x16xf32>
    %123 = arith.mulf %2, %122 : vector<16x16xf32>
    %124 = arith.addf %120, %123 : vector<16x16xf32>
    %125 = vector.extract_strided_slice %23 {offsets = [0, 7], sizes = [16, 1], strides = [1, 1]} : vector<16x8xf32> to vector<16x1xf32>
    %126 = vector.broadcast %125 : vector<16x1xf32> to vector<16x16xf32>
    %127 = arith.mulf %4, %126 : vector<16x16xf32>
    %128 = arith.addf %124, %127 : vector<16x16xf32>
    %129 = arith.addf %128, %5 : vector<16x16xf32>
    %cst_35 = arith.constant dense<0xFF800000> : vector<16xf32>
    %130 = vector.multi_reduction <maximumf>, %129, %cst_35 [1] : vector<16x16xf32> to vector<16xf32>
    %131 = vector.shape_cast %130 : vector<16xf32> to vector<16x1xf32>
    %132 = vector.broadcast %131 : vector<16x1xf32> to vector<16x16xf32>
    %133 = arith.subf %129, %132 : vector<16x16xf32>
    %134 = math.exp %133 : vector<16x16xf32>
    %cst_36 = arith.constant dense<0.000000e+00> : vector<16xf32>
    %135 = vector.multi_reduction <add>, %134, %cst_36 [1] : vector<16x16xf32> to vector<16xf32>
    %136 = vector.shape_cast %135 : vector<16xf32> to vector<16x1xf32>
    %137 = tpu.reciprocal %136 {approx = true} : vector<16x1xf32> -> vector<16x1xf32>
    %138 = vector.broadcast %137 : vector<16x1xf32> to vector<16x16xf32>
    %139 = arith.mulf %134, %138 : vector<16x16xf32>
    %140 = arith.truncf %139 : vector<16x16xf32> to vector<16x16xbf16>
    %cst_37 = arith.constant dense<0.000000e+00> : vector<16x128xf32>
    %141 = tpu.matmul %140, %119, %cst_37 {dimension_numbers = #tpu.dot_dimension_numbers<[1], [0], [0], [1], [0, 0, 1, 1], [], []>} : vector<16x16xbf16>, vector<16x128xbf16>, vector<16x128xf32> -> vector<16x128xf32>
    %142 = arith.mulf %139, %2 : vector<16x16xf32>
    %cst_38 = arith.constant dense<0.000000e+00> : vector<16xf32>
    %143 = vector.multi_reduction <add>, %142, %cst_38 [1] : vector<16x16xf32> to vector<16xf32>
    %144 = vector.shape_cast %143 : vector<16xf32> to vector<16x1xf32>
    %145 = arith.mulf %139, %4 : vector<16x16xf32>
    %cst_39 = arith.constant dense<0.000000e+00> : vector<16xf32>
    %146 = vector.multi_reduction <add>, %145, %cst_39 [1] : vector<16x16xf32> to vector<16xf32>
    %147 = vector.shape_cast %146 : vector<16xf32> to vector<16x1xf32>
    %148 = tpu.concatenate %48, %79, %110, %141 in 1 : vector<16x128xf32>, vector<16x128xf32>, vector<16x128xf32>, vector<16x128xf32> -> vector<16x512xf32>
    %149 = tpu.concatenate %51, %54, %82, %85, %113, %116, %144, %147 in 1 : vector<16x1xf32>, vector<16x1xf32>, vector<16x1xf32>, vector<16x1xf32>, vector<16x1xf32>, vector<16x1xf32>, vector<16x1xf32>, vector<16x1xf32> -> vector<16x8xf32>
    %150 = arith.truncf %149 : vector<16x8xf32> to vector<16x8xbf16>
    %cst_40 = arith.constant dense<0.000000e+00> : vector<16x512xf32>
    %151 = tpu.matmul %150, %10, %cst_40 {dimension_numbers = #tpu.dot_dimension_numbers<[1], [0], [0], [1], [0, 0, 1, 1], [], []>} : vector<16x8xbf16>, vector<8x512xbf16>, vector<16x512xf32> -> vector<16x512xf32>
    %152 = arith.addf %148, %151 : vector<16x512xf32>
    %153 = vector.broadcast %6 : vector<16x1xf32> to vector<16x512xf32>
    %154 = arith.mulf %152, %153 : vector<16x512xf32>
    %155 = arith.addf %154, %19 : vector<16x512xf32>
    %cst_41 = arith.constant 0.000000e+00 : f32
    %156 = vector.broadcast %cst_41 : f32 to vector<16x512xf32>
    %157 = arith.maximumf %155, %156 : vector<16x512xf32>
    %c0_42 = arith.constant 0 : index
    %c0_43 = arith.constant 0 : index
    %158 = vector.load %arg7[%c0_42, %c0_43] : memref<512x2048xbf16, #tpu.memory_space<vmem>>, vector<512x2048xbf16>
    %c0_44 = arith.constant 0 : index
    %c0_45 = arith.constant 0 : index
    %159 = vector.load %arg8[%c0_44, %c0_45] : memref<1x2048xf32, #tpu.memory_space<vmem>>, vector<1x2048xf32>
    %c0_46 = arith.constant 0 : index
    %c0_47 = arith.constant 0 : index
    %160 = vector.load %arg9[%c0_46, %c0_47] : memref<8x512xbf16, #tpu.memory_space<vmem>>, vector<8x512xbf16>
    %161 = arith.truncf %157 : vector<16x512xf32> to vector<16x512xbf16>
    %cst_48 = arith.constant dense<0.000000e+00> : vector<16x2048xf32>
    %162 = tpu.matmul %161, %158, %cst_48 {dimension_numbers = #tpu.dot_dimension_numbers<[1], [0], [0], [1], [0, 0, 1, 1], [], []>} : vector<16x512xbf16>, vector<512x2048xbf16>, vector<16x2048xf32> -> vector<16x2048xf32>
    %163 = vector.broadcast %159 : vector<1x2048xf32> to vector<16x2048xf32>
    %164 = arith.addf %162, %163 : vector<16x2048xf32>
    %165 = vector.extract_strided_slice %164 {offsets = [0, 0], sizes = [16, 512], strides = [1, 1]} : vector<16x2048xf32> to vector<16x512xf32>
    %cst_49 = arith.constant 0.0883883461 : f32
    %166 = vector.broadcast %cst_49 : f32 to vector<16x512xf32>
    %167 = arith.mulf %165, %166 : vector<16x512xf32>
    %168 = vector.extract_strided_slice %164 {offsets = [0, 512], sizes = [16, 512], strides = [1, 1]} : vector<16x2048xf32> to vector<16x512xf32>
    %169 = vector.extract_strided_slice %164 {offsets = [0, 1024], sizes = [16, 512], strides = [1, 1]} : vector<16x2048xf32> to vector<16x512xf32>
    %170 = vector.extract_strided_slice %164 {offsets = [0, 1536], sizes = [16, 512], strides = [1, 1]} : vector<16x2048xf32> to vector<16x512xf32>
    %171 = arith.truncf %167 : vector<16x512xf32> to vector<16x512xbf16>
    %172 = arith.truncf %168 : vector<16x512xf32> to vector<16x512xbf16>
    %173 = arith.truncf %169 : vector<16x512xf32> to vector<16x512xbf16>
    %cst_50 = arith.constant dense<0.000000e+00> : vector<16x8xf32>
    %174 = tpu.matmul %171, %160, %cst_50 {dimension_numbers = #tpu.dot_dimension_numbers<[1], [1], [0], [0], [0, 0, 1, 0], [], []>} : vector<16x512xbf16>, vector<8x512xbf16>, vector<16x8xf32> -> vector<16x8xf32>
    %175 = vector.extract_strided_slice %171 {offsets = [0, 0], sizes = [16, 128], strides = [1, 1]} : vector<16x512xbf16> to vector<16x128xbf16>
    %176 = vector.extract_strided_slice %172 {offsets = [0, 0], sizes = [16, 128], strides = [1, 1]} : vector<16x512xbf16> to vector<16x128xbf16>
    %177 = vector.extract_strided_slice %173 {offsets = [0, 0], sizes = [16, 128], strides = [1, 1]} : vector<16x512xbf16> to vector<16x128xbf16>
    %cst_51 = arith.constant dense<0.000000e+00> : vector<16x16xf32>
    %178 = tpu.matmul %175, %176, %cst_51 {dimension_numbers = #tpu.dot_dimension_numbers<[1], [1], [0], [0], [0, 0, 1, 0], [], []>} : vector<16x128xbf16>, vector<16x128xbf16>, vector<16x16xf32> -> vector<16x16xf32>
    %179 = vector.extract_strided_slice %174 {offsets = [0, 0], sizes = [16, 1], strides = [1, 1]} : vector<16x8xf32> to vector<16x1xf32>
    %180 = vector.broadcast %179 : vector<16x1xf32> to vector<16x16xf32>
    %181 = arith.mulf %2, %180 : vector<16x16xf32>
    %182 = arith.addf %178, %181 : vector<16x16xf32>
    %183 = vector.extract_strided_slice %174 {offsets = [0, 1], sizes = [16, 1], strides = [1, 1]} : vector<16x8xf32> to vector<16x1xf32>
    %184 = vector.broadcast %183 : vector<16x1xf32> to vector<16x16xf32>
    %185 = arith.mulf %4, %184 : vector<16x16xf32>
    %186 = arith.addf %182, %185 : vector<16x16xf32>
    %187 = arith.addf %186, %5 : vector<16x16xf32>
    %cst_52 = arith.constant dense<0xFF800000> : vector<16xf32>
    %188 = vector.multi_reduction <maximumf>, %187, %cst_52 [1] : vector<16x16xf32> to vector<16xf32>
    %189 = vector.shape_cast %188 : vector<16xf32> to vector<16x1xf32>
    %190 = vector.broadcast %189 : vector<16x1xf32> to vector<16x16xf32>
    %191 = arith.subf %187, %190 : vector<16x16xf32>
    %192 = math.exp %191 : vector<16x16xf32>
    %cst_53 = arith.constant dense<0.000000e+00> : vector<16xf32>
    %193 = vector.multi_reduction <add>, %192, %cst_53 [1] : vector<16x16xf32> to vector<16xf32>
    %194 = vector.shape_cast %193 : vector<16xf32> to vector<16x1xf32>
    %195 = tpu.reciprocal %194 {approx = true} : vector<16x1xf32> -> vector<16x1xf32>
    %196 = vector.broadcast %195 : vector<16x1xf32> to vector<16x16xf32>
    %197 = arith.mulf %192, %196 : vector<16x16xf32>
    %198 = arith.truncf %197 : vector<16x16xf32> to vector<16x16xbf16>
    %cst_54 = arith.constant dense<0.000000e+00> : vector<16x128xf32>
    %199 = tpu.matmul %198, %177, %cst_54 {dimension_numbers = #tpu.dot_dimension_numbers<[1], [0], [0], [1], [0, 0, 1, 1], [], []>} : vector<16x16xbf16>, vector<16x128xbf16>, vector<16x128xf32> -> vector<16x128xf32>
    %200 = arith.mulf %197, %2 : vector<16x16xf32>
    %cst_55 = arith.constant dense<0.000000e+00> : vector<16xf32>
    %201 = vector.multi_reduction <add>, %200, %cst_55 [1] : vector<16x16xf32> to vector<16xf32>
    %202 = vector.shape_cast %201 : vector<16xf32> to vector<16x1xf32>
    %203 = arith.mulf %197, %4 : vector<16x16xf32>
    %cst_56 = arith.constant dense<0.000000e+00> : vector<16xf32>
    %204 = vector.multi_reduction <add>, %203, %cst_56 [1] : vector<16x16xf32> to vector<16xf32>
    %205 = vector.shape_cast %204 : vector<16xf32> to vector<16x1xf32>
    %206 = vector.extract_strided_slice %171 {offsets = [0, 128], sizes = [16, 128], strides = [1, 1]} : vector<16x512xbf16> to vector<16x128xbf16>
    %207 = vector.extract_strided_slice %172 {offsets = [0, 128], sizes = [16, 128], strides = [1, 1]} : vector<16x512xbf16> to vector<16x128xbf16>
    %208 = vector.extract_strided_slice %173 {offsets = [0, 128], sizes = [16, 128], strides = [1, 1]} : vector<16x512xbf16> to vector<16x128xbf16>
    %cst_57 = arith.constant dense<0.000000e+00> : vector<16x16xf32>
    %209 = tpu.matmul %206, %207, %cst_57 {dimension_numbers = #tpu.dot_dimension_numbers<[1], [1], [0], [0], [0, 0, 1, 0], [], []>} : vector<16x128xbf16>, vector<16x128xbf16>, vector<16x16xf32> -> vector<16x16xf32>
    %210 = vector.extract_strided_slice %174 {offsets = [0, 2], sizes = [16, 1], strides = [1, 1]} : vector<16x8xf32> to vector<16x1xf32>
    %211 = vector.broadcast %210 : vector<16x1xf32> to vector<16x16xf32>
    %212 = arith.mulf %2, %211 : vector<16x16xf32>
    %213 = arith.addf %209, %212 : vector<16x16xf32>
    %214 = vector.extract_strided_slice %174 {offsets = [0, 3], sizes = [16, 1], strides = [1, 1]} : vector<16x8xf32> to vector<16x1xf32>
    %215 = vector.broadcast %214 : vector<16x1xf32> to vector<16x16xf32>
    %216 = arith.mulf %4, %215 : vector<16x16xf32>
    %217 = arith.addf %213, %216 : vector<16x16xf32>
    %218 = arith.addf %217, %5 : vector<16x16xf32>
    %cst_58 = arith.constant dense<0xFF800000> : vector<16xf32>
    %219 = vector.multi_reduction <maximumf>, %218, %cst_58 [1] : vector<16x16xf32> to vector<16xf32>
    %220 = vector.shape_cast %219 : vector<16xf32> to vector<16x1xf32>
    %221 = vector.broadcast %220 : vector<16x1xf32> to vector<16x16xf32>
    %222 = arith.subf %218, %221 : vector<16x16xf32>
    %223 = math.exp %222 : vector<16x16xf32>
    %cst_59 = arith.constant dense<0.000000e+00> : vector<16xf32>
    %224 = vector.multi_reduction <add>, %223, %cst_59 [1] : vector<16x16xf32> to vector<16xf32>
    %225 = vector.shape_cast %224 : vector<16xf32> to vector<16x1xf32>
    %226 = tpu.reciprocal %225 {approx = true} : vector<16x1xf32> -> vector<16x1xf32>
    %227 = vector.broadcast %226 : vector<16x1xf32> to vector<16x16xf32>
    %228 = arith.mulf %223, %227 : vector<16x16xf32>
    %229 = arith.truncf %228 : vector<16x16xf32> to vector<16x16xbf16>
    %cst_60 = arith.constant dense<0.000000e+00> : vector<16x128xf32>
    %230 = tpu.matmul %229, %208, %cst_60 {dimension_numbers = #tpu.dot_dimension_numbers<[1], [0], [0], [1], [0, 0, 1, 1], [], []>} : vector<16x16xbf16>, vector<16x128xbf16>, vector<16x128xf32> -> vector<16x128xf32>
    %231 = arith.mulf %228, %2 : vector<16x16xf32>
    %cst_61 = arith.constant dense<0.000000e+00> : vector<16xf32>
    %232 = vector.multi_reduction <add>, %231, %cst_61 [1] : vector<16x16xf32> to vector<16xf32>
    %233 = vector.shape_cast %232 : vector<16xf32> to vector<16x1xf32>
    %234 = arith.mulf %228, %4 : vector<16x16xf32>
    %cst_62 = arith.constant dense<0.000000e+00> : vector<16xf32>
    %235 = vector.multi_reduction <add>, %234, %cst_62 [1] : vector<16x16xf32> to vector<16xf32>
    %236 = vector.shape_cast %235 : vector<16xf32> to vector<16x1xf32>
    %237 = vector.extract_strided_slice %171 {offsets = [0, 256], sizes = [16, 128], strides = [1, 1]} : vector<16x512xbf16> to vector<16x128xbf16>
    %238 = vector.extract_strided_slice %172 {offsets = [0, 256], sizes = [16, 128], strides = [1, 1]} : vector<16x512xbf16> to vector<16x128xbf16>
    %239 = vector.extract_strided_slice %173 {offsets = [0, 256], sizes = [16, 128], strides = [1, 1]} : vector<16x512xbf16> to vector<16x128xbf16>
    %cst_63 = arith.constant dense<0.000000e+00> : vector<16x16xf32>
    %240 = tpu.matmul %237, %238, %cst_63 {dimension_numbers = #tpu.dot_dimension_numbers<[1], [1], [0], [0], [0, 0, 1, 0], [], []>} : vector<16x128xbf16>, vector<16x128xbf16>, vector<16x16xf32> -> vector<16x16xf32>
    %241 = vector.extract_strided_slice %174 {offsets = [0, 4], sizes = [16, 1], strides = [1, 1]} : vector<16x8xf32> to vector<16x1xf32>
    %242 = vector.broadcast %241 : vector<16x1xf32> to vector<16x16xf32>
    %243 = arith.mulf %2, %242 : vector<16x16xf32>
    %244 = arith.addf %240, %243 : vector<16x16xf32>
    %245 = vector.extract_strided_slice %174 {offsets = [0, 5], sizes = [16, 1], strides = [1, 1]} : vector<16x8xf32> to vector<16x1xf32>
    %246 = vector.broadcast %245 : vector<16x1xf32> to vector<16x16xf32>
    %247 = arith.mulf %4, %246 : vector<16x16xf32>
    %248 = arith.addf %244, %247 : vector<16x16xf32>
    %249 = arith.addf %248, %5 : vector<16x16xf32>
    %cst_64 = arith.constant dense<0xFF800000> : vector<16xf32>
    %250 = vector.multi_reduction <maximumf>, %249, %cst_64 [1] : vector<16x16xf32> to vector<16xf32>
    %251 = vector.shape_cast %250 : vector<16xf32> to vector<16x1xf32>
    %252 = vector.broadcast %251 : vector<16x1xf32> to vector<16x16xf32>
    %253 = arith.subf %249, %252 : vector<16x16xf32>
    %254 = math.exp %253 : vector<16x16xf32>
    %cst_65 = arith.constant dense<0.000000e+00> : vector<16xf32>
    %255 = vector.multi_reduction <add>, %254, %cst_65 [1] : vector<16x16xf32> to vector<16xf32>
    %256 = vector.shape_cast %255 : vector<16xf32> to vector<16x1xf32>
    %257 = tpu.reciprocal %256 {approx = true} : vector<16x1xf32> -> vector<16x1xf32>
    %258 = vector.broadcast %257 : vector<16x1xf32> to vector<16x16xf32>
    %259 = arith.mulf %254, %258 : vector<16x16xf32>
    %260 = arith.truncf %259 : vector<16x16xf32> to vector<16x16xbf16>
    %cst_66 = arith.constant dense<0.000000e+00> : vector<16x128xf32>
    %261 = tpu.matmul %260, %239, %cst_66 {dimension_numbers = #tpu.dot_dimension_numbers<[1], [0], [0], [1], [0, 0, 1, 1], [], []>} : vector<16x16xbf16>, vector<16x128xbf16>, vector<16x128xf32> -> vector<16x128xf32>
    %262 = arith.mulf %259, %2 : vector<16x16xf32>
    %cst_67 = arith.constant dense<0.000000e+00> : vector<16xf32>
    %263 = vector.multi_reduction <add>, %262, %cst_67 [1] : vector<16x16xf32> to vector<16xf32>
    %264 = vector.shape_cast %263 : vector<16xf32> to vector<16x1xf32>
    %265 = arith.mulf %259, %4 : vector<16x16xf32>
    %cst_68 = arith.constant dense<0.000000e+00> : vector<16xf32>
    %266 = vector.multi_reduction <add>, %265, %cst_68 [1] : vector<16x16xf32> to vector<16xf32>
    %267 = vector.shape_cast %266 : vector<16xf32> to vector<16x1xf32>
    %268 = vector.extract_strided_slice %171 {offsets = [0, 384], sizes = [16, 128], strides = [1, 1]} : vector<16x512xbf16> to vector<16x128xbf16>
    %269 = vector.extract_strided_slice %172 {offsets = [0, 384], sizes = [16, 128], strides = [1, 1]} : vector<16x512xbf16> to vector<16x128xbf16>
    %270 = vector.extract_strided_slice %173 {offsets = [0, 384], sizes = [16, 128], strides = [1, 1]} : vector<16x512xbf16> to vector<16x128xbf16>
    %cst_69 = arith.constant dense<0.000000e+00> : vector<16x16xf32>
    %271 = tpu.matmul %268, %269, %cst_69 {dimension_numbers = #tpu.dot_dimension_numbers<[1], [1], [0], [0], [0, 0, 1, 0], [], []>} : vector<16x128xbf16>, vector<16x128xbf16>, vector<16x16xf32> -> vector<16x16xf32>
    %272 = vector.extract_strided_slice %174 {offsets = [0, 6], sizes = [16, 1], strides = [1, 1]} : vector<16x8xf32> to vector<16x1xf32>
    %273 = vector.broadcast %272 : vector<16x1xf32> to vector<16x16xf32>
    %274 = arith.mulf %2, %273 : vector<16x16xf32>
    %275 = arith.addf %271, %274 : vector<16x16xf32>
    %276 = vector.extract_strided_slice %174 {offsets = [0, 7], sizes = [16, 1], strides = [1, 1]} : vector<16x8xf32> to vector<16x1xf32>
    %277 = vector.broadcast %276 : vector<16x1xf32> to vector<16x16xf32>
    %278 = arith.mulf %4, %277 : vector<16x16xf32>
    %279 = arith.addf %275, %278 : vector<16x16xf32>
    %280 = arith.addf %279, %5 : vector<16x16xf32>
    %cst_70 = arith.constant dense<0xFF800000> : vector<16xf32>
    %281 = vector.multi_reduction <maximumf>, %280, %cst_70 [1] : vector<16x16xf32> to vector<16xf32>
    %282 = vector.shape_cast %281 : vector<16xf32> to vector<16x1xf32>
    %283 = vector.broadcast %282 : vector<16x1xf32> to vector<16x16xf32>
    %284 = arith.subf %280, %283 : vector<16x16xf32>
    %285 = math.exp %284 : vector<16x16xf32>
    %cst_71 = arith.constant dense<0.000000e+00> : vector<16xf32>
    %286 = vector.multi_reduction <add>, %285, %cst_71 [1] : vector<16x16xf32> to vector<16xf32>
    %287 = vector.shape_cast %286 : vector<16xf32> to vector<16x1xf32>
    %288 = tpu.reciprocal %287 {approx = true} : vector<16x1xf32> -> vector<16x1xf32>
    %289 = vector.broadcast %288 : vector<16x1xf32> to vector<16x16xf32>
    %290 = arith.mulf %285, %289 : vector<16x16xf32>
    %291 = arith.truncf %290 : vector<16x16xf32> to vector<16x16xbf16>
    %cst_72 = arith.constant dense<0.000000e+00> : vector<16x128xf32>
    %292 = tpu.matmul %291, %270, %cst_72 {dimension_numbers = #tpu.dot_dimension_numbers<[1], [0], [0], [1], [0, 0, 1, 1], [], []>} : vector<16x16xbf16>, vector<16x128xbf16>, vector<16x128xf32> -> vector<16x128xf32>
    %293 = arith.mulf %290, %2 : vector<16x16xf32>
    %cst_73 = arith.constant dense<0.000000e+00> : vector<16xf32>
    %294 = vector.multi_reduction <add>, %293, %cst_73 [1] : vector<16x16xf32> to vector<16xf32>
    %295 = vector.shape_cast %294 : vector<16xf32> to vector<16x1xf32>
    %296 = arith.mulf %290, %4 : vector<16x16xf32>
    %cst_74 = arith.constant dense<0.000000e+00> : vector<16xf32>
    %297 = vector.multi_reduction <add>, %296, %cst_74 [1] : vector<16x16xf32> to vector<16xf32>
    %298 = vector.shape_cast %297 : vector<16xf32> to vector<16x1xf32>
    %299 = tpu.concatenate %199, %230, %261, %292 in 1 : vector<16x128xf32>, vector<16x128xf32>, vector<16x128xf32>, vector<16x128xf32> -> vector<16x512xf32>
    %300 = tpu.concatenate %202, %205, %233, %236, %264, %267, %295, %298 in 1 : vector<16x1xf32>, vector<16x1xf32>, vector<16x1xf32>, vector<16x1xf32>, vector<16x1xf32>, vector<16x1xf32>, vector<16x1xf32>, vector<16x1xf32> -> vector<16x8xf32>
    %301 = arith.truncf %300 : vector<16x8xf32> to vector<16x8xbf16>
    %cst_75 = arith.constant dense<0.000000e+00> : vector<16x512xf32>
    %302 = tpu.matmul %301, %160, %cst_75 {dimension_numbers = #tpu.dot_dimension_numbers<[1], [0], [0], [1], [0, 0, 1, 1], [], []>} : vector<16x8xbf16>, vector<8x512xbf16>, vector<16x512xf32> -> vector<16x512xf32>
    %303 = arith.addf %299, %302 : vector<16x512xf32>
    %304 = vector.broadcast %6 : vector<16x1xf32> to vector<16x512xf32>
    %305 = arith.mulf %303, %304 : vector<16x512xf32>
    %306 = arith.addf %305, %170 : vector<16x512xf32>
    %cst_76 = arith.constant 0.000000e+00 : f32
    %307 = vector.broadcast %cst_76 : f32 to vector<16x512xf32>
    %308 = arith.maximumf %306, %307 : vector<16x512xf32>
    %c0_77 = arith.constant 0 : index
    %c0_78 = arith.constant 0 : index
    %309 = vector.load %arg10[%c0_77, %c0_78] : memref<512x256xbf16, #tpu.memory_space<vmem>>, vector<512x256xbf16>
    %c0_79 = arith.constant 0 : index
    %c0_80 = arith.constant 0 : index
    %310 = vector.load %arg11[%c0_79, %c0_80] : memref<1x256xf32, #tpu.memory_space<vmem>>, vector<1x256xf32>
    %c0_81 = arith.constant 0 : index
    %c0_82 = arith.constant 0 : index
    %311 = vector.load %arg12[%c0_81, %c0_82] : memref<2x64xbf16, #tpu.memory_space<vmem>>, vector<2x64xbf16>
    %312 = arith.truncf %308 : vector<16x512xf32> to vector<16x512xbf16>
    %cst_83 = arith.constant dense<0.000000e+00> : vector<16x256xf32>
    %313 = tpu.matmul %312, %309, %cst_83 {dimension_numbers = #tpu.dot_dimension_numbers<[1], [0], [0], [1], [0, 0, 1, 1], [], []>} : vector<16x512xbf16>, vector<512x256xbf16>, vector<16x256xf32> -> vector<16x256xf32>
    %314 = vector.broadcast %310 : vector<1x256xf32> to vector<16x256xf32>
    %315 = arith.addf %313, %314 : vector<16x256xf32>
    %316 = vector.extract_strided_slice %315 {offsets = [0, 0], sizes = [16, 64], strides = [1, 1]} : vector<16x256xf32> to vector<16x64xf32>
    %cst_84 = arith.constant 1.250000e-01 : f32
    %317 = vector.broadcast %cst_84 : f32 to vector<16x64xf32>
    %318 = arith.mulf %316, %317 : vector<16x64xf32>
    %319 = vector.extract_strided_slice %315 {offsets = [0, 64], sizes = [16, 64], strides = [1, 1]} : vector<16x256xf32> to vector<16x64xf32>
    %320 = vector.extract_strided_slice %315 {offsets = [0, 128], sizes = [16, 64], strides = [1, 1]} : vector<16x256xf32> to vector<16x64xf32>
    %321 = vector.extract_strided_slice %315 {offsets = [0, 192], sizes = [16, 64], strides = [1, 1]} : vector<16x256xf32> to vector<16x64xf32>
    %322 = arith.truncf %318 : vector<16x64xf32> to vector<16x64xbf16>
    %323 = arith.truncf %319 : vector<16x64xf32> to vector<16x64xbf16>
    %324 = arith.truncf %320 : vector<16x64xf32> to vector<16x64xbf16>
    %cst_85 = arith.constant dense<0.000000e+00> : vector<16x2xf32>
    %325 = tpu.matmul %322, %311, %cst_85 {dimension_numbers = #tpu.dot_dimension_numbers<[1], [1], [0], [0], [0, 0, 1, 0], [], []>} : vector<16x64xbf16>, vector<2x64xbf16>, vector<16x2xf32> -> vector<16x2xf32>
    %cst_86 = arith.constant dense<0.000000e+00> : vector<16x16xf32>
    %326 = tpu.matmul %322, %323, %cst_86 {dimension_numbers = #tpu.dot_dimension_numbers<[1], [1], [0], [0], [0, 0, 1, 0], [], []>} : vector<16x64xbf16>, vector<16x64xbf16>, vector<16x16xf32> -> vector<16x16xf32>
    %327 = vector.extract_strided_slice %325 {offsets = [0, 0], sizes = [16, 1], strides = [1, 1]} : vector<16x2xf32> to vector<16x1xf32>
    %328 = vector.broadcast %327 : vector<16x1xf32> to vector<16x16xf32>
    %329 = arith.mulf %2, %328 : vector<16x16xf32>
    %330 = arith.addf %326, %329 : vector<16x16xf32>
    %331 = vector.extract_strided_slice %325 {offsets = [0, 1], sizes = [16, 1], strides = [1, 1]} : vector<16x2xf32> to vector<16x1xf32>
    %332 = vector.broadcast %331 : vector<16x1xf32> to vector<16x16xf32>
    %333 = arith.mulf %4, %332 : vector<16x16xf32>
    %334 = arith.addf %330, %333 : vector<16x16xf32>
    %335 = arith.addf %334, %5 : vector<16x16xf32>
    %cst_87 = arith.constant dense<0xFF800000> : vector<16xf32>
    %336 = vector.multi_reduction <maximumf>, %335, %cst_87 [1] : vector<16x16xf32> to vector<16xf32>
    %337 = vector.shape_cast %336 : vector<16xf32> to vector<16x1xf32>
    %338 = vector.broadcast %337 : vector<16x1xf32> to vector<16x16xf32>
    %339 = arith.subf %335, %338 : vector<16x16xf32>
    %340 = math.exp %339 : vector<16x16xf32>
    %cst_88 = arith.constant dense<0.000000e+00> : vector<16xf32>
    %341 = vector.multi_reduction <add>, %340, %cst_88 [1] : vector<16x16xf32> to vector<16xf32>
    %342 = vector.shape_cast %341 : vector<16xf32> to vector<16x1xf32>
    %343 = tpu.reciprocal %342 {approx = true} : vector<16x1xf32> -> vector<16x1xf32>
    %344 = vector.broadcast %343 : vector<16x1xf32> to vector<16x16xf32>
    %345 = arith.mulf %340, %344 : vector<16x16xf32>
    %346 = arith.truncf %345 : vector<16x16xf32> to vector<16x16xbf16>
    %cst_89 = arith.constant dense<0.000000e+00> : vector<16x64xf32>
    %347 = tpu.matmul %346, %324, %cst_89 {dimension_numbers = #tpu.dot_dimension_numbers<[1], [0], [0], [1], [0, 0, 1, 1], [], []>} : vector<16x16xbf16>, vector<16x64xbf16>, vector<16x64xf32> -> vector<16x64xf32>
    %348 = arith.mulf %345, %2 : vector<16x16xf32>
    %cst_90 = arith.constant dense<0.000000e+00> : vector<16xf32>
    %349 = vector.multi_reduction <add>, %348, %cst_90 [1] : vector<16x16xf32> to vector<16xf32>
    %350 = vector.shape_cast %349 : vector<16xf32> to vector<16x1xf32>
    %351 = arith.mulf %345, %4 : vector<16x16xf32>
    %cst_91 = arith.constant dense<0.000000e+00> : vector<16xf32>
    %352 = vector.multi_reduction <add>, %351, %cst_91 [1] : vector<16x16xf32> to vector<16xf32>
    %353 = vector.shape_cast %352 : vector<16xf32> to vector<16x1xf32>
    %354 = tpu.concatenate %350, %353 in 1 : vector<16x1xf32>, vector<16x1xf32> -> vector<16x2xf32>
    %355 = arith.truncf %354 : vector<16x2xf32> to vector<16x2xbf16>
    %cst_92 = arith.constant dense<0.000000e+00> : vector<16x64xf32>
    %356 = tpu.matmul %355, %311, %cst_92 {dimension_numbers = #tpu.dot_dimension_numbers<[1], [0], [0], [1], [0, 0, 1, 1], [], []>} : vector<16x2xbf16>, vector<2x64xbf16>, vector<16x64xf32> -> vector<16x64xf32>
    %357 = arith.addf %347, %356 : vector<16x64xf32>
    %358 = vector.broadcast %6 : vector<16x1xf32> to vector<16x64xf32>
    %359 = arith.mulf %357, %358 : vector<16x64xf32>
    %cst_93 = arith.constant 1.000000e+00 : f32
    %360 = vector.broadcast %cst_93 : f32 to vector<16x64xf32>
    %361 = arith.mulf %359, %360 : vector<16x64xf32>
    %362 = arith.addf %361, %321 : vector<16x64xf32>
    %c0_94 = arith.constant 0 : index
    %c0_95 = arith.constant 0 : index
    %363 = vector.load %arg13[%c0_94, %c0_95] : memref<16x64xf32, #tpu.memory_space<vmem>>, vector<16x64xf32>
    tpu.vector_store %arg13[%c0_94, %c0_95], %362 {strides = array<i32>} : memref<16x64xf32, #tpu.memory_space<vmem>>, vector<16x64xf32>,
    return
  }
}

</mosaic_0001>

<bundles_post_ra>
// kernel: tpu_custom_call.1
= control target key start
LH: loop header
LB: loop body
LE: loop exit
PB: predicated region body
PF: predicated region fallthrough
CT: control target
= control target key end

     0   :  { %18 = vsyncpa [#allocation3], 0  ;;  %s9586_s0 = inlined_call_operand.vmem [shape: bf16[16,5], index: 0, kind: input, shape index: {}]   ;;  %s9587_s1 = inlined_call_operand.hbm [shape: f32[2,16,16], index: 1, kind: input, shape index: {}]   ;;  %s9588_s2 = inlined_call_operand.hbm [shape: f32[16,16], index: 2, kind: input, shape index: {}]   ;;  %s9589_s3 = inlined_call_operand.vmem [shape: f32[16,1], index: 3, kind: input, shape index: {}]   ;;  %s9590_s4 = inlined_call_operand.hbm [shape: bf16[5,2048], index: 4, kind: input, shape index: {}]   ;;  %s9591_s5 = inlined_call_operand.hbm [shape: f32[1,2048], index: 5, kind: input, shape index: {}]   ;;  %s9592_s6 = inlined_call_operand.hbm [shape: bf16[8,512], index: 6, kind: input, shape index: {}]   ;;  %s9593_s7 = inlined_call_operand.hbm [shape: bf16[512,2048], index: 7, kind: input, shape index: {}]   ;;  %s9594_s8 = inlined_call_operand.hbm [shape: f32[1,2048], index: 8, kind: input, shape index: {}]   ;;  %s9595_s9 = inlined_call_operand.hbm [shape: bf16[8,512], index: 9, kind: input, shape index: {}]   ;;  %s9596_s10 = inlined_call_operand.hbm [shape: bf16[512,256], index: 10, kind: input, shape index: {}]   ;;  %s9597_s11 = inlined_call_operand.hbm [shape: f32[1,256], index: 11, kind: input, shape index: {}]   ;;  %s9598_s12 = inlined_call_operand.hbm [shape: bf16[2,64], index: 12, kind: input, shape index: {}]   ;;  %s9599_s13 = inlined_call_operand.hbm [shape: f32[16,64], index: 13, kind: output, shape index: {}]  }
   0x1   :  { %19 = vsyncpa [#allocation6], 0 }
   0x2   :  { %20 = vsyncpa [#allocation9], 0 }
   0x3   :  { %21 = vsyncpa [#allocation12], 0 }
   0x4   :  { %22 = vsyncpa [#allocation15], 0 }
   0x5   :  { %23 = vsyncpa [#allocation18], 0 }
   0x6   :  { %24 = vsyncpa [#allocation4], 0  ;;  %s8516_s25 = smov [#allocation5]   ;;  %s8517_s27 = smov [#allocation8]  }
   0x7   :  { %s44_s26 = sshll.u32 %s8516_s25, 4  ;;  %s69_s28 = sshll.u32 %s8517_s27, 4  ;;  %s45_s26 = int_to_ptr.vmem [resolvable:$true] %s44_s26  ;;  %s70_s28 = int_to_ptr.vmem [resolvable:$true] %s69_s28 }
   0x8   :  { %s8238_s14 = scalar_lea.hbm %s9588_s2, 256 }
   0x9   :  { %p8239_p0 = scmp.ne.s32.totalorder %s9588_s2, %s8238_s14  ;;  %p8242_p1 = scmp.lt.u32.totalorder %s8238_s14, %s9588_s2 }
   0xb   :  { %p8244_p2 = pnand %p8242_p1, %p8239_p0 }
   0xd   :  { %8247 = shalt.err (!%p8244_p2)
}
   0xe   :  { %s8248_s19 = scalar_lea.vmem %s45_s26, 256  ;;  %p8253_p4 = scmp.lt.s32.totalorder %s45_s26, %s45_s26 }
   0xf   :  { %p8249_p3 = scmp.ne.s32.totalorder %s45_s26, %s8248_s19  ;;  %p8254_p5 = scmp.lt.s32.totalorder %s8248_s19, %s8248_s19 }
  0x11   :  { %p8255_p6 = por %p8254_p5, %p8253_p4 }
  0x13   :  { %p8256_p7 = pnand %p8255_p6, %p8249_p3 }
  0x15   :  { %8259 = shalt.err (!%p8256_p7)
}
  0x16   :  { %s8518_s20 = smov 128   ;;  %s8519_s21 = smov 8  }
  0x17   :  { %50 = dma.hbm_to_vmem [thread:$0]  %s9588_s2, 256, %s45_s26, [#allocation6], %s8518_s20, %s8518_s20, %s8519_s21  }
  0x18   :  { %s8260_s27 = scalar_lea.hbm %s9591_s5, 256 }
  0x19   :  { %p8261_p8 = scmp.ne.s32.totalorder %s9591_s5, %s8260_s27  ;;  %p8264_p9 = scmp.lt.u32.totalorder %s8260_s27, %s9591_s5 }
  0x1b   :  { %p8266_p10 = pnand %p8264_p9, %p8261_p8 }
  0x1d   :  { %8269 = shalt.err (!%p8266_p10)
}
  0x1e   :  { %s8270_s16 = scalar_lea.vmem %s70_s28, 256  ;;  %p8275_p12 = scmp.lt.s32.totalorder %s70_s28, %s70_s28 }
  0x1f   :  { %p8271_p11 = scmp.ne.s32.totalorder %s70_s28, %s8270_s16  ;;  %p8276_p13 = scmp.lt.s32.totalorder %s8270_s16, %s8270_s16 }
  0x21   :  { %p8277_p0 = por %p8276_p13, %p8275_p12 }
  0x23   :  { %p8278_p1 = pnand %p8277_p0, %p8271_p11 }
  0x25   :  { %8281 = shalt.err (!%p8278_p1)
}
  0x26   :  { %72 = dma.hbm_to_vmem [thread:$0]  %s9591_s5, 256, %s70_s28, [#allocation9]  }
  0x27   :  { %s8520_s17 = smov [#allocation11]   ;;  %s8282_s23 = scalar_lea.hbm %s9593_s7, 65536 }
  0x28   :  { %s88_s18 = sshll.u32 %s8520_s17, 4  ;;  %p8283_p2 = scmp.ne.s32.totalorder %s9593_s7, %s8282_s23  ;;  %s89_s18 = int_to_ptr.vmem [resolvable:$true] %s88_s18 }
  0x29   :  { %p8286_p3 = scmp.lt.u32.totalorder %s8282_s23, %s9593_s7 }
  0x2b   :  { %p8288_p4 = pnand %p8286_p3, %p8283_p2 }
  0x2d   :  { %8291 = shalt.err (!%p8288_p4)
}
  0x2e   :  { %s8292_s30 = scalar_lea.vmem %s89_s18, 65536  ;;  %p8297_p6 = scmp.lt.s32.totalorder %s89_s18, %s89_s18 }
  0x2f   :  { %p8293_p5 = scmp.ne.s32.totalorder %s89_s18, %s8292_s30  ;;  %p8298_p7 = scmp.lt.s32.totalorder %s8292_s30, %s8292_s30 }
  0x31   :  { %p8299_p8 = por %p8298_p7, %p8297_p6 }
  0x33   :  { %p8300_p9 = pnand %p8299_p8, %p8293_p5 }
  0x35   :  { %8303 = shalt.err (!%p8300_p9)
}
  0x36   :  { %s8521_s5 = smov 1024   ;;  %s8522_s28 = smov 64  }
  0x37   :  { %94 = dma.hbm_to_vmem [thread:$0]  %s9593_s7, 65536, %s89_s18, [#allocation12], %s8521_s5, %s8521_s5, %s8522_s28  }
  0x38   :  { %s8523_s16 = smov [#allocation14]   ;;  %s8524_s26 = smov [#allocation17]  }
  0x39   :  { %s111_s2 = sshll.u32 %s8523_s16, 4  ;;  %s133_s17 = sshll.u32 %s8524_s26, 4  ;;  %s112_s2 = int_to_ptr.vmem [resolvable:$true] %s111_s2  ;;  %s134_s17 = int_to_ptr.vmem [resolvable:$true] %s133_s17 }
  0x3a   :  { %s8304_s23 = scalar_lea.hbm %s9595_s9, 256 }
  0x3b   :  { %p8305_p10 = scmp.ne.s32.totalorder %s9595_s9, %s8304_s23  ;;  %p8308_p11 = scmp.lt.u32.totalorder %s8304_s23, %s9595_s9 }
  0x3d   :  { %p8310_p12 = pnand %p8308_p11, %p8305_p10 }
  0x3f   :  { %8313 = shalt.err (!%p8310_p12)
}
  0x40   :  { %s8314_s7 = scalar_lea.vmem %s112_s2, 256  ;;  %p8319_p0 = scmp.lt.s32.totalorder %s112_s2, %s112_s2 }
  0x41   :  { %p8315_p13 = scmp.ne.s32.totalorder %s112_s2, %s8314_s7  ;;  %p8320_p1 = scmp.lt.s32.totalorder %s8314_s7, %s8314_s7 }
  0x43   :  { %p8321_p2 = por %p8320_p1, %p8319_p0 }
  0x45   :  { %p8322_p3 = pnand %p8321_p2, %p8315_p13 }
  0x47   :  { %8325 = shalt.err (!%p8322_p3)
}
  0x48   :  { %114 = dma.hbm_to_vmem [thread:$0]  %s9595_s9, 256, %s112_s2, [#allocation15]  }
  0x49   :  { %s8326_s15 = scalar_lea.hbm %s9597_s11, 32 }
  0x4a   :  { %p8327_p4 = scmp.ne.s32.totalorder %s9597_s11, %s8326_s15  ;;  %p8330_p5 = scmp.lt.u32.totalorder %s8326_s15, %s9597_s11 }
  0x4c   :  { %p8332_p6 = pnand %p8330_p5, %p8327_p4 }
  0x4e   :  { %8335 = shalt.err (!%p8332_p6)
}
  0x4f   :  { %s8336_s23 = scalar_lea.vmem %s134_s17, 32  ;;  %p8341_p8 = scmp.lt.s32.totalorder %s134_s17, %s134_s17 }
  0x50   :  { %p8337_p7 = scmp.ne.s32.totalorder %s134_s17, %s8336_s23  ;;  %p8342_p9 = scmp.lt.s32.totalorder %s8336_s23, %s8336_s23 }
  0x52   :  { %p8343_p10 = por %p8342_p9, %p8341_p8 }
  0x54   :  { %p8344_p11 = pnand %p8343_p10, %p8337_p7 }
  0x56   :  { %8347 = shalt.err (!%p8344_p11)
}
  0x57   :  { %136 = dma.hbm_to_vmem [thread:$0]  %s9597_s11, 32, %s134_s17, [#allocation18]  }
  0x58   :  { %s8525_s24 = smov [#allocation2]   ;;  %s8526_s27 = smov [#allocation7]  }
  0x59   :  { %s32_s25 = sshll.u32 %s8525_s24, 4  ;;  %s59_s29 = sshll.u32 %s8526_s27, 4  ;;  %s33_s25 = int_to_ptr.vmem [resolvable:$true] %s32_s25  ;;  %s60_s29 = int_to_ptr.vmem [resolvable:$true] %s59_s29 }
  0x5a   :  { %s8348_s30 = scalar_lea.hbm %s9587_s1, 512 }
  0x5b   :  { %p8349_p12 = scmp.ne.s32.totalorder %s9587_s1, %s8348_s30  ;;  %p8352_p13 = scmp.lt.u32.totalorder %s8348_s30, %s9587_s1 }
  0x5d   :  { %p8354_p0 = pnand %p8352_p13, %p8349_p12 }
  0x5f   :  { %8357 = shalt.err (!%p8354_p0)
}
  0x60   :  { %s8358_s11 = scalar_lea.vmem %s33_s25, 512  ;;  %p8363_p2 = scmp.lt.s32.totalorder %s33_s25, %s33_s25 }
  0x61   :  { %p8359_p1 = scmp.ne.s32.totalorder %s33_s25, %s8358_s11  ;;  %p8364_p3 = scmp.lt.s32.totalorder %s8358_s11, %s8358_s11 }
  0x63   :  { %p8365_p4 = por %p8364_p3, %p8363_p2 }
  0x65   :  { %p8366_p5 = pnand %p8365_p4, %p8359_p1 }
  0x67   :  { %8369 = shalt.err (!%p8366_p5)
}
  0x68   :  { %38 = dma.hbm_to_vmem [thread:$0]  %s9587_s1, 512, %s33_s25, [#allocation3], %s8518_s20, %s8518_s20, %s8519_s21  }
  0x69   :  { %s8370_s23 = scalar_lea.hbm %s9590_s4, 1024 }
  0x6a   :  { %p8371_p6 = scmp.ne.s32.totalorder %s9590_s4, %s8370_s23  ;;  %p8374_p7 = scmp.lt.u32.totalorder %s8370_s23, %s9590_s4 }
  0x6c   :  { %p8376_p8 = pnand %p8374_p7, %p8371_p6 }
  0x6e   :  { %8379 = shalt.err (!%p8376_p8)
}
  0x6f   :  { %s8380_s7 = scalar_lea.vmem %s60_s29, 1024  ;;  %p8385_p10 = scmp.lt.s32.totalorder %s60_s29, %s60_s29 }
  0x70   :  { %p8381_p9 = scmp.ne.s32.totalorder %s60_s29, %s8380_s7  ;;  %p8386_p11 = scmp.lt.s32.totalorder %s8380_s7, %s8380_s7 }
  0x72   :  { %p8387_p12 = por %p8386_p11, %p8385_p10 }
  0x74   :  { %p8388_p13 = pnand %p8387_p12, %p8381_p9 }
  0x76   :  { %8391 = shalt.err (!%p8388_p13)
}
  0x77   :  { %62 = dma.hbm_to_vmem [thread:$0]  %s9590_s4, 1024, %s60_s29, [#allocation6]  }
  0x78   :  { %s8527_s18 = smov [#allocation10]   ;;  %s8528_s5 = smov [#allocation13]  }
  0x79   :  { %s79_s30 = sshll.u32 %s8527_s18, 4  ;;  %s101_s14 = sshll.u32 %s8528_s5, 4  ;;  %s80_s30 = int_to_ptr.vmem [resolvable:$true] %s79_s30  ;;  %s102_s14 = int_to_ptr.vmem [resolvable:$true] %s101_s14 }
  0x7a   :  { %s8392_s11 = scalar_lea.hbm %s9592_s6, 256 }
  0x7b   :  { %p8393_p0 = scmp.ne.s32.totalorder %s9592_s6, %s8392_s11  ;;  %p8396_p1 = scmp.lt.u32.totalorder %s8392_s11, %s9592_s6 }
  0x7d   :  { %p8398_p2 = pnand %p8396_p1, %p8393_p0 }
  0x7f   :  { %8401 = shalt.err (!%p8398_p2)
}
  0x80   :  { %s8402_s4 = scalar_lea.vmem %s80_s30, 256  ;;  %p8407_p4 = scmp.lt.s32.totalorder %s80_s30, %s80_s30 }
  0x81   :  { %p8403_p3 = scmp.ne.s32.totalorder %s80_s30, %s8402_s4  ;;  %p8408_p5 = scmp.lt.s32.totalorder %s8402_s4, %s8402_s4 }
  0x83   :  { %p8409_p6 = por %p8408_p5, %p8407_p4 }
  0x85   :  { %p8410_p7 = pnand %p8409_p6, %p8403_p3 }
  0x87   :  { %8413 = shalt.err (!%p8410_p7)
}
  0x88   :  { %82 = dma.hbm_to_vmem [thread:$0]  %s9592_s6, 256, %s80_s30, [#allocation9]  }
  0x89   :  { %s8414_s24 = scalar_lea.hbm %s9594_s8, 256 }
  0x8a   :  { %p8415_p8 = scmp.ne.s32.totalorder %s9594_s8, %s8414_s24  ;;  %p8418_p9 = scmp.lt.u32.totalorder %s8414_s24, %s9594_s8 }
  0x8c   :  { %p8420_p10 = pnand %p8418_p9, %p8415_p8 }
  0x8e   :  { %8423 = shalt.err (!%p8420_p10)
}
  0x8f   :  { %s8424_s18 = scalar_lea.vmem %s102_s14, 256  ;;  %p8429_p12 = scmp.lt.s32.totalorder %s102_s14, %s102_s14 }
  0x90   :  { %p8425_p11 = scmp.ne.s32.totalorder %s102_s14, %s8424_s18  ;;  %p8430_p13 = scmp.lt.s32.totalorder %s8424_s18, %s8424_s18 }
  0x92   :  { %p8431_p0 = por %p8430_p13, %p8429_p12 }
  0x94   :  { %p8432_p1 = pnand %p8431_p0, %p8425_p11 }
  0x96   :  { %8435 = shalt.err (!%p8432_p1)
}
  0x97   :  { %104 = dma.hbm_to_vmem [thread:$0]  %s9594_s8, 256, %s102_s14, [#allocation12]  }
  0x98   :  { %s8529_s5 = smov [#allocation16]   ;;  %s8530_s16 = smov [#allocation19]  }
  0x99   :  { %s120_s15 = sshll.u32 %s8529_s5, 4  ;;  %s143_s11 = sshll.u32 %s8530_s16, 4  ;;  %s121_s15 = int_to_ptr.vmem [resolvable:$true] %s120_s15  ;;  %s144_s11 = int_to_ptr.vmem [resolvable:$true] %s143_s11 }
  0x9a   :  { %s8436_s19 = scalar_lea.hbm %s9596_s10, 8192 }
  0x9b   :  { %p8437_p2 = scmp.ne.s32.totalorder %s9596_s10, %s8436_s19  ;;  %p8440_p3 = scmp.lt.u32.totalorder %s8436_s19, %s9596_s10 }
  0x9d   :  { %p8442_p4 = pnand %p8440_p3, %p8437_p2 }
  0x9f   :  { %8445 = shalt.err (!%p8442_p4)
}
  0xa0   :  { %s8446_s8 = scalar_lea.vmem %s121_s15, 8192  ;;  %p8451_p6 = scmp.lt.s32.totalorder %s121_s15, %s121_s15 }
  0xa1   :  { %p8447_p5 = scmp.ne.s32.totalorder %s121_s15, %s8446_s8  ;;  %p8452_p7 = scmp.lt.s32.totalorder %s8446_s8, %s8446_s8 }
  0xa3   :  { %p8453_p8 = por %p8452_p7, %p8451_p6 }
  0xa5   :  { %p8454_p9 = pnand %p8453_p8, %p8447_p5 }
  0xa7   :  { %8457 = shalt.err (!%p8454_p9)
}
  0xa8   :  { %126 = dma.hbm_to_vmem [thread:$0]  %s9596_s10, 8192, %s121_s15, [#allocation15], %s8518_s20, %s8518_s20, %s8519_s21  }
  0xa9   :  { %s8458_s27 = scalar_lea.hbm %s9598_s12, 16 }
  0xaa   :  { %p8459_p10 = scmp.ne.s32.totalorder %s9598_s12, %s8458_s27  ;;  %p8462_p11 = scmp.lt.u32.totalorder %s8458_s27, %s9598_s12 }
  0xac   :  { %p8464_p12 = pnand %p8462_p11, %p8459_p10 }
  0xae   :  { %8467 = shalt.err (!%p8464_p12)
}
  0xaf   :  { %s8468_s6 = scalar_lea.vmem %s144_s11, 16  ;;  %s8472_s30 = scalar_lea.vmem %s144_s11, 32 }
  0xb0   :  { %p8469_p13 = scmp.ne.s32.totalorder %s144_s11, %s8468_s6  ;;  %p8473_p0 = scmp.lt.s32.totalorder %s144_s11, %s144_s11 }
  0xb1   :  { %p8474_p1 = scmp.lt.s32.totalorder %s8472_s30, %s8468_s6 }
  0xb3   :  { %p8475_p2 = por %p8474_p1, %p8473_p0 }
  0xb5   :  { %p8476_p3 = pnand %p8475_p2, %p8469_p13 }
  0xb7   :  { %8479 = shalt.err (!%p8476_p3)
}
  0xb8   :  { %146 = dma.hbm_to_vmem [thread:$0]  %s9598_s12, 16, %s144_s11, [#allocation18]  }
  0xb9   :  { %8502 = dma.done.wait [#allocation3], 512  }
  0xba   :  { %8503 = vsyncadd [#allocation3], 4294966784 }
  0xbb   :  { %8504 = dma.done.wait [#allocation6], 1280  }
  0xbc   :  { %8505 = vsyncadd [#allocation6], 4294966016 }
  0xbd   :  { %8506 = dma.done.wait [#allocation9], 512  }
  0xbe   :  { %8507 = vsyncadd [#allocation9], 4294966784 }
  0xbf   :  { %8508 = dma.done.wait [#allocation12], 65792  }
  0xc0   :  { %8509 = vsyncadd [#allocation12], 4294901504 }
  0xc1   :  { %8510 = dma.done.wait [#allocation15], 8448  }
  0xc2   :  { %8511 = vsyncadd [#allocation15], 4294958848 }
  0xc3   :  { %8512 = dma.done.wait [#allocation18], 48  }
  0xc4   :  { %8513 = vsyncadd [#allocation18], 4294967248  ;;  %vm334_vm0 = vcmask 1041408   ;;  %v8531_v0 = vmov 0   ;;  %vm335_vm1 = vcmask 1042432   ;;  %v8532_v1 = vmov 65535  }
  0xc5   :  { %418 = vmatprep.mubr.bf16.mxu0 %v8531_v0  ;;  %633 = vmatprep.mubr.bf16.mxu1 %v8531_v0  ;;  %v336_v2 = vsel %vm334_vm0, 4294967295, %v8532_v1  ;;  %v191_v4 = vld [vmem:[#allocation7] sm:$0x77]  ;;  %v192_v7 = vld [vmem:[#allocation7 + $0x8] sm:$0x77]  ;;  %vm330_vm2 = vcmask 39936   ;;  %v205_v52 = vlaneseq }
  0xc6   :  { %7997 = vset.pattern.permute.xlu0 %v8531_v0  ;;  %v8758_v3 = vsel %vm335_vm1, %v336_v2, 0  ;;  %v7099_v5 = vcombine.high %v191_v4, %v191_v4  ;;  %v7098_v6 = vcombine.low %v191_v4, %v191_v4  ;;  %v193_v8 = vld [vmem:[#allocation7 + $0x10] sm:$0x77]  ;;  %v7100_v9 = vcombine.low %v192_v7, %v192_v7  ;;  %v8765_v13 = vld [vmem:[%s9586_s0] sm:$0xff]   ;;  %v194_v17 = vld [vmem:[#allocation7 + $0x18] sm:$0x77] }
  0xc7   :  { %v7101_v10 = vcombine.high %v192_v7, %v192_v7  ;;  %v7103_v14 = vcombine.high %v193_v8, %v193_v8  ;;  %v7102_v19 = vcombine.low %v193_v8, %v193_v8  ;;  %v7105_v20 = vcombine.high %v194_v17, %v194_v17  ;;  %v195_v22 = vld [vmem:[#allocation7 + $0x20] sm:$0x77]  ;;  %v197_v28 = vld [vmem:[#allocation7 + $0x30] sm:$0x77]  ;;  %v196_v38 = vld [vmem:[#allocation7 + $0x28] sm:$0x77] }
  0xc8   :  { %v342_v11 = vand.u32 %v7099_v5, %v8758_v3  ;;  %v339_v12 = vand.u32 %v7098_v6, %v8758_v3  ;;  %v345_v16 = vand.u32 %v7100_v9, %v8758_v3  ;;  %v7104_v24 = vcombine.low %v194_v17, %v194_v17  ;;  %v201_v35 = vld [vmem:[#allocation10] sm:$0xff]  ;;  %v198_v43 = vld [vmem:[#allocation7 + $0x38] sm:$0x77]  ;;  %v199_v55 = vld [vmem:[#allocation8] sm:$0xff] }
  0xc9   :  { %v348_v15 = vand.u32 %v7101_v10, %v8758_v3  ;;  %v354_v18 = vand.u32 %v7103_v14, %v8758_v3  ;;  %v351_v21 = vand.u32 %v7102_v19, %v8758_v3  ;;  %v360_v23 = vand.u32 %v7105_v20, %v8758_v3  ;;  %v202_v47 = vld [vmem:[#allocation10 + $0x8] sm:$0xff] }
  0xca   :  { %386 = vmatprep.subr.bf16.mxu0 %v342_v11  ;;  %v7107_v25 = vcombine.high %v195_v22, %v195_v22  ;;  %v357_v26 = vand.u32 %v7104_v24, %v8758_v3  ;;  %v7106_v29 = vcombine.low %v195_v22, %v195_v22  ;;  %v7111_v30 = vcombine.high %v197_v28, %v197_v28 }
  0xcb   :  { %387 = vmatpush1.bf16.msra.mxu0 %v339_v12  ;;  %v7110_v33 = vcombine.low %v197_v28, %v197_v28  ;;  %v8794_v36 = vcombine.high %v201_v35, %v201_v35  ;;  %v8796_v37 = vcombine.low %v201_v35, %v201_v35  ;;  %v7109_v39 = vcombine.high %v196_v38, %v196_v38 }
  0xcc   :  { %429 = vmatprep.subr.bf16.mxu0 %v348_v15  ;;  %v366_v27 = vand.u32 %v7107_v25, %v8758_v3  ;;  %v363_v31 = vand.u32 %v7106_v29, %v8758_v3  ;;  %v378_v32 = vand.u32 %v7111_v30, %v8758_v3  ;;  %v7108_v40 = vcombine.low %v196_v38, %v196_v38 }
  0xcd   :  { %v375_v34 = vand.u32 %v7110_v33, %v8758_v3  ;;  %v372_v41 = vand.u32 %v7109_v39, %v8758_v3  ;;  %v7113_v44 = vcombine.high %v198_v43, %v198_v43  ;;  %v7112_v45 = vcombine.low %v198_v43, %v198_v43 }
  0xce   :  { %7114 = vmatmul.mubr.msk.bf16.vlgmr.msra.gmra.mrb[0].mxu0 %vm330_vm2, %v8765_v13  ;;  %v369_v42 = vand.u32 %v7108_v40, %v8758_v3  ;;  %v8804_v49 = vcombine.high %v202_v47, %v202_v47  ;;  %v8533_v50 = vmov 0.0   ;;  %vm8534_vm3 = vmmov 0  }
  0xcf   :  { %430 = vmatpush1.bf16.msra.mxu0 %v345_v16  ;;  %461 = vmatprep.mubr.bf16.mxu0 %v8531_v0  ;;  %v384_v46 = vand.u32 %v7113_v44, %v8758_v3  ;;  %v381_v48 = vand.u32 %v7112_v45, %v8758_v3  ;;  %v9608_v51 = vmov 2   ;;  %v206_v53 = vshrl.u32 %v205_v52, 7 }
  0xd0   :  { %472 = vmatprep.subr.bf16.mxu0 %v354_v18  ;;  %601 = vmatprep.subr.bf16.mxu1 %v372_v41  ;;  %v8828_v15 = vcombine.low %v202_v47, %v202_v47  ;;  %vm913_vm4 = vcmask 130048   ;;  %vm1466_vm5 = vcmask 1043456   ;;  %vm1441_vm6 = vcmask 7168  }
  0xd1   :  { %602 = vmatpush1.bf16.msra.mxu1 %v369_v42  ;;  %7998 = vset.pattern.permute.xlu1 %v9608_v51  ;;  %v8816_v54 = vsub.s32 0, %v206_v53  ;;  %v8818_v56 = vsub.s32 1, %v206_v53  ;;  %v8822_v62 = vsub.s32 2, %v206_v53  ;;  %v8824_v2 = vsub.s32 3, %v206_v53 }
  0xd2   :  { %687 = vmatprep.subr.bf16.mxu1 %v384_v46  ;;  %v8830_v18 = vsub.s32 4, %v206_v53  ;;  %v8838_v38 = vsub.s32 6, %v206_v53  ;;  %v8840_v41 = vsub.s32 7, %v206_v53  ;;  %vm1444_vm7 = vcmask 15360  }
  0xd3   :  { %v208_v57 = vrot.slane %v199_v55, %v8816_v54  ;;  %v212_v58 = vrot.slane %v199_v55, %v8818_v56  ;;  %v216_v8 = vrot.slane %v199_v55, %v8822_v62  ;;  %v220_v11 = vrot.slane %v199_v55, %v8824_v2 }
  0xd4   :  { %7119 = vmatmul.mubr.msk.bf16.vlgmr.msra.gmra.mrb[0].mxu1 %vm330_vm2, %v8765_v13  ;;  %v224_v28 = vrot.slane %v199_v55, %v8830_v18  ;;  %v232_v46 = vrot.slane %v199_v55, %v8838_v38  ;;  %vm1447_vm8 = vcmask 23552   ;;  %vm1450_vm9 = vcmask 31744  }
  0xd5   :  { %688 = vmatpush1.bf16.msra.mxu1 %v381_v48  ;;  %719 = vmatprep.mubr.bf16.mxu1 %v8531_v0  ;;  %v236_v48 = vrot.slane %v199_v55, %v8840_v41  ;;  %vm1455_vm10 = vcmask 48128   ;;  %vm1458_vm11 = vcmask 56320   ;;  %vm1462_vm12 = vcmask 64512  }
  0xd6   :  { %7115 = vmatmul.mubr.msk.bf16.vlgmr.msra.gmra.mrb[4].mxu0 %vm330_vm2, %v8765_v13  ;;  %7766 = vmatprep.subr.bf16.mxu1 %v8533_v50  ;;  %vm6807_vm13 = vcmask 523264   ;;  %vm6973_vm14 = vcmask 1040384  }
  0xd7   :  { %473 = vmatpush1.bf16.msra.mxu0 %v351_v21  ;;  %504 = vmatprep.mubr.bf16.mxu0 %v8531_v0  ;;  %v8832_v21 = vsub.s32 5, %v206_v53 }
  0xd8   :  { %515 = vmatprep.subr.bf16.mxu0 %v360_v23 }
  0xd9   :  { %v228_v30 = vrot.slane %v199_v55, %v8832_v21 }
  0xdc   :  { %7121 = vmatmul.mubr.msk.bf16.vlgmr.msra.gmra.mrb[4].mxu1 %vm330_vm2, %v8765_v13 }
  0xdd   :  { %7768 = vmatprep.mubr.msk.bf16.mxu1 %vm8534_vm3, %v8533_v50 }
  0xde   :  { %7116 = vmatmul.mubr.msk.bf16.vlgmr.msra.gmra.mrb[8].mxu0 %vm330_vm2, %v8765_v13 }
  0xdf   :  { %516 = vmatpush1.bf16.msra.mxu0 %v357_v26  ;;  %547 = vmatprep.mubr.bf16.mxu0 %v8531_v0 }
  0xe0   :  { %558 = vmatprep.subr.bf16.mxu0 %v366_v27 }
  0xe6   :  { %7117 = vmatmul.mubr.msk.bf16.vlgmr.msra.gmra.mrb[12].mxu0 %vm330_vm2, %v8765_v13 }
  0xe7   :  { %559 = vmatpush1.bf16.msra.mxu0 %v363_v31  ;;  %590 = vmatprep.mubr.bf16.mxu0 %v8531_v0 }
  0xe8   :  { %644 = vmatprep.subr.bf16.mxu0 %v378_v32 }
  0xee   :  { %7118 = vmatmul.mubr.msk.bf16.vlgmr.msra.gmra.mrb[16].mxu0 %vm330_vm2, %v8765_v13 }
  0xef   :  { %645 = vmatpush1.bf16.msra.mxu0 %v375_v34  ;;  %676 = vmatprep.mubr.bf16.mxu0 %v8531_v0 }
  0xf0   :  { %764 = vmatprep.subr.bf16.mxu0 %v8794_v36 }
  0xf6   :  { %7120 = vmatmul.mubr.msk.bf16.vlgmr.msra.gmra.mrb[20].mxu0 %vm330_vm2, %v8765_v13 }
  0xf8   :  { %765 = vmatpush1.bf16.xpose.msra.mxu0 %v8796_v37 }
  0xf9   :  { %805 = vmatprep.subr.bf16.mxu0 %v8804_v49 }
 0x1a1   :  { %v420_v59 = vpop.f32.mrb[0].mxu0 }
 0x1a2   :  { %v421_v60 = vadd.f32 %v420_v59, %v208_v57  ;;  %v422_v61 = vpop.f32.mrb[1].mxu0 }
 0x1a3   :  { %v423_v63 = vadd.f32 %v422_v61, %v212_v58  ;;  %v424_v1 = vpop.f32.mrb[2].mxu0 }
 0x1a4   :  { %v425_v3 = vadd.f32 %v424_v1, %v208_v57  ;;  %v426_v4 = vpop.f32.mrb[3].mxu0  ;;  %v730_v6 = vmul.f32 0.088388346, %v421_v60  ;;  %v200_v60 = vld [vmem:[#allocation8 + $0x8] sm:$0xff] }
 0x1a5   :  { %v427_v5 = vadd.f32 %v426_v4, %v212_v58  ;;  %v731_v9 = vmul.f32 0.088388346, %v423_v63 }
 0x1a6   :  { %v734_v7 = vmul.f32 0.088388346, %v425_v3  ;;  %v240_v3 = vrot.slane %v200_v60, %v8816_v54 }
 0x1a7   :  { %v735_v10 = vmul.f32 0.088388346, %v427_v5  ;;  %v244_v5 = vrot.slane %v200_v60, %v8818_v56 }
 0x1a8   :  { %v738_v12 = vpack.c.bf16 %v734_v7, %v730_v6 }
 0x1a9   :  { %v739_v13 = vpack.c.bf16 %v735_v10, %v731_v9  ;;  %v463_v14 = vpop.f32.mrb[4].mxu0 }
 0x1aa   :  { %v464_v16 = vadd.f32 %v463_v14, %v216_v8  ;;  %v465_v17 = vpop.f32.mrb[5].mxu0 }
 0x1ab   :  { %v466_v19 = vadd.f32 %v465_v17, %v220_v11  ;;  %796 = vmatprep.mubr.bf16.mxu0 %v739_v13  ;;  %v467_v20 = vpop.f32.mrb[6].mxu0 }
 0x1ac   :  { %v732_v22 = vmul.f32 0.088388346, %v464_v16  ;;  %v468_v23 = vadd.f32 %v467_v20, %v216_v8  ;;  %797 = vmatmul.mubr.bf16.vlgmr.msra.gmra.mrb[24].mxu0 %v738_v12  ;;  %v469_v24 = vpop.f32.mrb[7].mxu0 }
 0x1ad   :  { %v733_v25 = vmul.f32 0.088388346, %v466_v19  ;;  %v470_v26 = vadd.f32 %v469_v24, %v220_v11  ;;  %806 = vmatpush1.bf16.xpose.msra.mxu0 %v8828_v15 }
 0x1ae   :  { %v736_v27 = vmul.f32 0.088388346, %v468_v23  ;;  %7778 = vmatprep.subr.bf16.mxu0 %v8533_v50  ;;  %v635_v23 = vpop.f32.mrb[0].mxu1 }
 0x1af   :  { %v737_v29 = vmul.f32 0.088388346, %v470_v26  ;;  %v637_v24 = vpop.f32.mrb[1].mxu1  ;;  %v252_v26 = vrot.slane %v200_v60, %v8824_v2 }
 0x1b0   :  { %v740_v31 = vpack.c.bf16 %v736_v27, %v732_v22 }
 0x1b1   :  { %v741_v32 = vpack.c.bf16 %v737_v29, %v733_v25  ;;  %v506_v33 = vpop.f32.mrb[8].mxu0  ;;  %v248_v25 = vrot.slane %v200_v60, %v8822_v62  ;;  %v639_v29 = vpop.f32.mrb[2].mxu1 }
 0x1b2   :  { %v507_v34 = vadd.f32 %v506_v33, %v224_v28  ;;  %v508_v35 = vpop.f32.mrb[9].mxu0 }
 0x1b3   :  { %v509_v39 = vadd.f32 %v508_v35, %v228_v30  ;;  %v510_v40 = vpop.f32.mrb[10].mxu0  ;;  %837 = vmatprep.mubr.bf16.mxu0 %v741_v32  ;;  %v8875_v27 = vadd.f32 %v635_v23, %v248_v25  ;;  %v8920_v23 = vld [vmem:[#allocation2] sm:$0xff] }
 0x1b4   :  { %v511_v42 = vadd.f32 %v510_v40, %v224_v28  ;;  %v512_v43 = vpop.f32.mrb[11].mxu0  ;;  %v8877_v28 = vadd.f32 %v637_v24, %v252_v26 }
 0x1b5   :  { %v513_v44 = vadd.f32 %v512_v43, %v228_v30  ;;  %v8879_v30 = vadd.f32 %v639_v29, %v248_v25 }
 0x1b6   :  { %v742_v45 = vpack.c.bf16 %v511_v42, %v507_v34 }
 0x1b7   :  { %v743_v47 = vpack.c.bf16 %v513_v44, %v509_v39 }
 0x1b8   :  { %838 = vmatmul.mubr.bf16.vlgmr.msra.gmra.mrb[24].mxu0 %v740_v31  ;;  %7767 = vmatpush3.bf16.xpose.msra.mxu1 %v742_v45 }
 0x1b9   :  { %7779 = vmatpush3.bf16.xpose.msra.mxu0 %v743_v47  ;;  %v549_v52 = vpop.f32.mrb[12].mxu0  ;;  %7780 = vmatprep.mubr.msk.bf16.mxu0 %vm8534_vm3, %v8533_v50  ;;  %v9602_v47 = vmov 3  }
 0x1ba   :  { %v550_v57 = vadd.f32 %v549_v52, %v232_v46  ;;  %v551_v58 = vpop.f32.mrb[13].mxu0  ;;  %7790 = vmatprep.subr.bf16.mxu0 %v8533_v50  ;;  %7772 = vmatprep.subr.bf16.mxu1 %v8533_v50 }
 0x1bb   :  { %v552_v53 = vadd.f32 %v551_v58, %v236_v48  ;;  %v553_v59 = vpop.f32.mrb[14].mxu0 }
 0x1bc   :  { %v554_v61 = vadd.f32 %v553_v59, %v232_v46  ;;  %v555_v63 = vpop.f32.mrb[15].mxu0 }
 0x1bd   :  { %v556_v1 = vadd.f32 %v555_v63, %v236_v48  ;;  %v9606_v48 = vmov 1   ;;  %v9610_v63 = vmov 5  }
 0x1be   :  { %v744_v55 = vpack.c.bf16 %v554_v61, %v550_v57  ;;  %v9612_v61 = vmov 4  }
 0x1bf   :  { %7769 = vmatmul.mubr.bf16.vlgmr.msra.gmra.mrb[8].mxu1 %v738_v12  ;;  %v745_v4 = vpack.c.bf16 %v556_v1, %v552_v53 }
 0x1c0   :  { %7781 = vmatmul.mubr.bf16.vlgmr.msra.gmra.mrb[28].mxu0 %v739_v13  ;;  %7774 = vmatprep.mubr.msk.bf16.mxu1 %vm8534_vm3, %v8533_v50 }
 0x1c1   :  { %7791 = vmatpush3.bf16.xpose.msra.mxu0 %v744_v55  ;;  %7792 = vmatprep.mubr.msk.bf16.mxu0 %vm8534_vm3, %v8533_v50  ;;  %v592_v6 = vpop.f32.mrb[16].mxu0 }
 0x1c2   :  { %7802 = vmatprep.subr.bf16.mxu0 %v8533_v50  ;;  %v593_v7 = vadd.f32 %v592_v6, %v240_v3  ;;  %v594_v8 = vpop.f32.mrb[17].mxu0 }
 0x1c3   :  { %v8855_v9 = vadd.f32 %v594_v8, %v244_v5  ;;  %v596_v10 = vpop.f32.mrb[18].mxu0 }
 0x1c4   :  { %v597_v11 = vadd.f32 %v596_v10, %v240_v3  ;;  %v598_v12 = vpop.f32.mrb[19].mxu0  ;;  %v9600_v3 = vmov 6  }
 0x1c5   :  { %v8857_v14 = vadd.f32 %v598_v12, %v244_v5 }
 0x1c6   :  { %v746_v13 = vpack.c.bf16 %v597_v11, %v593_v7 }
 0x1c7   :  { %v747_v16 = vpack.c.bf16 %v8857_v14, %v8855_v9 }
 0x1c8   :  { %7793 = vmatmul.mubr.bf16.vlgmr.msra.gmra.mrb[32].mxu0 %v740_v31  ;;  %7773 = vmatpush3.bf16.msra.mxu1 %v746_v13  ;;  %v641_v31 = vpop.f32.mrb[3].mxu1  ;;  %v9604_v13 = vmov 7  }
 0x1c9   :  { %7803 = vmatpush3.bf16.xpose.msra.mxu0 %v745_v4  ;;  %7804 = vmatprep.mubr.msk.bf16.mxu0 %vm8534_vm3, %v8533_v50  ;;  %v8863_v17 = vpop.f32.mrb[20].mxu0  ;;  %v8881_v33 = vadd.f32 %v641_v31, %v252_v26  ;;  %v8883_v34 = vpop.f32.mrb[4].mxu1  ;;  %v8924_v31 = vld [vmem:[#allocation2 + $0x10] sm:$0xff] }
 0x1ca   :  { %v8865_v19 = vpop.f32.mrb[21].mxu0  ;;  %7784 = vmatprep.subr.bf16.mxu1 %v8533_v50  ;;  %v8887_v35 = vpop.f32.mrb[5].mxu1  ;;  %7130 = vmatprep.subr.msk.bf16.mxu0 %vm1466_vm5, %v8794_v36  ;;  %v1615_v36 = vld [vmem:[#allocation11 + $0x40] sm:$0xff] }
 0x1cb   :  { %v8868_v20 = vpop.f32.mrb[22].mxu0  ;;  %v749_v39 = vpack.c.bf16 %v8881_v33, %v8877_v28  ;;  %v8891_v40 = vpop.f32.mrb[6].mxu1 }
 0x1cc   :  { %v8870_v22 = vpop.f32.mrb[23].mxu0  ;;  %v8893_v42 = vpop.f32.mrb[7].mxu1 }
 0x1d0   :  { %7805 = vmatmul.mubr.bf16.vlgmr.msra.gmra.mrb[36].mxu0 %v741_v32  ;;  %v748_v32 = vpack.c.bf16 %v8879_v30, %v8875_v27 }
 0x1d1   :  { %1511 = vmatprep.mubr.bf16.mxu0 %v8531_v0 }
 0x28b   :  { %v839_v43 = vpop.f32.mrb[24].mxu0 }
 0x28c   :  { %998 = vperm.xlu1 %7998, %v839_v43   ;;  %848 = vperm.xlu0 %7997, %v839_v43   ;;  %v841_v44 = vpop.f32.mrb[25].mxu0 }
 0x28d   :  { %v842_v45 = vpop.f32.mrb[26].mxu0 }
 0x28e   :  { %v844_v46 = vpop.f32.mrb[27].mxu0 }
 0x290   :  { %8000 = vset.pattern.permute.xlu1 %v9602_v47  ;;  %7999 = vset.pattern.permute.xlu0 %v9606_v48 }
 0x291   :  { %1049 = vperm.xlu1 %8000, %v839_v43   ;;  %900 = vperm.xlu0 %7999, %v839_v43  }
 0x292   :  { %v892_v52 = vpop.f32.mrb[8].mxu1 }
 0x293   :  { %v7770_v57 = vpop.f32.mrb[9].mxu1  ;;  %v1041_v58 = vpop.f32.mrb[28].mxu0 }
 0x294   :  { %v8897_v53 = vpop.f32.mrb[10].mxu1  ;;  %v7782_v59 = vpop.f32.mrb[29].mxu0 }
 0x295   :  { %v7771_v60 = vpop.f32.mrb[11].mxu1  ;;  %8001 = vset.pattern.permute.xlu1 %v9612_v61  ;;  %8002 = vset.pattern.permute.xlu0 %v9610_v63  ;;  %v8901_v1 = vpop.f32.mrb[30].mxu0 }
 0x296   :  { %1146 = vperm.xlu1 %8001, %v839_v43   ;;  %1197 = vperm.xlu0 %8002, %v839_v43   ;;  %v7783_v55 = vpop.f32.mrb[31].mxu0 }
 0x29a   :  { %8003 = vset.pattern.permute.xlu1 %v9600_v3  ;;  %8004 = vset.pattern.permute.xlu0 %v8531_v0 }
 0x29b   :  { %1294 = vperm.xlu1 %8003, %v839_v43   ;;  %853 = vperm.xlu0 %8004, %v842_v45   ;;  %v1189_v4 = vpop.f32.mrb[32].mxu0 }
 0x29c   :  { %v7794_v5 = vpop.f32.mrb[33].mxu0 }
 0x29d   :  { %v8905_v6 = vpop.f32.mrb[34].mxu0 }
 0x29e   :  { %v7795_v7 = vpop.f32.mrb[35].mxu0 }
 0x29f   :  { %8005 = vset.pattern.permute.xlu1 %v9608_v51  ;;  %8007 = vset.pattern.permute.xlu0 %v9602_v47 }
 0x2a0   :  { %1002 = vperm.xlu1 %8005, %v842_v45   ;;  %1053 = vperm.xlu0 %8007, %v842_v45  }
 0x2a3   :  { %v8909_v8 = vpop.f32.mrb[36].mxu0 }
 0x2a4   :  { %8006 = vset.pattern.permute.xlu1 %v9606_v48  ;;  %8010 = vset.pattern.permute.xlu0 %v9600_v3  ;;  %v7806_v10 = vpop.f32.mrb[37].mxu0  ;;  %v186_v3 = vld [vmem:[#allocation5 + $0x8] sm:$0xff] }
 0x2a5   :  { %904 = vperm.xlu1 %8006, %v842_v45   ;;  %1298 = vperm.xlu0 %8010, %v842_v45   ;;  %v8913_v11 = vpop.f32.mrb[38].mxu0 }
 0x2a6   :  { %v7807_v12 = vpop.f32.mrb[39].mxu0 }
 0x2a9   :  { %8008 = vset.pattern.permute.xlu1 %v9612_v61  ;;  %8013 = vset.pattern.permute.xlu0 %v8531_v0 }
 0x2aa   :  { %1150 = vperm.xlu1 %8008, %v842_v45  }
 0x2ae   :  { %8009 = vset.pattern.permute.xlu1 %v9610_v63 }
 0x2af   :  { %1201 = vperm.xlu1 %8009, %v842_v45  }
 0x2b3   :  { %8011 = vset.pattern.permute.xlu1 %v9604_v13 }
 0x2b4   :  { %1345 = vperm.xlu1 %8011, %v839_v43  }
 0x2b8   :  { %1349 = vperm.xlu1 %8011, %v842_v45   ;;  %v185_v45 = vld [vmem:[#allocation5] sm:$0xff] }
 0x2bc   :  { %8012 = vset.pattern.permute.xlu1 %v8531_v0 }
 0x30b   :  { %v999_v24 = vpop.permute.xlu1 %998  ;;  %v849_v25 = vpop.permute.xlu0 %848 }
 0x30c   :  { %v1005_v26 = vmul.f32 %v999_v24, %v8920_v23  ;;  %v856_v29 = vmul.f32 %v849_v25, %v8920_v23 }
 0x30e   :  { %v1042_v57 = vadd.f32 %v1041_v58, %v1005_v26  ;;  %v893_v59 = vadd.f32 %v892_v52, %v856_v29  ;;  %v8936_v29 = vld [vmem:[#allocation2 + $0x8] sm:$0xff] }
 0x310   :  { %v1050_v44 = vpop.permute.xlu1 %1049  ;;  %v901_v46 = vpop.permute.xlu0 %900 }
 0x311   :  { %v1056_v60 = vmul.f32 %v1050_v44, %v8924_v31  ;;  %v907_v43 = vmul.f32 %v901_v46, %v8924_v31 }
 0x313   :  { %v1058_v55 = vadd.f32 %v1056_v60, %v1042_v57  ;;  %v909_v5 = vadd.f32 %v907_v43, %v893_v59  ;;  %v8939_v59 = vld [vmem:[#allocation2 + $0x18] sm:$0xff] }
 0x315   :  { %v1147_v7 = vpop.permute.xlu1 %1146  ;;  %v1198_v10 = vpop.permute.xlu0 %1197  ;;  %v8928_v12 = vadd.f32 %v909_v5, %v185_v45  ;;  %v8932_v25 = vadd.f32 %v1058_v55, %v185_v45 }
 0x316   :  { %v1153_v44 = vmul.f32 %v1147_v7, %v8920_v23  ;;  %v1204_v13 = vmul.f32 %v1198_v10, %v8924_v31 }
 0x317   :  { %v914_v24 = vsel %vm913_vm4, %v8928_v12, -inf  ;;  %v1062_v26 = vsel %vm913_vm4, %v8932_v25, -inf }
 0x318   :  { %915 = vmax.xlane.f32.xlu0 %v914_v24  ;;  %v1190_v24 = vadd.f32 %v1189_v4, %v1153_v44 }
 0x31a   :  { %v1295_v58 = vpop.permute.xlu1 %1294  ;;  %v854_v52 = vpop.permute.xlu0 %853  ;;  %v1206_v63 = vadd.f32 %v1204_v13, %v1190_v24 }
 0x31b   :  { %v857_v43 = vmul.f32 %v854_v52, %v8936_v29 }
 0x31c   :  { %1063 = vmax.xlane.f32.xlu0 %v1062_v26  ;;  %v1208_v44 = vadd.f32 %v1206_v63, %v185_v45 }
 0x31d   :  { %v896_v7 = vadd.f32 %v8897_v53, %v857_v43 }
 0x31f   :  { %v1003_v46 = vpop.permute.xlu1 %1002  ;;  %v1054_v57 = vpop.permute.xlu0 %1053 }
 0x320   :  { %v1006_v60 = vmul.f32 %v1003_v46, %v8936_v29  ;;  %v1057_v5 = vmul.f32 %v1054_v57, %v8939_v59 }
 0x322   :  { %v1045_v55 = vadd.f32 %v8901_v1, %v1006_v60 }
 0x324   :  { %v1059_v47 = vadd.f32 %v1057_v5, %v1045_v55  ;;  %v905_v26 = vpop.permute.xlu1 %904  ;;  %v1299_v13 = vpop.permute.xlu0 %1298 }
 0x325   :  { %v908_v48 = vmul.f32 %v905_v26, %v8939_v59  ;;  %v1302_v24 = vmul.f32 %v1299_v13, %v8936_v29 }
 0x326   :  { %v1061_v51 = vadd.f32 %v1059_v47, %v186_v3  ;;  %v1210_v47 = vsel %vm913_vm4, %v1208_v44, -inf }
 0x327   :  { %v910_v61 = vadd.f32 %v908_v48, %v896_v7  ;;  %v1301_v48 = vmul.f32 %v1295_v58, %v8920_v23 }
 0x328   :  { %v1065_v46 = vsel %vm913_vm4, %v1061_v51, -inf }
 0x329   :  { %v1151_v52 = vpop.permute.xlu1 %1150  ;;  %1066 = vmax.xlane.f32.xlu0 %v1065_v46  ;;  %v912_v1 = vadd.f32 %v910_v61, %v186_v3  ;;  %v1338_v5 = vadd.f32 %v8909_v8, %v1301_v48  ;;  %v1341_v46 = vadd.f32 %v8913_v11, %v1302_v24 }
 0x32a   :  { %v1154_v57 = vmul.f32 %v1151_v52, %v8936_v29 }
 0x32b   :  { %v917_v4 = vsel %vm913_vm4, %v912_v1, -inf }
 0x32c   :  { %918 = vmax.xlane.f32.xlu1 %v917_v4  ;;  %v1193_v10 = vadd.f32 %v8905_v6, %v1154_v57 }
 0x32e   :  { %v1202_v60 = vpop.permute.xlu1 %1201 }
 0x32f   :  { %v1205_v53 = vmul.f32 %v1202_v60, %v8939_v59 }
 0x330   :  { %1211 = vmax.xlane.f32.xlu1 %v1210_v47 }
 0x331   :  { %v1207_v43 = vadd.f32 %v1205_v53, %v1193_v10 }
 0x333   :  { %v1346_v55 = vpop.permute.xlu1 %1345  ;;  %v1209_v61 = vadd.f32 %v1207_v43, %v186_v3 }
 0x334   :  { %v1352_v63 = vmul.f32 %v1346_v55, %v8924_v31 }
 0x335   :  { %v1213_v26 = vsel %vm913_vm4, %v1209_v61, -inf }
 0x336   :  { %v1354_v6 = vadd.f32 %v1352_v63, %v1338_v5  ;;  %1214 = vmax.xlane.f32.xlu0 %v1213_v26 }
 0x337   :  { %v1350_v7 = vpop.permute.xlu1 %1349 }
 0x338   :  { %v1353_v58 = vmul.f32 %v1350_v7, %v8939_v59  ;;  %v1356_v52 = vadd.f32 %v1354_v6, %v185_v45 }
 0x33a   :  { %v1355_v57 = vadd.f32 %v1353_v58, %v1341_v46  ;;  %v1358_v4 = vsel %vm913_vm4, %v1356_v52, -inf }
 0x33b   :  { %1359 = vmax.xlane.f32.xlu1 %v1358_v4 }
 0x33c   :  { %v1357_v60 = vadd.f32 %v1355_v57, %v186_v3 }
 0x33e   :  { %v1361_v8 = vsel %vm913_vm4, %v1357_v60, -inf }
 0x33f   :  { %1362 = vmax.xlane.f32.xlu0 %v1361_v8 }
 0x3a5   :  { %v916_v10 = vpop.xlane.xlu0 %915 }
 0x3a6   :  { %v920_v53 = vsub.f32 %v8928_v12, %v916_v10 }
 0x3a8   :  { %v922_v47 = vmul.f32 1.442695, %v920_v53 }
 0x3a9   :  { %v1064_v48 = vpop.xlane.xlu0 %1063 }
 0x3aa   :  { %8153 = vpow2.f32 %v922_v47  ;;  %v1068_v13 = vsub.f32 %v8932_v25, %v1064_v48 }
 0x3ac   :  { %v1070_v11 = vmul.f32 1.442695, %v1068_v13 }
 0x3ae   :  { %8155 = vpow2.f32 %v1070_v11 }
 0x3b4   :  { %v8154_v43 = vpop.eup %8153 }
 0x3b5   :  { %v926_v45 = vsel %vm913_vm4, %v8154_v43, 0.0 }
 0x3b6   :  { %927 = vadd.xlane.f32.xlu1 %v926_v45  ;;  %v1067_v55 = vpop.xlane.xlu0 %1066 }
 0x3b7   :  { %v1069_v3 = vsub.f32 %v1061_v51, %v1067_v55 }
 0x3b8   :  { %v8156_v5 = vpop.eup %8155 }
 0x3b9   :  { %v919_v24 = vpop.xlane.xlu1 %918  ;;  %v1074_v63 = vsel %vm913_vm4, %v8156_v5, 0.0  ;;  %v1072_v12 = vmul.f32 1.442695, %v1069_v3 }
 0x3ba   :  { %v921_v26 = vsub.f32 %v912_v1, %v919_v24  ;;  %1075 = vadd.xlane.f32.xlu1 %v1074_v63 }
 0x3bc   :  { %v924_v6 = vmul.f32 1.442695, %v921_v26 }
 0x3bd   :  { %v1212_v7 = vpop.xlane.xlu1 %1211 }
 0x3be   :  { %8157 = vpow2.f32 %v924_v6  ;;  %v1216_v46 = vsub.f32 %v1208_v44, %v1212_v7 }
 0x3bf   :  { %8159 = vpow2.f32 %v1072_v12 }
 0x3c0   :  { %v1218_v25 = vmul.f32 1.442695, %v1216_v46 }
 0x3c2   :  { %8161 = vpow2.f32 %v1218_v25 }
 0x3c3   :  { %v1215_v58 = vpop.xlane.xlu0 %1214 }
 0x3c4   :  { %v1217_v57 = vsub.f32 %v1209_v61, %v1215_v58 }
 0x3c6   :  { %v1220_v4 = vmul.f32 1.442695, %v1217_v57 }
 0x3c8   :  { %v8158_v8 = vpop.eup %8157  ;;  %8163 = vpow2.f32 %v1220_v4  ;;  %v1360_v10 = vpop.xlane.xlu1 %1359 }
 0x3c9   :  { %v1364_v51 = vsub.f32 %v1356_v52, %v1360_v10  ;;  %v929_v53 = vsel %vm913_vm4, %v8158_v8, 0.0  ;;  %v8160_v47 = vpop.eup %8159 }
 0x3ca   :  { %930 = vadd.xlane.f32.xlu0 %v929_v53  ;;  %v1077_v45 = vsel %vm913_vm4, %v8160_v47, 0.0 }
 0x3cb   :  { %v1366_v1 = vmul.f32 1.442695, %v1364_v51 }
 0x3cc   :  { %v8162_v48 = vpop.eup %8161  ;;  %v1363_v13 = vpop.xlane.xlu0 %1362 }
 0x3cd   :  { %8165 = vpow2.f32 %v1366_v1  ;;  %v1365_v11 = vsub.f32 %v1357_v60, %v1363_v13  ;;  %v1222_v44 = vsel %vm913_vm4, %v8162_v48, 0.0 }
 0x3ce   :  { %1223 = vadd.xlane.f32.xlu1 %v1222_v44  ;;  %1078 = vadd.xlane.f32.xlu0 %v1077_v45 }
 0x3cf   :  { %v1368_v61 = vmul.f32 1.442695, %v1365_v11 }
 0x3d1   :  { %8167 = vpow2.f32 %v1368_v61 }
 0x3d2   :  { %v8970_v55 = vpop.eup %8163 }
 0x3d3   :  { %v1225_v52 = vsel %vm913_vm4, %v8970_v55, 0.0 }
 0x3d4   :  { %1226 = vadd.xlane.f32.xlu0 %v1225_v52 }
 0x3d7   :  { %v8974_v3 = vpop.eup %8165 }
 0x3d8   :  { %v1370_v24 = vsel %vm913_vm4, %v8974_v3, 0.0 }
 0x3d9   :  { %1371 = vadd.xlane.f32.xlu1 %v1370_v24 }
 0x3db   :  { %v8978_v60 = vpop.eup %8167 }
 0x3dc   :  { %v1373_v63 = vsel %vm913_vm4, %v8978_v60, 0.0 }
 0x3dd   :  { %1374 = vadd.xlane.f32.xlu0 %v1373_v63 }
 0x443   :  { %v928_v26 = vpop.xlane.xlu1 %927 }
 0x444   :  { %8169 = vrcp.f32 %v928_v26 }
 0x447   :  { %v1076_v12 = vpop.xlane.xlu1 %1075 }
 0x448   :  { %8171 = vrcp.f32 %v1076_v12 }
 0x44e   :  { %v8170_v6 = vpop.eup %8169 }
 0x44f   :  { %v934_v7 = vmul.f32 %v8170_v6, %v8154_v43 }
 0x451   :  { %v981_v46 = vmul.f32 %v934_v7, %v8920_v23  ;;  %v989_v57 = vmul.f32 %v934_v7, %v8924_v31 }
 0x452   :  { %v8172_v25 = vpop.eup %8171 }
 0x453   :  { %v983_v58 = vsel %vm913_vm4, %v981_v46, 0.0  ;;  %v1082_v4 = vmul.f32 %v8172_v25, %v8156_v5  ;;  %v991_v51 = vsel %vm913_vm4, %v989_v57, 0.0 }
 0x454   :  { %984 = vadd.xlane.f32.xlu1 %v983_v58 }
 0x455   :  { %v1129_v53 = vmul.f32 %v1082_v4, %v8920_v23  ;;  %v1137_v11 = vmul.f32 %v1082_v4, %v8924_v31 }
 0x457   :  { %v931_v10 = vpop.xlane.xlu0 %930  ;;  %v1131_v43 = vsel %vm913_vm4, %v1129_v53, 0.0  ;;  %v1139_v44 = vsel %vm913_vm4, %v1137_v11, 0.0 }
 0x458   :  { %8173 = vrcp.f32 %v931_v10  ;;  %992 = vadd.xlane.f32.xlu1 %v991_v51 }
 0x45b   :  { %v1224_v1 = vpop.xlane.xlu1 %1223  ;;  %v1079_v13 = vpop.xlane.xlu0 %1078 }
 0x45c   :  { %8175 = vrcp.f32 %v1224_v1  ;;  %1132 = vadd.xlane.f32.xlu1 %v1131_v43 }
 0x45d   :  { %8177 = vrcp.f32 %v1079_v13 }
 0x460   :  { %1140 = vadd.xlane.f32.xlu1 %v1139_v44 }
 0x461   :  { %v1227_v5 = vpop.xlane.xlu0 %1226 }
 0x462   :  { %v8174_v45 = vpop.eup %8173  ;;  %8179 = vrcp.f32 %v1227_v5 }
 0x463   :  { %v935_v61 = vmul.f32 %v8174_v45, %v8158_v8 }
 0x465   :  { %v936_v52 = vpack.c.bf16 %v935_v61, %v934_v7  ;;  %v982_v24 = vmul.f32 %v935_v61, %v8936_v29  ;;  %v990_v25 = vmul.f32 %v935_v61, %v8939_v59 }
 0x466   :  { %v8176_v63 = vpop.eup %8175  ;;  %v1372_v26 = vpop.xlane.xlu1 %1371 }
 0x467   :  { %v8178_v12 = vpop.eup %8177  ;;  %8181 = vrcp.f32 %v1372_v26  ;;  %7775 = vmatmul.mubr.msk.bf16.vlgmr.msra.gmra.mrb[12].mxu1 %vm913_vm4, %v936_v52  ;;  %v986_v6 = vsel %vm913_vm4, %v982_v24, 0.0  ;;  %v1230_v46 = vmul.f32 %v8176_v63, %v8162_v48  ;;  %v994_v48 = vsel %vm913_vm4, %v990_v25, 0.0  ;;  %v187_v52 = vld [vmem:[%s9589_s3] sm:$0xff]  ;;  %v188_v24 = vld [vmem:[%s9589_s3 + $0x8] sm:$0xff]  ;;  %v1863_v63 = vld [vmem:[#allocation11 + $0x800] sm:$0xff]  ;;  %s8542_s3 = smov [#allocation20]  }
 0x468   :  { %v1083_v58 = vmul.f32 %v8178_v12, %v8160_v47  ;;  %7785 = vmatpush3.bf16.msra.mxu1 %v747_v16  ;;  %987 = vadd.xlane.f32.xlu0 %v986_v6 }
 0x469   :  { %v1277_v8 = vmul.f32 %v1230_v46, %v8920_v23  ;;  %7786 = vmatprep.mubr.msk.bf16.mxu1 %vm8534_vm3, %v8533_v50  ;;  %7796 = vmatprep.subr.bf16.mxu1 %v8533_v50  ;;  %v1285_v47 = vmul.f32 %v1230_v46, %v8924_v31 }
 0x46a   :  { %v1375_v7 = vpop.xlane.xlu0 %1374  ;;  %v1130_v9 = vmul.f32 %v1083_v58, %v8936_v29  ;;  %v1084_v16 = vpack.c.bf16 %v1083_v58, %v1082_v4  ;;  %v1138_v1 = vmul.f32 %v1083_v58, %v8939_v59 }
 0x46b   :  { %8183 = vrcp.f32 %v1375_v7  ;;  %v1279_v57 = vsel %vm913_vm4, %v1277_v8, 0.0  ;;  %v1287_v10 = vsel %vm913_vm4, %v1285_v47, 0.0 }
 0x46c   :  { %1280 = vadd.xlane.f32.xlu1 %v1279_v57  ;;  %995 = vadd.xlane.f32.xlu0 %v994_v48  ;;  %v8180_v14 = vpop.eup %8179  ;;  %v1134_v53 = vsel %vm913_vm4, %v1130_v9, 0.0 }
 0x46d   :  { %v1231_v51 = vmul.f32 %v8180_v14, %v8970_v55  ;;  %v1142_v55 = vsel %vm913_vm4, %v1138_v1, 0.0 }
 0x46f   :  { %7787 = vmatmul.mubr.msk.bf16.vlgmr.msra.gmra.mrb[16].mxu1 %vm913_vm4, %v1084_v16  ;;  %v1278_v27 = vmul.f32 %v1231_v51, %v8936_v29 }
 0x470   :  { %7797 = vmatpush3.bf16.msra.mxu1 %v748_v32  ;;  %1288 = vadd.xlane.f32.xlu1 %v1287_v10  ;;  %v1232_v32 = vpack.c.bf16 %v1231_v51, %v1230_v46 }
 0x471   :  { %v8182_v13 = vpop.eup %8181  ;;  %1135 = vadd.xlane.f32.xlu0 %v1134_v53  ;;  %7798 = vmatprep.mubr.msk.bf16.mxu1 %vm8534_vm3, %v8533_v50 }
 0x472   :  { %7808 = vmatprep.subr.bf16.mxu1 %v8533_v50  ;;  %v1378_v4 = vmul.f32 %v8182_v13, %v8974_v3  ;;  %v1286_v3 = vmul.f32 %v1231_v51, %v8939_v59 }
 0x474   :  { %v1425_v43 = vmul.f32 %v1378_v4, %v8920_v23  ;;  %v1433_v44 = vmul.f32 %v1378_v4, %v8924_v31  ;;  %v1282_v23 = vsel %vm913_vm4, %v1278_v27, 0.0  ;;  %v1290_v31 = vsel %vm913_vm4, %v1286_v3, 0.0  ;;  %v1879_v3 = vld [vmem:[#allocation11 + $0x880] sm:$0xff] }
 0x475   :  { %v8184_v30 = vpop.eup %8183  ;;  %1143 = vadd.xlane.f32.xlu0 %v1142_v55 }
 0x476   :  { %v1427_v11 = vsel %vm913_vm4, %v1425_v43, 0.0  ;;  %v1379_v5 = vmul.f32 %v8184_v30, %v8978_v60  ;;  %v1435_v45 = vsel %vm913_vm4, %v1433_v44, 0.0 }
 0x477   :  { %1428 = vadd.xlane.f32.xlu1 %v1427_v11  ;;  %7799 = vmatmul.mubr.msk.bf16.vlgmr.msra.gmra.mrb[20].mxu1 %vm913_vm4, %v1232_v32  ;;  %v1623_v11 = vld [vmem:[#allocation11 + $0x80] sm:$0xff] }
 0x478   :  { %7809 = vmatpush3.bf16.msra.mxu1 %v749_v39  ;;  %7810 = vmatprep.mubr.msk.bf16.mxu1 %vm8534_vm3, %v8533_v50  ;;  %v1426_v61 = vmul.f32 %v1379_v5, %v8936_v29  ;;  %v1380_v60 = vpack.c.bf16 %v1379_v5, %v1378_v4  ;;  %v1434_v33 = vmul.f32 %v1379_v5, %v8939_v59  ;;  %v1474_v29 = vsel %vm1466_vm5, %v8828_v15, 0  ;;  %v1871_v15 = vld [vmem:[#allocation11 + $0x840] sm:$0xff] }
 0x479   :  { %1283 = vadd.xlane.f32.xlu0 %v1282_v23  ;;  %7132 = vmatprep.subr.msk.bf16.mxu1 %vm1466_vm5, %v8804_v49  ;;  %v1468_v59 = vsel %vm1466_vm5, %v8796_v37, 0  ;;  %v9053_v49 = vld [vmem:[#allocation11] sm:$0xff]  ;;  %v7391_v12 = vcombine.high %v1863_v63, %v1871_v15  ;;  %v9614_v37 = vmov 4  }
 0x47a   :  { %v1430_v28 = vsel %vm913_vm4, %v1426_v61, 0.0  ;;  %v1438_v39 = vsel %vm913_vm4, %v1434_v33, 0.0  ;;  %1480 = vmatpush1.bf16.msra.mxu0 %v1468_v59  ;;  %v7135_v26 = vcombine.high %v9053_v49, %v1615_v36  ;;  %v1631_v23 = vld [vmem:[#allocation11 + $0xc0] sm:$0xff] }
 0x47b   :  { %1436 = vadd.xlane.f32.xlu1 %v1435_v45  ;;  %4812 = vmatprep.subr.bf16.mxu0 %v7391_v12  ;;  %v1887_v45 = vld [vmem:[#allocation11 + $0x8c0] sm:$0xff] }
 0x47c   :  { %v1647_v12 = vld [vmem:[#allocation11 + $0x140] sm:$0xff] }
 0x47d   :  { %1291 = vadd.xlane.f32.xlu0 %v1290_v31 }
 0x47f   :  { %7811 = vmatmul.mubr.msk.bf16.vlgmr.msra.gmra.mrb[24].mxu1 %vm913_vm4, %v1380_v60 }
 0x480   :  { %1554 = vmatprep.mubr.bf16.mxu1 %v8531_v0  ;;  %1523 = vmatpush1.bf16.msra.mxu1 %v1474_v29  ;;  %v7390_v29 = vcombine.low %v1863_v63, %v1871_v15  ;;  %v1663_v63 = vld [vmem:[#allocation11 + $0x1c0] sm:$0xff] }
 0x481   :  { %1431 = vadd.xlane.f32.xlu0 %v1430_v28  ;;  %4769 = vmatprep.subr.bf16.mxu1 %v7135_v26  ;;  %v1639_v26 = vld [vmem:[#allocation11 + $0x100] sm:$0xff] }
 0x482   :  { %v1911_v15 = vld [vmem:[#allocation11 + $0x980] sm:$0xff] }
 0x485   :  { %1439 = vadd.xlane.f32.xlu0 %v1438_v39  ;;  %v7134_v39 = vcombine.low %v9053_v49, %v1615_v36  ;;  %v1655_v36 = vld [vmem:[#allocation11 + $0x180] sm:$0xff] }
 0x48c   :  { %1575 = vperm.xlu1 %8012, %v187_v52   ;;  %v7151_v52 = vcombine.high %v1623_v11, %v1631_v23 }
 0x49b   :  { %1580 = vperm.xlu0 %8013, %v188_v24   ;;  %v7407_v24 = vcombine.high %v1879_v3, %v1887_v45 }
 0x49f   :  { %8017 = vset.pattern.permute.xlu0 %v9614_v37 }
 0x4e1   :  { %v985_v6 = vpop.xlane.xlu1 %984 }
 0x4e5   :  { %v993_v46 = vpop.xlane.xlu1 %992 }
 0x4e6   :  { %v1442_v51 = vsel %vm1441_vm6, %v985_v6, %v993_v46  ;;  %v1895_v6 = vld [vmem:[#allocation11 + $0x900] sm:$0xff] }
 0x4e7   :  { %v1903_v46 = vld [vmem:[#allocation11 + $0x940] sm:$0xff] }
 0x4e8   :  { %v7423_v49 = vcombine.high %v1895_v6, %v1903_v46 }
 0x4e9   :  { %v1133_v58 = vpop.xlane.xlu1 %1132 }
 0x4ea   :  { %v1445_v1 = vsel %vm1444_vm7, %v1442_v51, %v1133_v58  ;;  %v7406_v58 = vcombine.low %v1879_v3, %v1887_v45  ;;  %v1935_v51 = vld [vmem:[#allocation11 + $0xa40] sm:$0xff] }
 0x4eb   :  { %v1711_v3 = vld [vmem:[#allocation11 + $0x340] sm:$0xff] }
 0x4ec   :  { %v1959_v45 = vld [vmem:[#allocation11 + $0xb00] sm:$0xff] }
 0x4ed   :  { %v1141_v7 = vpop.xlane.xlu1 %1140 }
 0x4ee   :  { %v1448_v55 = vsel %vm1447_vm8, %v1445_v1, %v1141_v7  ;;  %v1919_v7 = vld [vmem:[#allocation11 + $0x9c0] sm:$0xff] }
 0x4ef   :  { %v7438_v1 = vcombine.low %v1911_v15, %v1919_v7 }
 0x4f5   :  { %v988_v25 = vpop.xlane.xlu0 %987 }
 0x4f9   :  { %v996_v8 = vpop.xlane.xlu0 %995  ;;  %v1281_v48 = vpop.xlane.xlu1 %1280 }
 0x4fa   :  { %v1443_v53 = vsel %vm1441_vm6, %v988_v25, %v996_v8  ;;  %v1451_v27 = vsel %vm1450_vm9, %v1448_v55, %v1281_v48  ;;  %v7150_v25 = vcombine.low %v1623_v11, %v1631_v23  ;;  %v7167_v8 = vcombine.high %v1639_v26, %v1647_v12  ;;  %v1687_v55 = vld [vmem:[#allocation11 + $0x280] sm:$0xff] }
 0x4fb   :  { %v7422_v48 = vcombine.low %v1895_v6, %v1903_v46  ;;  %v1703_v23 = vld [vmem:[#allocation11 + $0x300] sm:$0xff] }
 0x4fc   :  { %v1735_v46 = vld [vmem:[#allocation11 + $0x400] sm:$0xff] }
 0x4fd   :  { %v1289_v9 = vpop.xlane.xlu1 %1288 }
 0x4fe   :  { %v1136_v57 = vpop.xlane.xlu0 %1135  ;;  %v1453_v44 = vsel %vm330_vm2, %v1451_v27, %v1289_v9  ;;  %v7439_v9 = vcombine.high %v1911_v15, %v1919_v7  ;;  %v1943_v27 = vld [vmem:[#allocation11 + $0xa80] sm:$0xff] }
 0x4ff   :  { %v1446_v13 = vsel %vm1444_vm7, %v1443_v53, %v1136_v57  ;;  %v7166_v57 = vcombine.low %v1639_v26, %v1647_v12  ;;  %v7182_v53 = vcombine.low %v1655_v36, %v1663_v63  ;;  %v1751_v7 = vld [vmem:[#allocation11 + $0x480] sm:$0xff] }
 0x502   :  { %v1144_v47 = vpop.xlane.xlu0 %1143 }
 0x503   :  { %v1449_v43 = vsel %vm1447_vm8, %v1446_v13, %v1144_v47  ;;  %v7183_v47 = vcombine.high %v1655_v36, %v1663_v63 }
 0x504   :  { %v1429_v16 = vpop.xlane.xlu1 %1428 }
 0x505   :  { %v1456_v31 = vsel %vm1455_vm10, %v1453_v44, %v1429_v16  ;;  %v1679_v16 = vld [vmem:[#allocation11 + $0x240] sm:$0xff] }
 0x506   :  { %v1284_v14 = vpop.xlane.xlu0 %1283 }
 0x507   :  { %v1452_v30 = vsel %vm1450_vm9, %v1449_v43, %v1284_v14  ;;  %v1671_v14 = vld [vmem:[#allocation11 + $0x200] sm:$0xff] }
 0x508   :  { %v1437_v32 = vpop.xlane.xlu1 %1436  ;;  %v7199_v13 = vcombine.high %v1671_v14, %v1679_v16  ;;  %v1695_v43 = vld [vmem:[#allocation11 + $0x2c0] sm:$0xff] }
 0x509   :  { %v1459_v28 = vsel %vm1458_vm11, %v1456_v31, %v1437_v32  ;;  %v7198_v32 = vcombine.low %v1671_v14, %v1679_v16  ;;  %v7215_v44 = vcombine.high %v1687_v55, %v1695_v43  ;;  %v1967_v31 = vld [vmem:[#allocation11 + $0xb40] sm:$0xff] }
 0x50a   :  { %v1292_v10 = vpop.xlane.xlu0 %1291  ;;  %v7486_v26 = vcombine.low %v1959_v45, %v1967_v31 }
 0x50b   :  { %v1454_v5 = vsel %vm330_vm2, %v1452_v30, %v1292_v10  ;;  %v1927_v10 = vld [vmem:[#allocation11 + $0xa00] sm:$0xff] }
 0x50c   :  { %v1951_v30 = vld [vmem:[#allocation11 + $0xac0] sm:$0xff]  ;;  %v7454_v11 = vcombine.low %v1927_v10, %v1935_v51 }
 0x50e   :  { %v1432_v4 = vpop.xlane.xlu0 %1431 }
 0x50f   :  { %v1457_v61 = vsel %vm1455_vm10, %v1454_v5, %v1432_v4  ;;  %v7455_v4 = vcombine.high %v1927_v10, %v1935_v51  ;;  %v7471_v5 = vcombine.high %v1943_v27, %v1951_v30  ;;  %v1767_v51 = vld [vmem:[#allocation11 + $0x500] sm:$0xff] }
 0x512   :  { %v1440_v60 = vpop.xlane.xlu0 %1439 }
 0x513   :  { %v1460_v33 = vsel %vm1458_vm11, %v1457_v61, %v1440_v60  ;;  %v7214_v61 = vcombine.low %v1687_v55, %v1695_v43  ;;  %v7470_v60 = vcombine.low %v1943_v27, %v1951_v30  ;;  %v1783_v30 = vld [vmem:[#allocation11 + $0x580] sm:$0xff] }
 0x514   :  { %v1461_v59 = vpack.c.bf16 %v1460_v33, %v1459_v28  ;;  %v7231_v28 = vcombine.high %v1703_v23, %v1711_v3  ;;  %v7487_v33 = vcombine.high %v1959_v45, %v1967_v31 }
 0x516   :  { %7131 = vmatmul.mubr.msk.bf16.vlgmr.msra.gmra.mrb[40].mxu0 %vm1462_vm12, %v1461_v59  ;;  %7133 = vmatmul.mubr.msk.bf16.vlgmr.msra.gmra.mrb[28].mxu1 %vm1462_vm12, %v1461_v59  ;;  %v1975_v59 = vld [vmem:[#allocation11 + $0xb80] sm:$0xff] }
 0x517   :  { %4770 = vmatpush1.bf16.msra.mxu1 %v7134_v39  ;;  %4813 = vmatpush1.bf16.msra.mxu0 %v7390_v29  ;;  %v1719_v39 = vld [vmem:[#allocation11 + $0x380] sm:$0xff] }
 0x518   :  { %4771 = vmatprep.subr.bf16.mxu1 %v7151_v52  ;;  %4814 = vmatprep.subr.bf16.mxu0 %v7407_v24  ;;  %v1727_v29 = vld [vmem:[#allocation11 + $0x3c0] sm:$0xff]  ;;  %v7230_v24 = vcombine.low %v1703_v23, %v1711_v3 }
 0x519   :  { %v1983_v52 = vld [vmem:[#allocation11 + $0xbc0] sm:$0xff]  ;;  %v7247_v12 = vcombine.high %v1719_v39, %v1727_v29 }
 0x51a   :  { %v7503_v6 = vcombine.high %v1975_v59, %v1983_v52  ;;  %v7502_v36 = vcombine.low %v1975_v59, %v1983_v52  ;;  %v2063_v59 = vld [vmem:[#allocation11 + $0xe40] sm:$0xff] }
 0x51b   :  { %4772 = vmatpush1.bf16.msra.mxu1 %v7150_v25  ;;  %4815 = vmatpush1.bf16.msra.mxu0 %v7406_v58  ;;  %v1743_v25 = vld [vmem:[#allocation11 + $0x440] sm:$0xff] }
 0x51c   :  { %4773 = vmatprep.subr.bf16.mxu1 %v7167_v8  ;;  %4816 = vmatprep.subr.bf16.mxu0 %v7423_v49  ;;  %v1991_v58 = vld [vmem:[#allocation11 + $0xc00] sm:$0xff]  ;;  %v7246_v49 = vcombine.low %v1719_v39, %v1727_v29  ;;  %v7263_v63 = vcombine.high %v1735_v46, %v1743_v25 }
 0x51d   :  { %v1999_v8 = vld [vmem:[#allocation11 + $0xc40] sm:$0xff] }
 0x51e   :  { %v7519_v15 = vcombine.high %v1991_v58, %v1999_v8  ;;  %v7518_v14 = vcombine.low %v1991_v58, %v1999_v8  ;;  %v1807_v39 = vld [vmem:[#allocation11 + $0x640] sm:$0xff] }
 0x51f   :  { %4774 = vmatpush1.bf16.msra.mxu1 %v7166_v57  ;;  %4817 = vmatpush1.bf16.msra.mxu0 %v7422_v48  ;;  %v1759_v57 = vld [vmem:[#allocation11 + $0x4c0] sm:$0xff] }
 0x520   :  { %4775 = vmatprep.subr.bf16.mxu1 %v7183_v47  ;;  %4818 = vmatprep.subr.bf16.mxu0 %v7439_v9  ;;  %v2007_v48 = vld [vmem:[#allocation11 + $0xc80] sm:$0xff]  ;;  %v7262_v9 = vcombine.low %v1735_v46, %v1743_v25  ;;  %v7279_v16 = vcombine.high %v1751_v7, %v1759_v57 }
 0x521   :  { %v2015_v47 = vld [vmem:[#allocation11 + $0xcc0] sm:$0xff] }
 0x522   :  { %v7535_v10 = vcombine.high %v2007_v48, %v2015_v47  ;;  %v7534_v55 = vcombine.low %v2007_v48, %v2015_v47  ;;  %v2055_v29 = vld [vmem:[#allocation11 + $0xe00] sm:$0xff] }
 0x523   :  { %4776 = vmatpush1.bf16.msra.mxu1 %v7182_v53  ;;  %4819 = vmatpush1.bf16.msra.mxu0 %v7438_v1  ;;  %v1775_v53 = vld [vmem:[#allocation11 + $0x540] sm:$0xff]  ;;  %v7582_v58 = vcombine.low %v2055_v29, %v2063_v59 }
 0x524   :  { %4777 = vmatprep.subr.bf16.mxu1 %v7199_v13  ;;  %4820 = vmatprep.subr.bf16.mxu0 %v7455_v4  ;;  %v2023_v1 = vld [vmem:[#allocation11 + $0xd00] sm:$0xff]  ;;  %v7278_v4 = vcombine.low %v1751_v7, %v1759_v57  ;;  %v7295_v43 = vcombine.high %v1767_v51, %v1775_v53  ;;  %v7294_v3 = vcombine.low %v1767_v51, %v1775_v53 }
 0x525   :  { %v2031_v13 = vld [vmem:[#allocation11 + $0xd40] sm:$0xff] }
 0x526   :  { %v7551_v27 = vcombine.high %v2023_v1, %v2031_v13  ;;  %v7550_v45 = vcombine.low %v2023_v1, %v2031_v13  ;;  %v2079_v53 = vld [vmem:[#allocation11 + $0xec0] sm:$0xff] }
 0x527   :  { %4778 = vmatpush1.bf16.msra.mxu1 %v7198_v32  ;;  %4821 = vmatpush1.bf16.msra.mxu0 %v7454_v11  ;;  %v1791_v32 = vld [vmem:[#allocation11 + $0x5c0] sm:$0xff] }
 0x528   :  { %4779 = vmatprep.subr.bf16.mxu1 %v7215_v44  ;;  %4822 = vmatprep.subr.bf16.mxu0 %v7471_v5  ;;  %v2039_v11 = vld [vmem:[#allocation11 + $0xd80] sm:$0xff]  ;;  %v7310_v52 = vcombine.low %v1783_v30, %v1791_v32 }
 0x529   :  { %v2047_v44 = vld [vmem:[#allocation11 + $0xdc0] sm:$0xff] }
 0x52b   :  { %4780 = vmatpush1.bf16.msra.mxu1 %v7214_v61  ;;  %4823 = vmatpush1.bf16.msra.mxu0 %v7470_v60  ;;  %v7311_v61 = vcombine.high %v1783_v30, %v1791_v32  ;;  %v7567_v60 = vcombine.high %v2039_v11, %v2047_v44  ;;  %v2095_v32 = vld [vmem:[#allocation11 + $0xf40] sm:$0xff] }
 0x52c   :  { %4781 = vmatprep.subr.bf16.mxu1 %v7231_v28  ;;  %4824 = vmatprep.subr.bf16.mxu0 %v7487_v33  ;;  %v1799_v28 = vld [vmem:[#allocation11 + $0x600] sm:$0xff] }
 0x52d   :  { %v7326_v25 = vcombine.low %v1799_v28, %v1807_v39 }
 0x52f   :  { %4782 = vmatpush1.bf16.msra.mxu1 %v7230_v24  ;;  %4825 = vmatpush1.bf16.msra.mxu0 %v7486_v26  ;;  %v7566_v24 = vcombine.low %v2039_v11, %v2047_v44  ;;  %v7327_v26 = vcombine.high %v1799_v28, %v1807_v39  ;;  %v2111_v28 = vld [vmem:[#allocation11 + $0xfc0] sm:$0xff] }
 0x530   :  { %4783 = vmatprep.subr.bf16.mxu1 %v7247_v12  ;;  %4826 = vmatprep.subr.bf16.mxu0 %v7503_v6  ;;  %v7583_v12 = vcombine.high %v2055_v29, %v2063_v59  ;;  %v9090_v59 = vld [vmem:[#allocation11 + $0x8] sm:$0xff] }
 0x533   :  { %4784 = vmatpush1.bf16.msra.mxu1 %v7246_v49  ;;  %4827 = vmatpush1.bf16.msra.mxu0 %v7502_v36 }
 0x534   :  { %4785 = vmatprep.subr.bf16.mxu1 %v7263_v63  ;;  %4828 = vmatprep.subr.bf16.mxu0 %v7519_v15 }
 0x537   :  { %4786 = vmatpush1.bf16.msra.mxu1 %v7262_v9  ;;  %4829 = vmatpush1.bf16.msra.mxu0 %v7518_v14  ;;  %v1815_v14 = vld [vmem:[#allocation11 + $0x680] sm:$0xff] }
 0x538   :  { %4787 = vmatprep.subr.bf16.mxu1 %v7279_v16  ;;  %4830 = vmatprep.subr.bf16.mxu0 %v7535_v10  ;;  %v1823_v16 = vld [vmem:[#allocation11 + $0x6c0] sm:$0xff] }
 0x539   :  { %v2071_v10 = vld [vmem:[#allocation11 + $0xe80] sm:$0xff]  ;;  %v7343_v51 = vcombine.high %v1815_v14, %v1823_v16  ;;  %v7342_v1 = vcombine.low %v1815_v14, %v1823_v16  ;;  %v9110_v14 = vpop.permute.xlu1 %1575  ;;  %v9112_v16 = vpop.permute.xlu0 %1580 }
 0x53a   :  { %v9074_v5 = vpop.f32.mrb[12].mxu1  ;;  %v7598_v13 = vcombine.low %v2071_v10, %v2079_v53 }
 0x53b   :  { %v7776_v23 = vpop.f32.mrb[13].mxu1  ;;  %4788 = vmatpush1.bf16.msra.mxu1 %v7278_v4  ;;  %4831 = vmatpush1.bf16.msra.mxu0 %v7534_v55  ;;  %v7599_v4 = vcombine.high %v2071_v10, %v2079_v53  ;;  %v1831_v55 = vld [vmem:[#allocation11 + $0x700] sm:$0xff] }
 0x53c   :  { %v9076_v31 = vpop.f32.mrb[14].mxu1  ;;  %4789 = vmatprep.subr.bf16.mxu1 %v7295_v43  ;;  %4832 = vmatprep.subr.bf16.mxu0 %v7551_v27  ;;  %v1839_v43 = vld [vmem:[#allocation11 + $0x740] sm:$0xff] }
 0x53d   :  { %v7777_v33 = vpop.f32.mrb[15].mxu1  ;;  %v2087_v27 = vld [vmem:[#allocation11 + $0xf00] sm:$0xff]  ;;  %v7359_v30 = vcombine.high %v1831_v55, %v1839_v43  ;;  %v7358_v11 = vcombine.low %v1831_v55, %v1839_v43 }
 0x53e   :  { %v7614_v44 = vcombine.low %v2087_v27, %v2095_v32  ;;  %v7615_v23 = vcombine.high %v2087_v27, %v2095_v32 }
 0x53f   :  { %4790 = vmatpush1.bf16.msra.mxu1 %v7294_v3  ;;  %4833 = vmatpush1.bf16.msra.mxu0 %v7550_v45  ;;  %v1847_v3 = vld [vmem:[#allocation11 + $0x780] sm:$0xff] }
 0x540   :  { %4791 = vmatprep.subr.bf16.mxu1 %v7311_v61  ;;  %4834 = vmatprep.subr.bf16.mxu0 %v7567_v60  ;;  %v1855_v45 = vld [vmem:[#allocation11 + $0x7c0] sm:$0xff] }
 0x541   :  { %v2103_v61 = vld [vmem:[#allocation11 + $0xf80] sm:$0xff]  ;;  %v7375_v60 = vcombine.high %v1847_v3, %v1855_v45  ;;  %v7374_v33 = vcombine.low %v1847_v3, %v1855_v45 }
 0x542   :  { %v9078_v6 = vpop.f32.mrb[16].mxu1  ;;  %v7630_v39 = vcombine.low %v2103_v61, %v2111_v28  ;;  %v7631_v29 = vcombine.high %v2103_v61, %v2111_v28 }
 0x543   :  { %v7788_v46 = vpop.f32.mrb[17].mxu1  ;;  %4792 = vmatpush1.bf16.msra.mxu1 %v7310_v52  ;;  %4835 = vmatpush1.bf16.msra.mxu0 %v7566_v24  ;;  %v9092_v52 = vld [vmem:[#allocation11 + $0x48] sm:$0xff]  ;;  %v9094_v24 = vld [vmem:[#allocation11 + $0x10] sm:$0xff] }
 0x544   :  { %v9080_v8 = vpop.f32.mrb[18].mxu1  ;;  %4793 = vmatprep.subr.bf16.mxu1 %v7327_v26  ;;  %4836 = vmatprep.subr.bf16.mxu0 %v7583_v12  ;;  %v7137_v26 = vcombine.high %v9090_v59, %v9092_v52  ;;  %v9098_v12 = vld [vmem:[#allocation11 + $0x50] sm:$0xff]  ;;  %v7136_v46 = vcombine.low %v9090_v59, %v9092_v52 }
 0x545   :  { %v7789_v49 = vpop.f32.mrb[19].mxu1 }
 0x546   :  { %v8225_v49 = vld [vmem:[#allocation8 + $0x8] sm:$0xff] }
 0x547   :  { %4794 = vmatpush1.bf16.msra.mxu1 %v7326_v25  ;;  %4837 = vmatpush1.bf16.msra.mxu0 %v7582_v58  ;;  %v7138_v25 = vcombine.low %v9094_v24, %v9098_v12  ;;  %v7139_v58 = vcombine.high %v9094_v24, %v9098_v12 }
 0x548   :  { %4795 = vmatprep.subr.bf16.mxu1 %v7343_v51  ;;  %4838 = vmatprep.subr.bf16.mxu0 %v7599_v4 }
 0x54a   :  { %v9082_v36 = vpop.f32.mrb[20].mxu1 }
 0x54b   :  { %v7800_v63 = vpop.f32.mrb[21].mxu1  ;;  %4796 = vmatpush1.bf16.msra.mxu1 %v7342_v1  ;;  %4839 = vmatpush1.bf16.msra.mxu0 %v7598_v13 }
 0x54c   :  { %v9084_v15 = vpop.f32.mrb[22].mxu1  ;;  %4797 = vmatprep.subr.bf16.mxu1 %v7359_v30  ;;  %4840 = vmatprep.subr.bf16.mxu0 %v7615_v23  ;;  %v256_v63 = vrot.slane %v8225_v49, %v8830_v18 }
 0x54d   :  { %v7801_v7 = vpop.f32.mrb[23].mxu1 }
 0x54e   :  { %v260_v7 = vrot.slane %v8225_v49, %v8832_v21  ;;  %v679_v10 = vadd.f32 %v8863_v17, %v256_v63  ;;  %v683_v53 = vadd.f32 %v8868_v20, %v256_v63 }
 0x54f   :  { %4798 = vmatpush1.bf16.msra.mxu1 %v7358_v11  ;;  %4841 = vmatpush1.bf16.msra.mxu0 %v7614_v44 }
 0x550   :  { %4799 = vmatprep.subr.bf16.mxu1 %v7375_v60  ;;  %4842 = vmatprep.subr.bf16.mxu0 %v7631_v29  ;;  %v681_v51 = vadd.f32 %v8865_v19, %v260_v7  ;;  %v685_v1 = vadd.f32 %v8870_v22, %v260_v7 }
 0x552   :  { %v9086_v57 = vpop.f32.mrb[24].mxu1 }
 0x553   :  { %v7812_v48 = vpop.f32.mrb[25].mxu1  ;;  %4800 = vmatpush1.bf16.msra.mxu1 %v7374_v33  ;;  %4843 = vmatpush1.bf16.msra.mxu0 %v7630_v39 }
 0x554   :  { %v9088_v47 = vpop.f32.mrb[26].mxu1  ;;  %4855 = vmatprep.subr.bf16.mxu1 %v7137_v26  ;;  %4941 = vmatprep.subr.bf16.mxu0 %v7139_v58  ;;  %v264_v48 = vrot.slane %v8225_v49, %v8838_v38 }
 0x555   :  { %v7813_v9 = vpop.f32.mrb[27].mxu1 }
 0x556   :  { %v268_v9 = vrot.slane %v8225_v49, %v8840_v41  ;;  %v722_v55 = vadd.f32 %v8883_v34, %v264_v48  ;;  %v726_v17 = vadd.f32 %v8891_v40, %v264_v48 }
 0x558   :  { %v724_v43 = vadd.f32 %v8887_v35, %v268_v9  ;;  %v728_v19 = vadd.f32 %v8893_v42, %v268_v9 }
 0x5e9   :  { %v1513_v13 = vpop.f32.mrb[40].mxu0  ;;  %v1556_v4 = vpop.f32.mrb[28].mxu1 }
 0x5ea   :  { %v1565_v27 = vadd.f32 %v1513_v13, %v9074_v5  ;;  %v1567_v30 = vadd.f32 %v1556_v4, %v9082_v36  ;;  %v1515_v32 = vpop.f32.mrb[41].mxu0  ;;  %v1558_v11 = vpop.f32.mrb[29].mxu1 }
 0x5eb   :  { %v1566_v20 = vadd.f32 %v1515_v32, %v9078_v6  ;;  %v1568_v22 = vadd.f32 %v1558_v11, %v9086_v57  ;;  %v1517_v44 = vpop.f32.mrb[42].mxu0  ;;  %v1560_v23 = vpop.f32.mrb[30].mxu1  ;;  %v1633_v32 = vld [vmem:[#allocation11 + $0xd0] sm:$0xff]  ;;  %v1640_v11 = vld [vmem:[#allocation11 + $0x108] sm:$0xff] }
 0x5ec   :  { %v1583_v34 = vmul.f32 %v9110_v14, %v1565_v27  ;;  %v1585_v35 = vmul.f32 %v9110_v14, %v1567_v30  ;;  %v1569_v5 = vadd.f32 %v1517_v44, %v9076_v31  ;;  %v1571_v36 = vadd.f32 %v1560_v23, %v9084_v15  ;;  %v1519_v3 = vpop.f32.mrb[43].mxu0  ;;  %v1562_v45 = vpop.f32.mrb[31].mxu1  ;;  %v1625_v30 = vld [vmem:[#allocation11 + $0x90] sm:$0xff] }
 0x5ed   :  { %v1584_v40 = vmul.f32 %v9110_v14, %v1566_v20  ;;  %v1586_v42 = vmul.f32 %v9110_v14, %v1568_v22  ;;  %v1570_v6 = vadd.f32 %v1519_v3, %v9080_v8  ;;  %v1572_v57 = vadd.f32 %v1562_v45, %v9088_v47  ;;  %v1648_v20 = vld [vmem:[#allocation11 + $0x148] sm:$0xff]  ;;  %v1641_v22 = vld [vmem:[#allocation11 + $0x110] sm:$0xff] }
 0x5ee   :  { %v1591_v61 = vadd.f32 %v1583_v34, %v679_v10  ;;  %v1593_v60 = vadd.f32 %v1585_v35, %v722_v55  ;;  %v1587_v28 = vmul.f32 %v9112_v16, %v1569_v5  ;;  %v1589_v33 = vmul.f32 %v9112_v16, %v1571_v36  ;;  %v1624_v55 = vld [vmem:[#allocation11 + $0x88] sm:$0xff]  ;;  %v1649_v44 = vld [vmem:[#allocation11 + $0x150] sm:$0xff] }
 0x5ef   :  { %v1592_v39 = vadd.f32 %v1584_v40, %v681_v51  ;;  %v1594_v31 = vadd.f32 %v1586_v42, %v724_v43  ;;  %v1588_v15 = vmul.f32 %v9112_v16, %v1570_v6  ;;  %v1590_v29 = vmul.f32 %v9112_v16, %v1572_v57  ;;  %v1632_v43 = vld [vmem:[#allocation11 + $0xc8] sm:$0xff]  ;;  %v1657_v45 = vld [vmem:[#allocation11 + $0x190] sm:$0xff] }
 0x5f0   :  { %v1595_v26 = vadd.f32 %v1587_v28, %v683_v53  ;;  %v1597_v58 = vadd.f32 %v1589_v33, %v726_v17  ;;  %v1599_v7 = vmax.f32 %v1591_v61, 0.0  ;;  %v1601_v8 = vmax.f32 %v1593_v60, 0.0  ;;  %v1656_v36 = vld [vmem:[#allocation11 + $0x188] sm:$0xff]  ;;  %v1665_v40 = vld [vmem:[#allocation11 + $0x1d0] sm:$0xff] }
 0x5f1   :  { %v1596_v49 = vadd.f32 %v1588_v15, %v685_v1  ;;  %v1598_v63 = vadd.f32 %v1590_v29, %v728_v19  ;;  %v1600_v9 = vmax.f32 %v1592_v39, 0.0  ;;  %v1602_v10 = vmax.f32 %v1594_v31, 0.0  ;;  %v1664_v3 = vld [vmem:[#allocation11 + $0x1c8] sm:$0xff]  ;;  %v1673_v42 = vld [vmem:[#allocation11 + $0x210] sm:$0xff] }
 0x5f2   :  { %v1603_v48 = vmax.f32 %v1595_v26, 0.0  ;;  %v1605_v47 = vmax.f32 %v1597_v58, 0.0  ;;  %v7153_v17 = vcombine.high %v1624_v55, %v1632_v43  ;;  %v7155_v19 = vcombine.high %v1625_v30, %v1633_v32  ;;  %v1681_v6 = vld [vmem:[#allocation11 + $0x250] sm:$0xff]  ;;  %v1688_v33 = vld [vmem:[#allocation11 + $0x288] sm:$0xff] }
 0x5f3   :  { %v1604_v13 = vmax.f32 %v1596_v49, 0.0  ;;  %v1606_v4 = vmax.f32 %v1598_v63, 0.0  ;;  %v7152_v23 = vcombine.low %v1624_v55, %v1632_v43  ;;  %v7154_v34 = vcombine.low %v1625_v30, %v1633_v32  ;;  %v1696_v39 = vld [vmem:[#allocation11 + $0x2c8] sm:$0xff]  ;;  %v1689_v31 = vld [vmem:[#allocation11 + $0x290] sm:$0xff] }
 0x5f4   :  { %v9138_v27 = vpack.c.bf16 %v1603_v48, %v1599_v7  ;;  %v9140_v51 = vpack.c.bf16 %v1605_v47, %v1601_v8  ;;  %v7169_v35 = vcombine.high %v1640_v11, %v1648_v20  ;;  %v7171_v5 = vcombine.high %v1641_v22, %v1649_v44  ;;  %v1697_v15 = vld [vmem:[#allocation11 + $0x2d0] sm:$0xff]  ;;  %v1704_v63 = vld [vmem:[#allocation11 + $0x308] sm:$0xff] }
 0x5f5   :  { %v9142_v53 = vpack.c.bf16 %v1604_v13, %v1600_v9  ;;  %v9144_v1 = vpack.c.bf16 %v1606_v4, %v1602_v10  ;;  %v7168_v59 = vcombine.low %v1640_v11, %v1648_v20  ;;  %v7170_v52 = vcombine.low %v1641_v22, %v1649_v44  ;;  %v1712_v7 = vld [vmem:[#allocation11 + $0x348] sm:$0xff]  ;;  %v1705_v8 = vld [vmem:[#allocation11 + $0x310] sm:$0xff] }
 0x5f6   :  { %v7185_v24 = vcombine.high %v1656_v36, %v1664_v3  ;;  %v7187_v12 = vcombine.high %v1657_v45, %v1665_v40  ;;  %v7184_v57 = vcombine.low %v1656_v36, %v1664_v3  ;;  %v7186_v61 = vcombine.low %v1657_v45, %v1665_v40  ;;  %v1713_v48 = vld [vmem:[#allocation11 + $0x350] sm:$0xff]  ;;  %v1720_v4 = vld [vmem:[#allocation11 + $0x388] sm:$0xff] }
 0x5f7   :  { %4801 = vmatprep.mubr.bf16.mxu1 %v9142_v53  ;;  %4844 = vmatprep.mubr.bf16.mxu0 %v9144_v1  ;;  %v7203_v28 = vcombine.high %v1673_v42, %v1681_v6  ;;  %v7202_v26 = vcombine.low %v1673_v42, %v1681_v6  ;;  %v7217_v58 = vcombine.high %v1688_v33, %v1696_v39  ;;  %v1728_v55 = vld [vmem:[#allocation11 + $0x3c8] sm:$0xff]  ;;  %v1721_v43 = vld [vmem:[#allocation11 + $0x390] sm:$0xff] }
 0x5f8   :  { %4802 = vmatmul.mubr.bf16.vlgmr.msra.gmra.mrb[32].mxu1 %v9138_v27  ;;  %4845 = vmatmul.mubr.bf16.vlgmr.msra.gmra.mrb[44].mxu0 %v9140_v51  ;;  %v7219_v49 = vcombine.high %v1689_v31, %v1697_v15  ;;  %v7216_v47 = vcombine.low %v1688_v33, %v1696_v39  ;;  %v7218_v9 = vcombine.low %v1689_v31, %v1697_v15  ;;  %v1729_v30 = vld [vmem:[#allocation11 + $0x3d0] sm:$0xff]  ;;  %v1736_v20 = vld [vmem:[#allocation11 + $0x408] sm:$0xff] }
 0x5f9   :  { %4856 = vmatpush1.bf16.msra.mxu1 %v7136_v46  ;;  %4942 = vmatpush1.bf16.msra.mxu0 %v7138_v25  ;;  %v1672_v46 = vld [vmem:[#allocation11 + $0x208] sm:$0xff]  ;;  %v7233_v10 = vcombine.high %v1704_v63, %v1712_v7  ;;  %v7235_v13 = vcombine.high %v1705_v8, %v1713_v48  ;;  %v7232_v32 = vcombine.low %v1704_v63, %v1712_v7  ;;  %v1737_v44 = vld [vmem:[#allocation11 + $0x410] sm:$0xff] }
 0x5fa   :  { %4887 = vmatprep.mubr.bf16.mxu1 %v9142_v53  ;;  %4973 = vmatprep.mubr.bf16.mxu0 %v9142_v53  ;;  %v1680_v25 = vld [vmem:[#allocation11 + $0x248] sm:$0xff]  ;;  %v7234_v11 = vcombine.low %v1705_v8, %v1713_v48  ;;  %v1753_v40 = vld [vmem:[#allocation11 + $0x490] sm:$0xff] }
 0x5fb   :  { %4857 = vmatprep.subr.bf16.mxu1 %v7153_v17  ;;  %4943 = vmatprep.subr.bf16.mxu0 %v7155_v19  ;;  %v7201_v60 = vcombine.high %v1672_v46, %v1680_v25  ;;  %v7200_v29 = vcombine.low %v1672_v46, %v1680_v25  ;;  %v7249_v17 = vcombine.high %v1720_v4, %v1728_v55  ;;  %v1744_v22 = vld [vmem:[#allocation11 + $0x448] sm:$0xff]  ;;  %v1769_v6 = vld [vmem:[#allocation11 + $0x510] sm:$0xff] }
 0x5fc   :  { %v7251_v19 = vcombine.high %v1721_v43, %v1729_v30  ;;  %v1752_v3 = vld [vmem:[#allocation11 + $0x488] sm:$0xff]  ;;  %v1785_v15 = vld [vmem:[#allocation11 + $0x590] sm:$0xff] }
 0x5fd   :  { %4858 = vmatpush1.bf16.msra.mxu1 %v7152_v23  ;;  %4944 = vmatpush1.bf16.msra.mxu0 %v7154_v34  ;;  %v1745_v23 = vld [vmem:[#allocation11 + $0x450] sm:$0xff]  ;;  %v7248_v34 = vcombine.low %v1720_v4, %v1728_v55  ;;  %v1760_v45 = vld [vmem:[#allocation11 + $0x4c8] sm:$0xff] }
 0x5fe   :  { %4859 = vmatprep.subr.bf16.mxu1 %v7169_v35  ;;  %4945 = vmatprep.subr.bf16.mxu0 %v7171_v5  ;;  %v7250_v35 = vcombine.low %v1721_v43, %v1729_v30  ;;  %v7265_v5 = vcombine.high %v1736_v20, %v1744_v22  ;;  %v7267_v36 = vcombine.high %v1737_v44, %v1745_v23  ;;  %v1768_v25 = vld [vmem:[#allocation11 + $0x508] sm:$0xff]  ;;  %v1801_v48 = vld [vmem:[#allocation11 + $0x610] sm:$0xff] }
 0x5ff   :  { %v1776_v42 = vld [vmem:[#allocation11 + $0x548] sm:$0xff]  ;;  %v1817_v30 = vld [vmem:[#allocation11 + $0x690] sm:$0xff] }
 0x600   :  { %v1784_v39 = vld [vmem:[#allocation11 + $0x588] sm:$0xff] }
 0x601   :  { %4860 = vmatpush1.bf16.msra.mxu1 %v7168_v59  ;;  %4946 = vmatpush1.bf16.msra.mxu0 %v7170_v52  ;;  %v1761_v59 = vld [vmem:[#allocation11 + $0x4d0] sm:$0xff]  ;;  %v7264_v52 = vcombine.low %v1736_v20, %v1744_v22  ;;  %v1792_v31 = vld [vmem:[#allocation11 + $0x5c8] sm:$0xff] }
 0x602   :  { %4861 = vmatprep.subr.bf16.mxu1 %v7185_v24  ;;  %4947 = vmatprep.subr.bf16.mxu0 %v7187_v12  ;;  %v7266_v24 = vcombine.low %v1737_v44, %v1745_v23  ;;  %v7281_v12 = vcombine.high %v1752_v3, %v1760_v45  ;;  %v7283_v46 = vcombine.high %v1753_v40, %v1761_v59  ;;  %v1800_v7 = vld [vmem:[#allocation11 + $0x608] sm:$0xff]  ;;  %v1833_v23 = vld [vmem:[#allocation11 + $0x710] sm:$0xff] }
 0x603   :  { %v1808_v8 = vld [vmem:[#allocation11 + $0x648] sm:$0xff] }
 0x604   :  { %v1816_v55 = vld [vmem:[#allocation11 + $0x688] sm:$0xff] }
 0x605   :  { %4862 = vmatpush1.bf16.msra.mxu1 %v7184_v57  ;;  %4948 = vmatpush1.bf16.msra.mxu0 %v7186_v61  ;;  %v1777_v57 = vld [vmem:[#allocation11 + $0x550] sm:$0xff]  ;;  %v7280_v61 = vcombine.low %v1752_v3, %v1760_v45  ;;  %v1824_v43 = vld [vmem:[#allocation11 + $0x6c8] sm:$0xff] }
 0x606   :  { %4863 = vmatprep.subr.bf16.mxu1 %v7201_v60  ;;  %4949 = vmatprep.subr.bf16.mxu0 %v7203_v28  ;;  %v7282_v60 = vcombine.low %v1753_v40, %v1761_v59  ;;  %v7297_v28 = vcombine.high %v1768_v25, %v1776_v42  ;;  %v7299_v33 = vcombine.high %v1769_v6, %v1777_v57  ;;  %v1832_v22 = vld [vmem:[#allocation11 + $0x708] sm:$0xff]  ;;  %v1849_v59 = vld [vmem:[#allocation11 + $0x790] sm:$0xff] }
 0x607   :  { %v1840_v44 = vld [vmem:[#allocation11 + $0x748] sm:$0xff] }
 0x608   :  { %v1848_v45 = vld [vmem:[#allocation11 + $0x788] sm:$0xff] }
 0x609   :  { %4864 = vmatpush1.bf16.msra.mxu1 %v7200_v29  ;;  %4950 = vmatpush1.bf16.msra.mxu0 %v7202_v26  ;;  %v1793_v29 = vld [vmem:[#allocation11 + $0x5d0] sm:$0xff]  ;;  %v7296_v26 = vcombine.low %v1768_v25, %v1776_v42  ;;  %v1856_v40 = vld [vmem:[#allocation11 + $0x7c8] sm:$0xff] }
 0x60a   :  { %4865 = vmatprep.subr.bf16.mxu1 %v7217_v58  ;;  %4951 = vmatprep.subr.bf16.mxu0 %v7219_v49  ;;  %v7298_v58 = vcombine.low %v1769_v6, %v1777_v57  ;;  %v7313_v49 = vcombine.high %v1784_v39, %v1792_v31  ;;  %v7315_v63 = vcombine.high %v1785_v15, %v1793_v29  ;;  %v1864_v42 = vld [vmem:[#allocation11 + $0x808] sm:$0xff]  ;;  %v1865_v57 = vld [vmem:[#allocation11 + $0x810] sm:$0xff] }
 0x60b   :  { %v1872_v6 = vld [vmem:[#allocation11 + $0x848] sm:$0xff] }
 0x60d   :  { %4866 = vmatpush1.bf16.msra.mxu1 %v7216_v47  ;;  %4952 = vmatpush1.bf16.msra.mxu0 %v7218_v9  ;;  %v1809_v47 = vld [vmem:[#allocation11 + $0x650] sm:$0xff]  ;;  %v7312_v9 = vcombine.low %v1784_v39, %v1792_v31  ;;  %v1880_v31 = vld [vmem:[#allocation11 + $0x888] sm:$0xff] }
 0x60e   :  { %4867 = vmatprep.subr.bf16.mxu1 %v7233_v10  ;;  %4953 = vmatprep.subr.bf16.mxu0 %v7235_v13  ;;  %v7314_v10 = vcombine.low %v1785_v15, %v1793_v29  ;;  %v7329_v13 = vcombine.high %v1800_v7, %v1808_v8  ;;  %v7331_v4 = vcombine.high %v1801_v48, %v1809_v47  ;;  %v1888_v15 = vld [vmem:[#allocation11 + $0x8c8] sm:$0xff]  ;;  %v1881_v29 = vld [vmem:[#allocation11 + $0x890] sm:$0xff] }
 0x611   :  { %4868 = vmatpush1.bf16.msra.mxu1 %v7232_v32  ;;  %4954 = vmatpush1.bf16.msra.mxu0 %v7234_v11  ;;  %v1825_v32 = vld [vmem:[#allocation11 + $0x6d0] sm:$0xff]  ;;  %v7328_v11 = vcombine.low %v1800_v7, %v1808_v8  ;;  %v1896_v8 = vld [vmem:[#allocation11 + $0x908] sm:$0xff] }
 0x612   :  { %4869 = vmatprep.subr.bf16.mxu1 %v7249_v17  ;;  %4955 = vmatprep.subr.bf16.mxu0 %v7251_v19  ;;  %v7330_v17 = vcombine.low %v1801_v48, %v1809_v47  ;;  %v7345_v19 = vcombine.high %v1816_v55, %v1824_v43  ;;  %v7347_v20 = vcombine.high %v1817_v30, %v1825_v32  ;;  %v1904_v48 = vld [vmem:[#allocation11 + $0x948] sm:$0xff]  ;;  %v1897_v47 = vld [vmem:[#allocation11 + $0x910] sm:$0xff] }
 0x615   :  { %4870 = vmatpush1.bf16.msra.mxu1 %v7248_v34  ;;  %4956 = vmatpush1.bf16.msra.mxu0 %v7250_v35  ;;  %v1841_v34 = vld [vmem:[#allocation11 + $0x750] sm:$0xff]  ;;  %v7344_v35 = vcombine.low %v1816_v55, %v1824_v43  ;;  %v1912_v43 = vld [vmem:[#allocation11 + $0x988] sm:$0xff] }
 0x616   :  { %4871 = vmatprep.subr.bf16.mxu1 %v7265_v5  ;;  %4957 = vmatprep.subr.bf16.mxu0 %v7267_v36  ;;  %v7346_v5 = vcombine.low %v1817_v30, %v1825_v32  ;;  %v7361_v36 = vcombine.high %v1832_v22, %v1840_v44  ;;  %v7363_v3 = vcombine.high %v1833_v23, %v1841_v34  ;;  %v1920_v30 = vld [vmem:[#allocation11 + $0x9c8] sm:$0xff]  ;;  %v1913_v32 = vld [vmem:[#allocation11 + $0x990] sm:$0xff] }
 0x619   :  { %4872 = vmatpush1.bf16.msra.mxu1 %v7264_v52  ;;  %4958 = vmatpush1.bf16.msra.mxu0 %v7266_v24  ;;  %v1857_v52 = vld [vmem:[#allocation11 + $0x7d0] sm:$0xff]  ;;  %v7360_v24 = vcombine.low %v1832_v22, %v1840_v44  ;;  %v1928_v44 = vld [vmem:[#allocation11 + $0xa08] sm:$0xff] }
 0x61a   :  { %4873 = vmatprep.subr.bf16.mxu1 %v7281_v12  ;;  %4959 = vmatprep.subr.bf16.mxu0 %v7283_v46  ;;  %v7362_v12 = vcombine.low %v1833_v23, %v1841_v34  ;;  %v7377_v46 = vcombine.high %v1848_v45, %v1856_v40  ;;  %v7379_v25 = vcombine.high %v1849_v59, %v1857_v52  ;;  %v1936_v23 = vld [vmem:[#allocation11 + $0xa48] sm:$0xff]  ;;  %v1929_v34 = vld [vmem:[#allocation11 + $0xa10] sm:$0xff] }
 0x61d   :  { %4874 = vmatpush1.bf16.msra.mxu1 %v7280_v61  ;;  %4960 = vmatpush1.bf16.msra.mxu0 %v7282_v60  ;;  %v1873_v61 = vld [vmem:[#allocation11 + $0x850] sm:$0xff]  ;;  %v7376_v60 = vcombine.low %v1848_v45, %v1856_v40  ;;  %v1944_v40 = vld [vmem:[#allocation11 + $0xa88] sm:$0xff] }
 0x61e   :  { %4875 = vmatprep.subr.bf16.mxu1 %v7297_v28  ;;  %4961 = vmatprep.subr.bf16.mxu0 %v7299_v33  ;;  %v7378_v28 = vcombine.low %v1849_v59, %v1857_v52  ;;  %v7393_v33 = vcombine.high %v1864_v42, %v1872_v6  ;;  %v7395_v39 = vcombine.high %v1865_v57, %v1873_v61  ;;  %v1952_v59 = vld [vmem:[#allocation11 + $0xac8] sm:$0xff]  ;;  %v1945_v52 = vld [vmem:[#allocation11 + $0xa90] sm:$0xff] }
 0x621   :  { %4876 = vmatpush1.bf16.msra.mxu1 %v7296_v26  ;;  %4962 = vmatpush1.bf16.msra.mxu0 %v7298_v58  ;;  %v1889_v26 = vld [vmem:[#allocation11 + $0x8d0] sm:$0xff]  ;;  %v7392_v58 = vcombine.low %v1864_v42, %v1872_v6  ;;  %v1960_v6 = vld [vmem:[#allocation11 + $0xb08] sm:$0xff] }
 0x622   :  { %4877 = vmatprep.subr.bf16.mxu1 %v7313_v49  ;;  %4963 = vmatprep.subr.bf16.mxu0 %v7315_v63  ;;  %v7394_v49 = vcombine.low %v1865_v57, %v1873_v61  ;;  %v7409_v63 = vcombine.high %v1880_v31, %v1888_v15  ;;  %v7411_v7 = vcombine.high %v1881_v29, %v1889_v26  ;;  %v1968_v57 = vld [vmem:[#allocation11 + $0xb48] sm:$0xff]  ;;  %v1961_v61 = vld [vmem:[#allocation11 + $0xb10] sm:$0xff] }
 0x625   :  { %4878 = vmatpush1.bf16.msra.mxu1 %v7312_v9  ;;  %4964 = vmatpush1.bf16.msra.mxu0 %v7314_v10  ;;  %v1905_v9 = vld [vmem:[#allocation11 + $0x950] sm:$0xff]  ;;  %v7408_v10 = vcombine.low %v1880_v31, %v1888_v15  ;;  %v1976_v15 = vld [vmem:[#allocation11 + $0xb88] sm:$0xff] }
 0x626   :  { %4879 = vmatprep.subr.bf16.mxu1 %v7329_v13  ;;  %4965 = vmatprep.subr.bf16.mxu0 %v7331_v4  ;;  %v7410_v13 = vcombine.low %v1881_v29, %v1889_v26  ;;  %v7425_v4 = vcombine.high %v1896_v8, %v1904_v48  ;;  %v7427_v55 = vcombine.high %v1897_v47, %v1905_v9  ;;  %v1984_v29 = vld [vmem:[#allocation11 + $0xbc8] sm:$0xff]  ;;  %v1977_v26 = vld [vmem:[#allocation11 + $0xb90] sm:$0xff] }
 0x629   :  { %4880 = vmatpush1.bf16.msra.mxu1 %v7328_v11  ;;  %4966 = vmatpush1.bf16.msra.mxu0 %v7330_v17  ;;  %v1921_v11 = vld [vmem:[#allocation11 + $0x9d0] sm:$0xff]  ;;  %v7424_v17 = vcombine.low %v1896_v8, %v1904_v48  ;;  %v1992_v48 = vld [vmem:[#allocation11 + $0xc08] sm:$0xff] }
 0x62a   :  { %4881 = vmatprep.subr.bf16.mxu1 %v7345_v19  ;;  %4967 = vmatprep.subr.bf16.mxu0 %v7347_v20  ;;  %v7426_v19 = vcombine.low %v1897_v47, %v1905_v9  ;;  %v7441_v20 = vcombine.high %v1912_v43, %v1920_v30  ;;  %v7443_v22 = vcombine.high %v1913_v32, %v1921_v11  ;;  %v2000_v47 = vld [vmem:[#allocation11 + $0xc48] sm:$0xff]  ;;  %v1993_v9 = vld [vmem:[#allocation11 + $0xc10] sm:$0xff] }
 0x62d   :  { %4882 = vmatpush1.bf16.msra.mxu1 %v7344_v35  ;;  %4968 = vmatpush1.bf16.msra.mxu0 %v7346_v5  ;;  %v1937_v35 = vld [vmem:[#allocation11 + $0xa50] sm:$0xff]  ;;  %v7440_v5 = vcombine.low %v1912_v43, %v1920_v30  ;;  %v2008_v30 = vld [vmem:[#allocation11 + $0xc88] sm:$0xff] }
 0x62e   :  { %4883 = vmatprep.subr.bf16.mxu1 %v7361_v36  ;;  %4969 = vmatprep.subr.bf16.mxu0 %v7363_v3  ;;  %v7442_v36 = vcombine.low %v1913_v32, %v1921_v11  ;;  %v7457_v3 = vcombine.high %v1928_v44, %v1936_v23  ;;  %v7459_v45 = vcombine.high %v1929_v34, %v1937_v35  ;;  %v2016_v32 = vld [vmem:[#allocation11 + $0xcc8] sm:$0xff]  ;;  %v2009_v11 = vld [vmem:[#allocation11 + $0xc90] sm:$0xff] }
 0x631   :  { %4884 = vmatpush1.bf16.msra.mxu1 %v7360_v24  ;;  %4970 = vmatpush1.bf16.msra.mxu0 %v7362_v12  ;;  %v1953_v24 = vld [vmem:[#allocation11 + $0xad0] sm:$0xff]  ;;  %v7456_v12 = vcombine.low %v1928_v44, %v1936_v23  ;;  %v2024_v23 = vld [vmem:[#allocation11 + $0xd08] sm:$0xff] }
 0x632   :  { %4885 = vmatprep.subr.bf16.mxu1 %v7377_v46  ;;  %4971 = vmatprep.subr.bf16.mxu0 %v7379_v25  ;;  %v7458_v46 = vcombine.low %v1929_v34, %v1937_v35  ;;  %v7473_v25 = vcombine.high %v1944_v40, %v1952_v59  ;;  %v7475_v42 = vcombine.high %v1945_v52, %v1953_v24  ;;  %v2032_v34 = vld [vmem:[#allocation11 + $0xd48] sm:$0xff]  ;;  %v2025_v35 = vld [vmem:[#allocation11 + $0xd10] sm:$0xff] }
 0x635   :  { %4886 = vmatpush1.bf16.msra.mxu1 %v7376_v60  ;;  %4972 = vmatpush1.bf16.msra.mxu0 %v7378_v28  ;;  %v1969_v60 = vld [vmem:[#allocation11 + $0xb50] sm:$0xff]  ;;  %v7472_v28 = vcombine.low %v1944_v40, %v1952_v59  ;;  %v2040_v59 = vld [vmem:[#allocation11 + $0xd88] sm:$0xff] }
 0x636   :  { %4898 = vmatprep.subr.bf16.mxu1 %v7393_v33  ;;  %4984 = vmatprep.subr.bf16.mxu0 %v7395_v39  ;;  %v7474_v33 = vcombine.low %v1945_v52, %v1953_v24  ;;  %v7489_v39 = vcombine.high %v1960_v6, %v1968_v57  ;;  %v7491_v31 = vcombine.high %v1961_v61, %v1969_v60  ;;  %v2048_v52 = vld [vmem:[#allocation11 + $0xdc8] sm:$0xff]  ;;  %v2041_v24 = vld [vmem:[#allocation11 + $0xd90] sm:$0xff] }
 0x638   :  { %4888 = vmatmul.mubr.bf16.vlgmr.msra.gmra.mrb[36].mxu1 %v9138_v27  ;;  %4974 = vmatmul.mubr.bf16.vlgmr.msra.gmra.mrb[48].mxu0 %v9138_v27 }
 0x639   :  { %4899 = vmatpush1.bf16.msra.mxu1 %v7392_v58  ;;  %4930 = vmatprep.mubr.bf16.mxu1 %v9144_v1  ;;  %v1985_v58 = vld [vmem:[#allocation11 + $0xbd0] sm:$0xff] }
 0x63a   :  { %4985 = vmatpush1.bf16.msra.mxu0 %v7394_v49  ;;  %5016 = vmatprep.mubr.bf16.mxu0 %v9144_v1  ;;  %v7488_v49 = vcombine.low %v1960_v6, %v1968_v57  ;;  %v7507_v8 = vcombine.high %v1977_v26, %v1985_v58  ;;  %v2056_v57 = vld [vmem:[#allocation11 + $0xe08] sm:$0xff] }
 0x63b   :  { %4900 = vmatprep.subr.bf16.mxu1 %v7409_v63  ;;  %4986 = vmatprep.subr.bf16.mxu0 %v7411_v7  ;;  %v7490_v63 = vcombine.low %v1961_v61, %v1969_v60  ;;  %v7505_v7 = vcombine.high %v1976_v15, %v1984_v29  ;;  %v2064_v61 = vld [vmem:[#allocation11 + $0xe48] sm:$0xff]  ;;  %v2057_v60 = vld [vmem:[#allocation11 + $0xe10] sm:$0xff] }
 0x63d   :  { %4901 = vmatpush1.bf16.msra.mxu1 %v7408_v10  ;;  %v2001_v10 = vld [vmem:[#allocation11 + $0xc50] sm:$0xff] }
 0x63e   :  { %4987 = vmatpush1.bf16.msra.mxu0 %v7410_v13  ;;  %4902 = vmatprep.subr.bf16.mxu1 %v7425_v4  ;;  %v7504_v13 = vcombine.low %v1976_v15, %v1984_v29  ;;  %v7506_v4 = vcombine.low %v1977_v26, %v1985_v58  ;;  %v7523_v43 = vcombine.high %v1993_v9, %v2001_v10  ;;  %v2072_v29 = vld [vmem:[#allocation11 + $0xe88] sm:$0xff]  ;;  %v2073_v58 = vld [vmem:[#allocation11 + $0xe90] sm:$0xff] }
 0x63f   :  { %4988 = vmatprep.subr.bf16.mxu0 %v7427_v55  ;;  %v7521_v55 = vcombine.high %v1992_v48, %v2000_v47  ;;  %v2080_v26 = vld [vmem:[#allocation11 + $0xec8] sm:$0xff] }
 0x641   :  { %4903 = vmatpush1.bf16.msra.mxu1 %v7424_v17  ;;  %v2017_v17 = vld [vmem:[#allocation11 + $0xcd0] sm:$0xff] }
 0x642   :  { %4989 = vmatpush1.bf16.msra.mxu0 %v7426_v19  ;;  %4904 = vmatprep.subr.bf16.mxu1 %v7441_v20  ;;  %v7520_v19 = vcombine.low %v1992_v48, %v2000_v47  ;;  %v7522_v20 = vcombine.low %v1993_v9, %v2001_v10  ;;  %v7539_v44 = vcombine.high %v2009_v11, %v2017_v17  ;;  %v2088_v47 = vld [vmem:[#allocation11 + $0xf08] sm:$0xff]  ;;  %v2089_v10 = vld [vmem:[#allocation11 + $0xf10] sm:$0xff] }
 0x643   :  { %4990 = vmatprep.subr.bf16.mxu0 %v7443_v22  ;;  %v7537_v22 = vcombine.high %v2008_v30, %v2016_v32  ;;  %v2096_v9 = vld [vmem:[#allocation11 + $0xf48] sm:$0xff] }
 0x645   :  { %4905 = vmatpush1.bf16.msra.mxu1 %v7440_v5  ;;  %v2033_v5 = vld [vmem:[#allocation11 + $0xd50] sm:$0xff] }
 0x646   :  { %4991 = vmatpush1.bf16.msra.mxu0 %v7442_v36  ;;  %4906 = vmatprep.subr.bf16.mxu1 %v7457_v3  ;;  %v7536_v36 = vcombine.low %v2008_v30, %v2016_v32  ;;  %v7538_v3 = vcombine.low %v2009_v11, %v2017_v17  ;;  %v7555_v40 = vcombine.high %v2025_v35, %v2033_v5  ;;  %v2104_v32 = vld [vmem:[#allocation11 + $0xf88] sm:$0xff]  ;;  %v2105_v17 = vld [vmem:[#allocation11 + $0xf90] sm:$0xff] }
 0x647   :  { %4992 = vmatprep.subr.bf16.mxu0 %v7459_v45  ;;  %v7553_v45 = vcombine.high %v2024_v23, %v2032_v34  ;;  %v2112_v11 = vld [vmem:[#allocation11 + $0xfc8] sm:$0xff] }
 0x649   :  { %4907 = vmatpush1.bf16.msra.mxu1 %v7456_v12  ;;  %v2049_v12 = vld [vmem:[#allocation11 + $0xdd0] sm:$0xff] }
 0x64a   :  { %4993 = vmatpush1.bf16.msra.mxu0 %v7458_v46  ;;  %4908 = vmatprep.subr.bf16.mxu1 %v7473_v25  ;;  %v7552_v46 = vcombine.low %v2024_v23, %v2032_v34  ;;  %v7554_v25 = vcombine.low %v2025_v35, %v2033_v5  ;;  %v7571_v6 = vcombine.high %v2041_v24, %v2049_v12  ;;  %v1610_v34 = vld [vmem:[#allocation11 + $0x18] sm:$0xff]  ;;  %v1611_v5 = vld [vmem:[#allocation11 + $0x20] sm:$0xff] }
 0x64b   :  { %4994 = vmatprep.subr.bf16.mxu0 %v7475_v42  ;;  %v7569_v42 = vcombine.high %v2040_v59, %v2048_v52  ;;  %v1618_v35 = vld [vmem:[#allocation11 + $0x58] sm:$0xff] }
 0x64d   :  { %4909 = vmatpush1.bf16.msra.mxu1 %v7472_v28  ;;  %v2065_v28 = vld [vmem:[#allocation11 + $0xe50] sm:$0xff] }
 0x64e   :  { %4995 = vmatpush1.bf16.msra.mxu0 %v7474_v33  ;;  %4910 = vmatprep.subr.bf16.mxu1 %v7489_v39  ;;  %v7568_v33 = vcombine.low %v2040_v59, %v2048_v52  ;;  %v7570_v39 = vcombine.low %v2041_v24, %v2049_v12  ;;  %v7587_v15 = vcombine.high %v2057_v60, %v2065_v28  ;;  %v1626_v52 = vld [vmem:[#allocation11 + $0x98] sm:$0xff] }
 0x64f   :  { %4996 = vmatprep.subr.bf16.mxu0 %v7491_v31  ;;  %v7585_v31 = vcombine.high %v2056_v57, %v2064_v61  ;;  %v1634_v24 = vld [vmem:[#allocation11 + $0xd8] sm:$0xff]  ;;  %v7140_v12 = vcombine.low %v1610_v34, %v1618_v35 }
 0x651   :  { %4911 = vmatpush1.bf16.msra.mxu1 %v7488_v49  ;;  %v2081_v49 = vld [vmem:[#allocation11 + $0xed0] sm:$0xff] }
 0x652   :  { %4997 = vmatpush1.bf16.msra.mxu0 %v7490_v63  ;;  %4912 = vmatprep.subr.bf16.mxu1 %v7505_v7  ;;  %v7584_v63 = vcombine.low %v2056_v57, %v2064_v61  ;;  %v7586_v7 = vcombine.low %v2057_v60, %v2065_v28  ;;  %v7603_v48 = vcombine.high %v2073_v58, %v2081_v49  ;;  %v1642_v57 = vld [vmem:[#allocation11 + $0x118] sm:$0xff]  ;;  %v1643_v28 = vld [vmem:[#allocation11 + $0x120] sm:$0xff] }
 0x653   :  { %4998 = vmatprep.subr.bf16.mxu0 %v7507_v8  ;;  %v7601_v8 = vcombine.high %v2072_v29, %v2080_v26  ;;  %v1650_v61 = vld [vmem:[#allocation11 + $0x158] sm:$0xff] }
 0x655   :  { %4913 = vmatpush1.bf16.msra.mxu1 %v7504_v13  ;;  %v2097_v13 = vld [vmem:[#allocation11 + $0xf50] sm:$0xff] }
 0x656   :  { %4999 = vmatpush1.bf16.msra.mxu0 %v7506_v4  ;;  %4914 = vmatprep.subr.bf16.mxu1 %v7521_v55  ;;  %v7600_v4 = vcombine.low %v2072_v29, %v2080_v26  ;;  %v7602_v55 = vcombine.low %v2073_v58, %v2081_v49  ;;  %v7619_v30 = vcombine.high %v2089_v10, %v2097_v13  ;;  %v1658_v26 = vld [vmem:[#allocation11 + $0x198] sm:$0xff]  ;;  %v1659_v49 = vld [vmem:[#allocation11 + $0x1a0] sm:$0xff] }
 0x657   :  { %5000 = vmatprep.subr.bf16.mxu0 %v7523_v43  ;;  %v7617_v43 = vcombine.high %v2088_v47, %v2096_v9  ;;  %v1666_v58 = vld [vmem:[#allocation11 + $0x1d8] sm:$0xff] }
 0x659   :  { %4915 = vmatpush1.bf16.msra.mxu1 %v7520_v19  ;;  %v2113_v19 = vld [vmem:[#allocation11 + $0xfd0] sm:$0xff] }
 0x65a   :  { %5001 = vmatpush1.bf16.msra.mxu0 %v7522_v20  ;;  %4916 = vmatprep.subr.bf16.mxu1 %v7537_v22  ;;  %v7616_v20 = vcombine.low %v2088_v47, %v2096_v9  ;;  %v7618_v22 = vcombine.low %v2089_v10, %v2097_v13  ;;  %v7635_v23 = vcombine.high %v2105_v17, %v2113_v19  ;;  %v1674_v9 = vld [vmem:[#allocation11 + $0x218] sm:$0xff]  ;;  %v1675_v13 = vld [vmem:[#allocation11 + $0x220] sm:$0xff] }
 0x65b   :  { %5002 = vmatprep.subr.bf16.mxu0 %v7539_v44  ;;  %v7633_v44 = vcombine.high %v2104_v32, %v2112_v11  ;;  %v1682_v10 = vld [vmem:[#allocation11 + $0x258] sm:$0xff] }
 0x65d   :  { %4917 = vmatpush1.bf16.msra.mxu1 %v7536_v36  ;;  %v1619_v36 = vld [vmem:[#allocation11 + $0x60] sm:$0xff] }
 0x65e   :  { %5003 = vmatpush1.bf16.msra.mxu0 %v7538_v3  ;;  %4918 = vmatprep.subr.bf16.mxu1 %v7553_v45  ;;  %v7632_v3 = vcombine.low %v2104_v32, %v2112_v11  ;;  %v7634_v45 = vcombine.low %v2105_v17, %v2113_v19  ;;  %v7143_v59 = vcombine.high %v1611_v5, %v1619_v36  ;;  %v1690_v11 = vld [vmem:[#allocation11 + $0x298] sm:$0xff]  ;;  %v1691_v19 = vld [vmem:[#allocation11 + $0x2a0] sm:$0xff] }
 0x65f   :  { %5004 = vmatprep.subr.bf16.mxu0 %v7555_v40  ;;  %v7141_v40 = vcombine.high %v1610_v34, %v1618_v35  ;;  %v1698_v17 = vld [vmem:[#allocation11 + $0x2d8] sm:$0xff] }
 0x660   :  { %v1706_v35 = vld [vmem:[#allocation11 + $0x318] sm:$0xff] }
 0x661   :  { %4919 = vmatpush1.bf16.msra.mxu1 %v7552_v46  ;;  %v1627_v46 = vld [vmem:[#allocation11 + $0xa0] sm:$0xff] }
 0x662   :  { %5005 = vmatpush1.bf16.msra.mxu0 %v7554_v25  ;;  %4920 = vmatprep.subr.bf16.mxu1 %v7569_v42  ;;  %v1635_v25 = vld [vmem:[#allocation11 + $0xe0] sm:$0xff]  ;;  %v7142_v42 = vcombine.low %v1611_v5, %v1619_v36  ;;  %v1714_v5 = vld [vmem:[#allocation11 + $0x358] sm:$0xff] }
 0x663   :  { %5006 = vmatprep.subr.bf16.mxu0 %v7571_v6  ;;  %v7157_v6 = vcombine.high %v1626_v52, %v1634_v24  ;;  %v7159_v60 = vcombine.high %v1627_v46, %v1635_v25  ;;  %v1707_v36 = vld [vmem:[#allocation11 + $0x320] sm:$0xff] }
 0x665   :  { %4921 = vmatpush1.bf16.msra.mxu1 %v7568_v33  ;;  %v1651_v33 = vld [vmem:[#allocation11 + $0x160] sm:$0xff] }
 0x666   :  { %5007 = vmatpush1.bf16.msra.mxu0 %v7570_v39  ;;  %4922 = vmatprep.subr.bf16.mxu1 %v7585_v31  ;;  %v7156_v39 = vcombine.low %v1626_v52, %v1634_v24  ;;  %v7158_v31 = vcombine.low %v1627_v46, %v1635_v25  ;;  %v7175_v29 = vcombine.high %v1643_v28, %v1651_v33  ;;  %v1722_v24 = vld [vmem:[#allocation11 + $0x398] sm:$0xff]  ;;  %v1723_v46 = vld [vmem:[#allocation11 + $0x3a0] sm:$0xff] }
 0x667   :  { %5008 = vmatprep.subr.bf16.mxu0 %v7587_v15  ;;  %v7173_v15 = vcombine.high %v1642_v57, %v1650_v61  ;;  %v1731_v25 = vld [vmem:[#allocation11 + $0x3e0] sm:$0xff] }
 0x669   :  { %4923 = vmatpush1.bf16.msra.mxu1 %v7584_v63  ;;  %v1667_v63 = vld [vmem:[#allocation11 + $0x1e0] sm:$0xff] }
 0x66a   :  { %5009 = vmatpush1.bf16.msra.mxu0 %v7586_v7  ;;  %4924 = vmatprep.subr.bf16.mxu1 %v7601_v8  ;;  %v7172_v7 = vcombine.low %v1642_v57, %v1650_v61  ;;  %v7174_v8 = vcombine.low %v1643_v28, %v1651_v33  ;;  %v7191_v47 = vcombine.high %v1659_v49, %v1667_v63  ;;  %v1746_v28 = vld [vmem:[#allocation11 + $0x458] sm:$0xff]  ;;  %v1739_v33 = vld [vmem:[#allocation11 + $0x420] sm:$0xff] }
 0x66b   :  { %5010 = vmatprep.subr.bf16.mxu0 %v7603_v48  ;;  %v7189_v48 = vcombine.high %v1658_v26, %v1666_v58  ;;  %v7255_v61 = vcombine.high %v1723_v46, %v1731_v25 }
 0x66d   :  { %4925 = vmatpush1.bf16.msra.mxu1 %v7600_v4  ;;  %v1683_v4 = vld [vmem:[#allocation11 + $0x260] sm:$0xff] }
 0x66e   :  { %5011 = vmatpush1.bf16.msra.mxu0 %v7602_v55  ;;  %4926 = vmatprep.subr.bf16.mxu1 %v7617_v43  ;;  %v7188_v55 = vcombine.low %v1658_v26, %v1666_v58  ;;  %v7190_v43 = vcombine.low %v1659_v49, %v1667_v63  ;;  %v7207_v32 = vcombine.high %v1675_v13, %v1683_v4  ;;  %v1754_v58 = vld [vmem:[#allocation11 + $0x498] sm:$0xff]  ;;  %v1755_v63 = vld [vmem:[#allocation11 + $0x4a0] sm:$0xff] }
 0x66f   :  { %5012 = vmatprep.subr.bf16.mxu0 %v7619_v30  ;;  %v7205_v30 = vcombine.high %v1674_v9, %v1682_v10  ;;  %v1762_v49 = vld [vmem:[#allocation11 + $0x4d8] sm:$0xff] }
 0x671   :  { %4927 = vmatpush1.bf16.msra.mxu1 %v7616_v20  ;;  %v1699_v20 = vld [vmem:[#allocation11 + $0x2e0] sm:$0xff] }
 0x672   :  { %5013 = vmatpush1.bf16.msra.mxu0 %v7618_v22  ;;  %4928 = vmatprep.subr.bf16.mxu1 %v7633_v44  ;;  %v7204_v22 = vcombine.low %v1674_v9, %v1682_v10  ;;  %v7206_v44 = vcombine.low %v1675_v13, %v1683_v4  ;;  %v7223_v34 = vcombine.high %v1691_v19, %v1699_v20  ;;  %v1770_v10 = vld [vmem:[#allocation11 + $0x518] sm:$0xff]  ;;  %v1771_v4 = vld [vmem:[#allocation11 + $0x520] sm:$0xff] }
 0x673   :  { %5014 = vmatprep.subr.bf16.mxu0 %v7635_v23  ;;  %v7221_v23 = vcombine.high %v1690_v11, %v1698_v17  ;;  %v1778_v13 = vld [vmem:[#allocation11 + $0x558] sm:$0xff] }
 0x675   :  { %4929 = vmatpush1.bf16.msra.mxu1 %v7632_v3  ;;  %v1715_v3 = vld [vmem:[#allocation11 + $0x360] sm:$0xff] }
 0x676   :  { %5015 = vmatpush1.bf16.msra.mxu0 %v7634_v45  ;;  %5027 = vmatprep.subr.bf16.mxu1 %v7141_v40  ;;  %v7220_v45 = vcombine.low %v1690_v11, %v1698_v17  ;;  %v7222_v40 = vcombine.low %v1691_v19, %v1699_v20  ;;  %v7239_v52 = vcombine.high %v1707_v36, %v1715_v3  ;;  %v1786_v17 = vld [vmem:[#allocation11 + $0x598] sm:$0xff]  ;;  %v1787_v20 = vld [vmem:[#allocation11 + $0x5a0] sm:$0xff] }
 0x677   :  { %5113 = vmatprep.subr.bf16.mxu0 %v7143_v59  ;;  %v7237_v59 = vcombine.high %v1706_v35, %v1714_v5  ;;  %v1794_v19 = vld [vmem:[#allocation11 + $0x5d8] sm:$0xff] }
 0x678   :  { %4931 = vmatmul.mubr.bf16.vlgmr.msra.gmra.mrb[36].mxu1 %v9140_v51 }
 0x679   :  { %5017 = vmatmul.mubr.bf16.vlgmr.msra.gmra.mrb[48].mxu0 %v9140_v51  ;;  %5028 = vmatpush1.bf16.msra.mxu1 %v7140_v12  ;;  %v1730_v12 = vld [vmem:[#allocation11 + $0x3d8] sm:$0xff] }
 0x67a   :  { %5059 = vmatprep.mubr.bf16.mxu1 %v9142_v53  ;;  %5114 = vmatpush1.bf16.msra.mxu0 %v7142_v42  ;;  %v7236_v42 = vcombine.low %v1706_v35, %v1714_v5  ;;  %v7253_v57 = vcombine.high %v1722_v24, %v1730_v12  ;;  %v1802_v5 = vld [vmem:[#allocation11 + $0x618] sm:$0xff] }
 0x67b   :  { %5145 = vmatprep.mubr.bf16.mxu0 %v9142_v53  ;;  %5029 = vmatprep.subr.bf16.mxu1 %v7157_v6  ;;  %v7238_v6 = vcombine.low %v1707_v36, %v1715_v3  ;;  %v1810_v36 = vld [vmem:[#allocation11 + $0x658] sm:$0xff]  ;;  %v1803_v3 = vld [vmem:[#allocation11 + $0x620] sm:$0xff] }
 0x67c   :  { %5115 = vmatprep.subr.bf16.mxu0 %v7159_v60  ;;  %v1738_v60 = vld [vmem:[#allocation11 + $0x418] sm:$0xff] }
 0x67d   :  { %5030 = vmatpush1.bf16.msra.mxu1 %v7156_v39  ;;  %v1747_v39 = vld [vmem:[#allocation11 + $0x460] sm:$0xff] }
 0x67e   :  { %5116 = vmatpush1.bf16.msra.mxu0 %v7158_v31  ;;  %5031 = vmatprep.subr.bf16.mxu1 %v7173_v15  ;;  %v7252_v31 = vcombine.low %v1722_v24, %v1730_v12  ;;  %v7254_v15 = vcombine.low %v1723_v46, %v1731_v25  ;;  %v7271_v26 = vcombine.high %v1739_v33, %v1747_v39  ;;  %v1818_v12 = vld [vmem:[#allocation11 + $0x698] sm:$0xff]  ;;  %v1819_v25 = vld [vmem:[#allocation11 + $0x6a0] sm:$0xff] }
 0x67f   :  { %5117 = vmatprep.subr.bf16.mxu0 %v7175_v29  ;;  %v7269_v29 = vcombine.high %v1738_v60, %v1746_v28  ;;  %v1826_v46 = vld [vmem:[#allocation11 + $0x6d8] sm:$0xff] }
 0x681   :  { %5032 = vmatpush1.bf16.msra.mxu1 %v7172_v7  ;;  %v1763_v7 = vld [vmem:[#allocation11 + $0x4e0] sm:$0xff] }
 0x682   :  { %5118 = vmatpush1.bf16.msra.mxu0 %v7174_v8  ;;  %5033 = vmatprep.subr.bf16.mxu1 %v7189_v48  ;;  %v7268_v8 = vcombine.low %v1738_v60, %v1746_v28  ;;  %v7270_v48 = vcombine.low %v1739_v33, %v1747_v39  ;;  %v7287_v9 = vcombine.high %v1755_v63, %v1763_v7  ;;  %v1834_v28 = vld [vmem:[#allocation11 + $0x718] sm:$0xff]  ;;  %v1835_v39 = vld [vmem:[#allocation11 + $0x720] sm:$0xff] }
 0x683   :  { %5119 = vmatprep.subr.bf16.mxu0 %v7191_v47  ;;  %v7285_v47 = vcombine.high %v1754_v58, %v1762_v49  ;;  %v1842_v33 = vld [vmem:[#allocation11 + $0x758] sm:$0xff] }
 0x685   :  { %5034 = vmatpush1.bf16.msra.mxu1 %v7188_v55  ;;  %v1779_v55 = vld [vmem:[#allocation11 + $0x560] sm:$0xff] }
 0x686   :  { %5120 = vmatpush1.bf16.msra.mxu0 %v7190_v43  ;;  %5035 = vmatprep.subr.bf16.mxu1 %v7205_v30  ;;  %v7284_v43 = vcombine.low %v1754_v58, %v1762_v49  ;;  %v7286_v30 = vcombine.low %v1755_v63, %v1763_v7  ;;  %v7303_v11 = vcombine.high %v1771_v4, %v1779_v55  ;;  %v1850_v49 = vld [vmem:[#allocation11 + $0x798] sm:$0xff]  ;;  %v1851_v7 = vld [vmem:[#allocation11 + $0x7a0] sm:$0xff] }
 0x687   :  { %5121 = vmatprep.subr.bf16.mxu0 %v7207_v32  ;;  %v7301_v32 = vcombine.high %v1770_v10, %v1778_v13  ;;  %v1858_v63 = vld [vmem:[#allocation11 + $0x7d8] sm:$0xff] }
 0x689   :  { %5036 = vmatpush1.bf16.msra.mxu1 %v7204_v22  ;;  %v1795_v22 = vld [vmem:[#allocation11 + $0x5e0] sm:$0xff] }
 0x68a   :  { %5122 = vmatpush1.bf16.msra.mxu0 %v7206_v44  ;;  %5037 = vmatprep.subr.bf16.mxu1 %v7221_v23  ;;  %v7300_v44 = vcombine.low %v1770_v10, %v1778_v13  ;;  %v7302_v23 = vcombine.low %v1771_v4, %v1779_v55  ;;  %v7319_v35 = vcombine.high %v1787_v20, %v1795_v22  ;;  %v1866_v13 = vld [vmem:[#allocation11 + $0x818] sm:$0xff]  ;;  %v1867_v55 = vld [vmem:[#allocation11 + $0x820] sm:$0xff] }
 0x68b   :  { %5123 = vmatprep.subr.bf16.mxu0 %v7223_v34  ;;  %v7317_v34 = vcombine.high %v1786_v17, %v1794_v19  ;;  %v1874_v4 = vld [vmem:[#allocation11 + $0x858] sm:$0xff] }
 0x68d   :  { %5038 = vmatpush1.bf16.msra.mxu1 %v7220_v45  ;;  %v1811_v45 = vld [vmem:[#allocation11 + $0x660] sm:$0xff] }
 0x68e   :  { %5124 = vmatpush1.bf16.msra.mxu0 %v7222_v40  ;;  %5039 = vmatprep.subr.bf16.mxu1 %v7237_v59  ;;  %v7316_v40 = vcombine.low %v1786_v17, %v1794_v19  ;;  %v7318_v59 = vcombine.low %v1787_v20, %v1795_v22  ;;  %v7335_v24 = vcombine.high %v1803_v3, %v1811_v45  ;;  %v1882_v19 = vld [vmem:[#allocation11 + $0x898] sm:$0xff] }
 0x68f   :  { %5125 = vmatprep.subr.bf16.mxu0 %v7239_v52  ;;  %v7333_v52 = vcombine.high %v1802_v5, %v1810_v36  ;;  %v1890_v20 = vld [vmem:[#allocation11 + $0x8d8] sm:$0xff]  ;;  %v7396_v22 = vcombine.low %v1866_v13, %v1874_v4 }
 0x691   :  { %5040 = vmatpush1.bf16.msra.mxu1 %v7236_v42  ;;  %v1827_v42 = vld [vmem:[#allocation11 + $0x6e0] sm:$0xff] }
 0x692   :  { %5126 = vmatpush1.bf16.msra.mxu0 %v7238_v6  ;;  %5041 = vmatprep.subr.bf16.mxu1 %v7253_v57  ;;  %v7332_v6 = vcombine.low %v1802_v5, %v1810_v36  ;;  %v7334_v57 = vcombine.low %v1803_v3, %v1811_v45  ;;  %v7351_v60 = vcombine.high %v1819_v25, %v1827_v42  ;;  %v1898_v5 = vld [vmem:[#allocation11 + $0x918] sm:$0xff]  ;;  %v1899_v45 = vld [vmem:[#allocation11 + $0x920] sm:$0xff] }
 0x693   :  { %5127 = vmatprep.subr.bf16.mxu0 %v7255_v61  ;;  %v7349_v61 = vcombine.high %v1818_v12, %v1826_v46  ;;  %v1906_v36 = vld [vmem:[#allocation11 + $0x958] sm:$0xff] }
 0x695   :  { %5042 = vmatpush1.bf16.msra.mxu1 %v7252_v31  ;;  %v1843_v31 = vld [vmem:[#allocation11 + $0x760] sm:$0xff] }
 0x696   :  { %5128 = vmatpush1.bf16.msra.mxu0 %v7254_v15  ;;  %5043 = vmatprep.subr.bf16.mxu1 %v7269_v29  ;;  %v7348_v15 = vcombine.low %v1818_v12, %v1826_v46  ;;  %v7350_v29 = vcombine.low %v1819_v25, %v1827_v42  ;;  %v7367_v58 = vcombine.high %v1835_v39, %v1843_v31  ;;  %v1914_v46 = vld [vmem:[#allocation11 + $0x998] sm:$0xff]  ;;  %v1915_v42 = vld [vmem:[#allocation11 + $0x9a0] sm:$0xff] }
 0x697   :  { %5129 = vmatprep.subr.bf16.mxu0 %v7271_v26  ;;  %v7365_v26 = vcombine.high %v1834_v28, %v1842_v33  ;;  %v1922_v25 = vld [vmem:[#allocation11 + $0x9d8] sm:$0xff] }
 0x699   :  { %5044 = vmatpush1.bf16.msra.mxu1 %v7268_v8  ;;  %v1859_v8 = vld [vmem:[#allocation11 + $0x7e0] sm:$0xff] }
 0x69a   :  { %5130 = vmatpush1.bf16.msra.mxu0 %v7270_v48  ;;  %5045 = vmatprep.subr.bf16.mxu1 %v7285_v47  ;;  %v7364_v48 = vcombine.low %v1834_v28, %v1842_v33  ;;  %v7366_v47 = vcombine.low %v1835_v39, %v1843_v31  ;;  %v7383_v10 = vcombine.high %v1851_v7, %v1859_v8  ;;  %v1930_v33 = vld [vmem:[#allocation11 + $0xa18] sm:$0xff]  ;;  %v1931_v31 = vld [vmem:[#allocation11 + $0xa20] sm:$0xff] }
 0x69b   :  { %5131 = vmatprep.subr.bf16.mxu0 %v7287_v9  ;;  %v7381_v9 = vcombine.high %v1850_v49, %v1858_v63  ;;  %v1938_v39 = vld [vmem:[#allocation11 + $0xa58] sm:$0xff] }
 0x69d   :  { %5046 = vmatpush1.bf16.msra.mxu1 %v7284_v43  ;;  %v1875_v43 = vld [vmem:[#allocation11 + $0x860] sm:$0xff] }
 0x69e   :  { %5132 = vmatpush1.bf16.msra.mxu0 %v7286_v30  ;;  %5047 = vmatprep.subr.bf16.mxu1 %v7301_v32  ;;  %v7380_v30 = vcombine.low %v1850_v49, %v1858_v63  ;;  %v7382_v32 = vcombine.low %v1851_v7, %v1859_v8  ;;  %v7399_v17 = vcombine.high %v1867_v55, %v1875_v43  ;;  %v1946_v63 = vld [vmem:[#allocation11 + $0xa98] sm:$0xff]  ;;  %v1947_v8 = vld [vmem:[#allocation11 + $0xaa0] sm:$0xff] }
 0x69f   :  { %5133 = vmatprep.subr.bf16.mxu0 %v7303_v11  ;;  %v7397_v11 = vcombine.high %v1866_v13, %v1874_v4  ;;  %v1954_v7 = vld [vmem:[#allocation11 + $0xad8] sm:$0xff] }
 0x6a0   :  { %v7477_v13 = vcombine.high %v1946_v63, %v1954_v7 }
 0x6a1   :  { %5048 = vmatpush1.bf16.msra.mxu1 %v7300_v44  ;;  %v1883_v44 = vld [vmem:[#allocation11 + $0x8a0] sm:$0xff] }
 0x6a2   :  { %5134 = vmatpush1.bf16.msra.mxu0 %v7302_v23  ;;  %5049 = vmatprep.subr.bf16.mxu1 %v7317_v34  ;;  %v1891_v23 = vld [vmem:[#allocation11 + $0x8e0] sm:$0xff]  ;;  %v7398_v34 = vcombine.low %v1867_v55, %v1875_v43  ;;  %v1962_v55 = vld [vmem:[#allocation11 + $0xb18] sm:$0xff] }
 0x6a3   :  { %5135 = vmatprep.subr.bf16.mxu0 %v7319_v35  ;;  %v7413_v35 = vcombine.high %v1882_v19, %v1890_v20  ;;  %v7415_v3 = vcombine.high %v1883_v44, %v1891_v23  ;;  %v1970_v43 = vld [vmem:[#allocation11 + $0xb58] sm:$0xff] }
 0x6a5   :  { %5050 = vmatpush1.bf16.msra.mxu1 %v7316_v40  ;;  %v1907_v40 = vld [vmem:[#allocation11 + $0x960] sm:$0xff] }
 0x6a6   :  { %5136 = vmatpush1.bf16.msra.mxu0 %v7318_v59  ;;  %5051 = vmatprep.subr.bf16.mxu1 %v7333_v52  ;;  %v7412_v59 = vcombine.low %v1882_v19, %v1890_v20  ;;  %v7414_v52 = vcombine.low %v1883_v44, %v1891_v23  ;;  %v7431_v12 = vcombine.high %v1899_v45, %v1907_v40 }
 0x6a7   :  { %5137 = vmatprep.subr.bf16.mxu0 %v7335_v24  ;;  %v7429_v24 = vcombine.high %v1898_v5, %v1906_v36 }
 0x6a9   :  { %5052 = vmatpush1.bf16.msra.mxu1 %v7332_v6  ;;  %v1923_v6 = vld [vmem:[#allocation11 + $0x9e0] sm:$0xff] }
 0x6aa   :  { %5138 = vmatpush1.bf16.msra.mxu0 %v7334_v57  ;;  %5053 = vmatprep.subr.bf16.mxu1 %v7349_v61  ;;  %v7428_v57 = vcombine.low %v1898_v5, %v1906_v36  ;;  %v7430_v61 = vcombine.low %v1899_v45, %v1907_v40  ;;  %v7447_v28 = vcombine.high %v1915_v42, %v1923_v6  ;;  %v1986_v5 = vld [vmem:[#allocation11 + $0xbd8] sm:$0xff]  ;;  %v1979_v40 = vld [vmem:[#allocation11 + $0xba0] sm:$0xff] }
 0x6ab   :  { %5139 = vmatprep.subr.bf16.mxu0 %v7351_v60  ;;  %v7445_v60 = vcombine.high %v1914_v46, %v1922_v25 }
 0x6ad   :  { %5054 = vmatpush1.bf16.msra.mxu1 %v7348_v15  ;;  %v1939_v15 = vld [vmem:[#allocation11 + $0xa60] sm:$0xff] }
 0x6ae   :  { %5140 = vmatpush1.bf16.msra.mxu0 %v7350_v29  ;;  %5055 = vmatprep.subr.bf16.mxu1 %v7365_v26  ;;  %v7444_v29 = vcombine.low %v1914_v46, %v1922_v25  ;;  %v7446_v26 = vcombine.low %v1915_v42, %v1923_v6  ;;  %v7463_v49 = vcombine.high %v1931_v31, %v1939_v15 }
 0x6af   :  { %5141 = vmatprep.subr.bf16.mxu0 %v7367_v58  ;;  %v7461_v58 = vcombine.high %v1930_v33, %v1938_v39  ;;  %v7492_v46 = vcombine.low %v1962_v55, %v1970_v43 }
 0x6b1   :  { %5056 = vmatpush1.bf16.msra.mxu1 %v7364_v48  ;;  %v1955_v48 = vld [vmem:[#allocation11 + $0xae0] sm:$0xff] }
 0x6b2   :  { %5142 = vmatpush1.bf16.msra.mxu0 %v7366_v47  ;;  %5057 = vmatprep.subr.bf16.mxu1 %v7381_v9  ;;  %v7460_v47 = vcombine.low %v1930_v33, %v1938_v39  ;;  %v9170_v9 = vld [vmem:[#allocation13] sm:$0xff]  ;;  %v7479_v4 = vcombine.high %v1947_v8, %v1955_v48  ;;  %v7478_v20 = vcombine.low %v1947_v8, %v1955_v48 }
 0x6b3   :  { %5143 = vmatprep.subr.bf16.mxu0 %v7383_v10  ;;  %v7462_v10 = vcombine.low %v1931_v31, %v1939_v15  ;;  %v2136_v19 = vrot.slane %v9170_v9, %v8818_v56  ;;  %v1994_v31 = vld [vmem:[#allocation11 + $0xc18] sm:$0xff] }
 0x6b4   :  { %v2002_v15 = vld [vmem:[#allocation11 + $0xc58] sm:$0xff] }
 0x6b5   :  { %5058 = vmatpush1.bf16.msra.mxu1 %v7380_v30  ;;  %v2132_v30 = vrot.slane %v9170_v9, %v8816_v54 }
 0x6b6   :  { %5144 = vmatpush1.bf16.msra.mxu0 %v7382_v32  ;;  %5070 = vmatprep.subr.bf16.mxu1 %v7397_v11  ;;  %v1963_v32 = vld [vmem:[#allocation11 + $0xb20] sm:$0xff] }
 0x6b7   :  { %5156 = vmatprep.subr.bf16.mxu0 %v7399_v17  ;;  %v1971_v11 = vld [vmem:[#allocation11 + $0xb60] sm:$0xff]  ;;  %v7476_v17 = vcombine.low %v1946_v63, %v1954_v7 }
 0x6b8   :  { %5060 = vmatmul.mubr.bf16.vlgmr.msra.gmra.mrb[40].mxu1 %v9138_v27  ;;  %v7494_v25 = vcombine.low %v1963_v32, %v1971_v11 }
 0x6b9   :  { %5146 = vmatmul.mubr.bf16.vlgmr.msra.gmra.mrb[52].mxu0 %v9138_v27  ;;  %5071 = vmatpush1.bf16.msra.mxu1 %v7396_v22  ;;  %v7493_v22 = vcombine.high %v1962_v55, %v1970_v43  ;;  %v2010_v55 = vld [vmem:[#allocation11 + $0xc98] sm:$0xff] }
 0x6ba   :  { %5102 = vmatprep.mubr.bf16.mxu1 %v9144_v1  ;;  %5157 = vmatpush1.bf16.msra.mxu0 %v7398_v34  ;;  %v7495_v34 = vcombine.high %v1963_v32, %v1971_v11  ;;  %v2018_v43 = vld [vmem:[#allocation11 + $0xcd8] sm:$0xff]  ;;  %v2011_v32 = vld [vmem:[#allocation11 + $0xca0] sm:$0xff] }
 0x6bb   :  { %5188 = vmatprep.mubr.bf16.mxu0 %v9144_v1  ;;  %5072 = vmatprep.subr.bf16.mxu1 %v7413_v35  ;;  %v1978_v35 = vld [vmem:[#allocation11 + $0xb98] sm:$0xff]  ;;  %v2019_v11 = vld [vmem:[#allocation11 + $0xce0] sm:$0xff] }
 0x6bc   :  { %5158 = vmatprep.subr.bf16.mxu0 %v7415_v3  ;;  %v7508_v63 = vcombine.low %v1978_v35, %v1986_v5 }
 0x6bd   :  { %5073 = vmatpush1.bf16.msra.mxu1 %v7412_v59  ;;  %v1987_v59 = vld [vmem:[#allocation11 + $0xbe0] sm:$0xff] }
 0x6be   :  { %5159 = vmatpush1.bf16.msra.mxu0 %v7414_v52  ;;  %5074 = vmatprep.subr.bf16.mxu1 %v7429_v24  ;;  %v7511_v39 = vcombine.high %v1979_v40, %v1987_v59  ;;  %v7510_v48 = vcombine.low %v1979_v40, %v1987_v59  ;;  %v2042_v59 = vld [vmem:[#allocation11 + $0xd98] sm:$0xff] }
 0x6bf   :  { %5160 = vmatprep.subr.bf16.mxu0 %v7431_v12 }
 0x6c1   :  { %5075 = vmatpush1.bf16.msra.mxu1 %v7428_v57 }
 0x6c2   :  { %5161 = vmatpush1.bf16.msra.mxu0 %v7430_v61  ;;  %5076 = vmatprep.subr.bf16.mxu1 %v7445_v60  ;;  %v7509_v60 = vcombine.high %v1978_v35, %v1986_v5  ;;  %v2027_v35 = vld [vmem:[#allocation11 + $0xd20] sm:$0xff] }
 0x6c3   :  { %5162 = vmatprep.subr.bf16.mxu0 %v7447_v28  ;;  %v2035_v5 = vld [vmem:[#allocation11 + $0xd60] sm:$0xff] }
 0x6c4   :  { %v7559_v40 = vcombine.high %v2027_v35, %v2035_v5 }
 0x6c5   :  { %5077 = vmatpush1.bf16.msra.mxu1 %v7444_v29 }
 0x6c6   :  { %5163 = vmatpush1.bf16.msra.mxu0 %v7446_v26  ;;  %5078 = vmatprep.subr.bf16.mxu1 %v7461_v58  ;;  %v1995_v26 = vld [vmem:[#allocation11 + $0xc20] sm:$0xff] }
 0x6c7   :  { %5164 = vmatprep.subr.bf16.mxu0 %v7463_v49  ;;  %v2003_v58 = vld [vmem:[#allocation11 + $0xc60] sm:$0xff] }
 0x6c9   :  { %5079 = vmatpush1.bf16.msra.mxu1 %v7460_v47  ;;  %v7525_v47 = vcombine.high %v1994_v31, %v2002_v15 }
 0x6ca   :  { %5165 = vmatpush1.bf16.msra.mxu0 %v7462_v10  ;;  %5080 = vmatprep.subr.bf16.mxu1 %v7477_v13 }
 0x6cb   :  { %v4803_v44 = vpop.f32.mrb[32].mxu1  ;;  %v4846_v23 = vpop.f32.mrb[44].mxu0  ;;  %5166 = vmatprep.subr.bf16.mxu0 %v7479_v4  ;;  %v7527_v4 = vcombine.high %v1995_v26, %v2003_v58 }
 0x6cc   :  { %v4804_v36 = vadd.f32 %v4803_v44, %v2132_v30  ;;  %v4805_v3 = vpop.f32.mrb[33].mxu1  ;;  %v4848_v45 = vpop.f32.mrb[45].mxu0  ;;  %v7543_v44 = vcombine.high %v2011_v32, %v2019_v11 }
 0x6cd   :  { %v4806_v52 = vadd.f32 %v4805_v3, %v2136_v19  ;;  %5081 = vmatpush1.bf16.msra.mxu1 %v7476_v17  ;;  %v4807_v24 = vpop.f32.mrb[34].mxu1  ;;  %v4850_v12 = vpop.f32.mrb[46].mxu0  ;;  %v7542_v3 = vcombine.low %v2011_v32, %v2019_v11 }
 0x6ce   :  { %v4847_v42 = vadd.f32 %v4846_v23, %v4804_v36  ;;  %5167 = vmatpush1.bf16.msra.mxu0 %v7478_v20  ;;  %v4808_v6 = vadd.f32 %v4807_v24, %v2132_v30  ;;  %v4809_v57 = vpop.f32.mrb[35].mxu1  ;;  %v4852_v61 = vpop.f32.mrb[47].mxu0  ;;  %5082 = vmatprep.subr.bf16.mxu1 %v7493_v22  ;;  %v7526_v20 = vcombine.low %v1995_v26, %v2003_v58  ;;  %v2026_v23 = vld [vmem:[#allocation11 + $0xd18] sm:$0xff]  ;;  %v2043_v24 = vld [vmem:[#allocation11 + $0xda0] sm:$0xff] }
 0x6cf   :  { %v4849_v28 = vadd.f32 %v4848_v45, %v4806_v52  ;;  %v4810_v33 = vadd.f32 %v4809_v57, %v2136_v19  ;;  %5168 = vmatprep.subr.bf16.mxu0 %v7495_v34  ;;  %v7524_v19 = vcombine.low %v1994_v31, %v2002_v15  ;;  %v7541_v22 = vcombine.high %v2010_v55, %v2018_v43  ;;  %v2034_v34 = vld [vmem:[#allocation11 + $0xd58] sm:$0xff]  ;;  %v2075_v58 = vld [vmem:[#allocation11 + $0xea0] sm:$0xff] }
 0x6d0   :  { %v4851_v29 = vadd.f32 %v4850_v12, %v4808_v6  ;;  %v5457_v7 = vmul.f32 0.088388346, %v4847_v42  ;;  %v7540_v36 = vcombine.low %v2010_v55, %v2018_v43  ;;  %v7557_v45 = vcombine.high %v2026_v23, %v2034_v34  ;;  %v2050_v52 = vld [vmem:[#allocation11 + $0xdd8] sm:$0xff]  ;;  %v2051_v12 = vld [vmem:[#allocation11 + $0xde0] sm:$0xff] }
 0x6d1   :  { %v4853_v49 = vadd.f32 %v4852_v61, %v4810_v33  ;;  %5083 = vmatpush1.bf16.msra.mxu1 %v7492_v46  ;;  %v5458_v10 = vmul.f32 0.088388346, %v4849_v28  ;;  %v7556_v46 = vcombine.low %v2026_v23, %v2034_v34  ;;  %v7573_v42 = vcombine.high %v2042_v59, %v2050_v52  ;;  %v2058_v57 = vld [vmem:[#allocation11 + $0xe18] sm:$0xff]  ;;  %v2067_v28 = vld [vmem:[#allocation11 + $0xe60] sm:$0xff] }
 0x6d2   :  { %v5461_v8 = vmul.f32 0.088388346, %v4851_v29  ;;  %5169 = vmatpush1.bf16.msra.mxu0 %v7494_v25  ;;  %5084 = vmatprep.subr.bf16.mxu1 %v7509_v60  ;;  %v7558_v25 = vcombine.low %v2027_v35, %v2035_v5  ;;  %v7575_v6 = vcombine.high %v2043_v24, %v2051_v12  ;;  %v2066_v61 = vld [vmem:[#allocation11 + $0xe58] sm:$0xff]  ;;  %v2059_v60 = vld [vmem:[#allocation11 + $0xe20] sm:$0xff]  ;;  %v7572_v33 = vcombine.low %v2042_v59, %v2050_v52 }
 0x6d3   :  { %v5462_v13 = vmul.f32 0.088388346, %v4853_v49  ;;  %5170 = vmatprep.subr.bf16.mxu0 %v7511_v39  ;;  %v7574_v39 = vcombine.low %v2043_v24, %v2051_v12  ;;  %v7589_v31 = vcombine.high %v2058_v57, %v2066_v61  ;;  %v7591_v15 = vcombine.high %v2059_v60, %v2067_v28  ;;  %v2074_v29 = vld [vmem:[#allocation11 + $0xe98] sm:$0xff]  ;;  %v2083_v49 = vld [vmem:[#allocation11 + $0xee0] sm:$0xff] }
 0x6d4   :  { %v9176_v30 = vpack.c.bf16 %v5461_v8, %v5457_v7  ;;  %v2082_v26 = vld [vmem:[#allocation11 + $0xed8] sm:$0xff]  ;;  %v7590_v7 = vcombine.low %v2059_v60, %v2067_v28  ;;  %v7606_v43 = vcombine.low %v2075_v58, %v2083_v49  ;;  %v1644_v28 = vld [vmem:[#allocation11 + $0x128] sm:$0xff] }
 0x6d5   :  { %v9178_v17 = vpack.c.bf16 %v5462_v13, %v5458_v10  ;;  %5085 = vmatpush1.bf16.msra.mxu1 %v7508_v63  ;;  %v7588_v63 = vcombine.low %v2058_v57, %v2066_v61  ;;  %v7605_v8 = vcombine.high %v2074_v29, %v2082_v26  ;;  %v2098_v10 = vld [vmem:[#allocation11 + $0xf58] sm:$0xff]  ;;  %v2091_v13 = vld [vmem:[#allocation11 + $0xf20] sm:$0xff]  ;;  %v7604_v55 = vcombine.low %v2074_v29, %v2082_v26  ;;  %v1637_v57 = vld [vmem:[#allocation11 + $0xf0] sm:$0xff] }
 0x6d6   :  { %5171 = vmatpush1.bf16.msra.mxu0 %v7510_v48  ;;  %5086 = vmatprep.subr.bf16.mxu1 %v7525_v47  ;;  %v7607_v48 = vcombine.high %v2075_v58, %v2083_v49  ;;  %v2090_v47 = vld [vmem:[#allocation11 + $0xf18] sm:$0xff] }
 0x6d7   :  { %5172 = vmatprep.subr.bf16.mxu0 %v7527_v4  ;;  %v2099_v4 = vld [vmem:[#allocation11 + $0xf60] sm:$0xff]  ;;  %v7621_v32 = vcombine.high %v2090_v47, %v2098_v10  ;;  %v7620_v23 = vcombine.low %v2090_v47, %v2098_v10 }
 0x6d8   :  { %v7623_v11 = vcombine.high %v2091_v13, %v2099_v4  ;;  %v7622_v34 = vcombine.low %v2091_v13, %v2099_v4 }
 0x6d9   :  { %5087 = vmatpush1.bf16.msra.mxu1 %v7524_v19  ;;  %v2106_v19 = vld [vmem:[#allocation11 + $0xf98] sm:$0xff] }
 0x6da   :  { %5173 = vmatpush1.bf16.msra.mxu0 %v7526_v20  ;;  %5088 = vmatprep.subr.bf16.mxu1 %v7541_v22  ;;  %v2114_v20 = vld [vmem:[#allocation11 + $0xfd8] sm:$0xff]  ;;  %v2107_v22 = vld [vmem:[#allocation11 + $0xfa0] sm:$0xff] }
 0x6db   :  { %5174 = vmatprep.subr.bf16.mxu0 %v7543_v44  ;;  %v2115_v44 = vld [vmem:[#allocation11 + $0xfe0] sm:$0xff]  ;;  %v7637_v35 = vcombine.high %v2106_v19, %v2114_v20  ;;  %v7636_v59 = vcombine.low %v2106_v19, %v2114_v20 }
 0x6dc   :  { %v7639_v5 = vcombine.high %v2107_v22, %v2115_v44  ;;  %v7638_v52 = vcombine.low %v2107_v22, %v2115_v44 }
 0x6dd   :  { %5089 = vmatpush1.bf16.msra.mxu1 %v7540_v36  ;;  %v1612_v36 = vld [vmem:[#allocation11 + $0x28] sm:$0xff] }
 0x6de   :  { %5175 = vmatpush1.bf16.msra.mxu0 %v7542_v3  ;;  %5090 = vmatprep.subr.bf16.mxu1 %v7557_v45  ;;  %v1620_v3 = vld [vmem:[#allocation11 + $0x68] sm:$0xff]  ;;  %v1613_v45 = vld [vmem:[#allocation11 + $0x30] sm:$0xff] }
 0x6df   :  { %5176 = vmatprep.subr.bf16.mxu0 %v7559_v40  ;;  %v1621_v40 = vld [vmem:[#allocation11 + $0x70] sm:$0xff]  ;;  %v7145_v24 = vcombine.high %v1612_v36, %v1620_v3 }
 0x6e0   :  { %v7147_v12 = vcombine.high %v1613_v45, %v1621_v40  ;;  %v7146_v61 = vcombine.low %v1613_v45, %v1621_v40 }
 0x6e1   :  { %5091 = vmatpush1.bf16.msra.mxu1 %v7556_v46  ;;  %v1628_v46 = vld [vmem:[#allocation11 + $0xa8] sm:$0xff] }
 0x6e2   :  { %5177 = vmatpush1.bf16.msra.mxu0 %v7558_v25  ;;  %5092 = vmatprep.subr.bf16.mxu1 %v7573_v42  ;;  %v1636_v25 = vld [vmem:[#allocation11 + $0xe8] sm:$0xff]  ;;  %v7144_v42 = vcombine.low %v1612_v36, %v1620_v3 }
 0x6e3   :  { %5178 = vmatprep.subr.bf16.mxu0 %v7575_v6  ;;  %v1629_v6 = vld [vmem:[#allocation11 + $0xb0] sm:$0xff]  ;;  %v7161_v60 = vcombine.high %v1628_v46, %v1636_v25  ;;  %v7160_v29 = vcombine.low %v1628_v46, %v1636_v25 }
 0x6e4   :  { %v7162_v26 = vcombine.low %v1629_v6, %v1637_v57 }
 0x6e5   :  { %5093 = vmatpush1.bf16.msra.mxu1 %v7572_v33  ;;  %v1652_v33 = vld [vmem:[#allocation11 + $0x168] sm:$0xff] }
 0x6e6   :  { %5179 = vmatpush1.bf16.msra.mxu0 %v7574_v39  ;;  %5094 = vmatprep.subr.bf16.mxu1 %v7589_v31  ;;  %v7163_v39 = vcombine.high %v1629_v6, %v1637_v57  ;;  %v1645_v31 = vld [vmem:[#allocation11 + $0x130] sm:$0xff]  ;;  %v7177_v58 = vcombine.high %v1644_v28, %v1652_v33  ;;  %v7176_v47 = vcombine.low %v1644_v28, %v1652_v33  ;;  %v1724_v57 = vld [vmem:[#allocation11 + $0x3a8] sm:$0xff] }
 0x6e7   :  { %5180 = vmatprep.subr.bf16.mxu0 %v7591_v15  ;;  %v1653_v15 = vld [vmem:[#allocation11 + $0x170] sm:$0xff] }
 0x6e8   :  { %v7179_v49 = vcombine.high %v1645_v31, %v1653_v15  ;;  %v7178_v10 = vcombine.low %v1645_v31, %v1653_v15  ;;  %v1733_v28 = vld [vmem:[#allocation11 + $0x3f0] sm:$0xff] }
 0x6e9   :  { %5095 = vmatpush1.bf16.msra.mxu1 %v7588_v63  ;;  %v1660_v63 = vld [vmem:[#allocation11 + $0x1a8] sm:$0xff] }
 0x6ea   :  { %5181 = vmatpush1.bf16.msra.mxu0 %v7590_v7  ;;  %5096 = vmatprep.subr.bf16.mxu1 %v7605_v8  ;;  %v1668_v7 = vld [vmem:[#allocation11 + $0x1e8] sm:$0xff]  ;;  %v1661_v8 = vld [vmem:[#allocation11 + $0x1b0] sm:$0xff] }
 0x6eb   :  { %5182 = vmatprep.subr.bf16.mxu0 %v7607_v48  ;;  %v1669_v48 = vld [vmem:[#allocation11 + $0x1f0] sm:$0xff]  ;;  %v7193_v13 = vcombine.high %v1660_v63, %v1668_v7  ;;  %v7192_v19 = vcombine.low %v1660_v63, %v1668_v7 }
 0x6ec   :  { %v7195_v4 = vcombine.high %v1661_v8, %v1669_v48  ;;  %v7194_v20 = vcombine.low %v1661_v8, %v1669_v48 }
 0x6ed   :  { %5097 = vmatpush1.bf16.msra.mxu1 %v7604_v55  ;;  %v1676_v55 = vld [vmem:[#allocation11 + $0x228] sm:$0xff] }
 0x6ee   :  { %5183 = vmatpush1.bf16.msra.mxu0 %v7606_v43  ;;  %5098 = vmatprep.subr.bf16.mxu1 %v7621_v32  ;;  %v1684_v43 = vld [vmem:[#allocation11 + $0x268] sm:$0xff]  ;;  %v1677_v32 = vld [vmem:[#allocation11 + $0x230] sm:$0xff] }
 0x6ef   :  { %5184 = vmatprep.subr.bf16.mxu0 %v7623_v11  ;;  %v1685_v11 = vld [vmem:[#allocation11 + $0x270] sm:$0xff]  ;;  %v7209_v22 = vcombine.high %v1676_v55, %v1684_v43  ;;  %v7208_v36 = vcombine.low %v1676_v55, %v1684_v43 }
 0x6f0   :  { %v7211_v44 = vcombine.high %v1677_v32, %v1685_v11  ;;  %v7210_v3 = vcombine.low %v1677_v32, %v1685_v11 }
 0x6f1   :  { %5099 = vmatpush1.bf16.msra.mxu1 %v7620_v23  ;;  %v1692_v23 = vld [vmem:[#allocation11 + $0x2a8] sm:$0xff] }
 0x6f2   :  { %5185 = vmatpush1.bf16.msra.mxu0 %v7622_v34  ;;  %5100 = vmatprep.subr.bf16.mxu1 %v7637_v35  ;;  %v1700_v34 = vld [vmem:[#allocation11 + $0x2e8] sm:$0xff]  ;;  %v1693_v35 = vld [vmem:[#allocation11 + $0x2b0] sm:$0xff] }
 0x6f3   :  { %5186 = vmatprep.subr.bf16.mxu0 %v7639_v5  ;;  %v1701_v5 = vld [vmem:[#allocation11 + $0x2f0] sm:$0xff]  ;;  %v7225_v45 = vcombine.high %v1692_v23, %v1700_v34  ;;  %v7224_v46 = vcombine.low %v1692_v23, %v1700_v34 }
 0x6f4   :  { %v7227_v40 = vcombine.high %v1693_v35, %v1701_v5  ;;  %v7226_v25 = vcombine.low %v1693_v35, %v1701_v5 }
 0x6f5   :  { %5101 = vmatpush1.bf16.msra.mxu1 %v7636_v59  ;;  %v1708_v59 = vld [vmem:[#allocation11 + $0x328] sm:$0xff] }
 0x6f6   :  { %5187 = vmatpush1.bf16.msra.mxu0 %v7638_v52  ;;  %5199 = vmatprep.subr.bf16.mxu1 %v7145_v24  ;;  %v1716_v52 = vld [vmem:[#allocation11 + $0x368] sm:$0xff]  ;;  %v1709_v24 = vld [vmem:[#allocation11 + $0x330] sm:$0xff] }
 0x6f7   :  { %5285 = vmatprep.subr.bf16.mxu0 %v7147_v12  ;;  %v1717_v12 = vld [vmem:[#allocation11 + $0x370] sm:$0xff]  ;;  %v7240_v33 = vcombine.low %v1708_v59, %v1716_v52 }
 0x6f8   :  { %5103 = vmatmul.mubr.bf16.vlgmr.msra.gmra.mrb[40].mxu1 %v9140_v51  ;;  %v7243_v6 = vcombine.high %v1709_v24, %v1717_v12 }
 0x6f9   :  { %5189 = vmatmul.mubr.bf16.vlgmr.msra.gmra.mrb[52].mxu0 %v9140_v51  ;;  %5200 = vmatpush1.bf16.msra.mxu1 %v7144_v42  ;;  %v7241_v42 = vcombine.high %v1708_v59, %v1716_v52 }
 0x6fa   :  { %5231 = vmatprep.mubr.bf16.mxu1 %v9142_v53  ;;  %5286 = vmatpush1.bf16.msra.mxu0 %v7146_v61  ;;  %v1732_v61 = vld [vmem:[#allocation11 + $0x3e8] sm:$0xff] }
 0x6fb   :  { %5317 = vmatprep.mubr.bf16.mxu0 %v9142_v53  ;;  %5201 = vmatprep.subr.bf16.mxu1 %v7161_v60  ;;  %v1725_v60 = vld [vmem:[#allocation11 + $0x3b0] sm:$0xff]  ;;  %v7257_v31 = vcombine.high %v1724_v57, %v1732_v61  ;;  %v7256_v63 = vcombine.low %v1724_v57, %v1732_v61 }
 0x6fc   :  { %5287 = vmatprep.subr.bf16.mxu0 %v7163_v39  ;;  %v7242_v39 = vcombine.low %v1709_v24, %v1717_v12  ;;  %v7259_v15 = vcombine.high %v1725_v60, %v1733_v28  ;;  %v7258_v7 = vcombine.low %v1725_v60, %v1733_v28 }
 0x6fd   :  { %5202 = vmatpush1.bf16.msra.mxu1 %v7160_v29  ;;  %v1740_v29 = vld [vmem:[#allocation11 + $0x428] sm:$0xff] }
 0x6fe   :  { %5288 = vmatpush1.bf16.msra.mxu0 %v7162_v26  ;;  %5203 = vmatprep.subr.bf16.mxu1 %v7177_v58  ;;  %v1748_v26 = vld [vmem:[#allocation11 + $0x468] sm:$0xff]  ;;  %v1741_v58 = vld [vmem:[#allocation11 + $0x430] sm:$0xff] }
 0x6ff   :  { %5289 = vmatprep.subr.bf16.mxu0 %v7179_v49  ;;  %v1749_v49 = vld [vmem:[#allocation11 + $0x470] sm:$0xff]  ;;  %v7273_v8 = vcombine.high %v1740_v29, %v1748_v26  ;;  %v7272_v55 = vcombine.low %v1740_v29, %v1748_v26 }
 0x700   :  { %v7275_v48 = vcombine.high %v1741_v58, %v1749_v49  ;;  %v7274_v43 = vcombine.low %v1741_v58, %v1749_v49 }
 0x701   :  { %5204 = vmatpush1.bf16.msra.mxu1 %v7176_v47  ;;  %v1756_v47 = vld [vmem:[#allocation11 + $0x4a8] sm:$0xff] }
 0x702   :  { %5290 = vmatpush1.bf16.msra.mxu0 %v7178_v10  ;;  %5205 = vmatprep.subr.bf16.mxu1 %v7193_v13  ;;  %v1764_v10 = vld [vmem:[#allocation11 + $0x4e8] sm:$0xff]  ;;  %v1757_v13 = vld [vmem:[#allocation11 + $0x4b0] sm:$0xff] }
 0x703   :  { %5291 = vmatprep.subr.bf16.mxu0 %v7195_v4  ;;  %v1765_v4 = vld [vmem:[#allocation11 + $0x4f0] sm:$0xff]  ;;  %v7289_v32 = vcombine.high %v1756_v47, %v1764_v10  ;;  %v7288_v23 = vcombine.low %v1756_v47, %v1764_v10 }
 0x704   :  { %v7291_v11 = vcombine.high %v1757_v13, %v1765_v4  ;;  %v7290_v34 = vcombine.low %v1757_v13, %v1765_v4 }
 0x705   :  { %5206 = vmatpush1.bf16.msra.mxu1 %v7192_v19  ;;  %v1772_v19 = vld [vmem:[#allocation11 + $0x528] sm:$0xff] }
 0x706   :  { %5292 = vmatpush1.bf16.msra.mxu0 %v7194_v20  ;;  %5207 = vmatprep.subr.bf16.mxu1 %v7209_v22  ;;  %v1780_v20 = vld [vmem:[#allocation11 + $0x568] sm:$0xff]  ;;  %v1773_v22 = vld [vmem:[#allocation11 + $0x530] sm:$0xff] }
 0x707   :  { %5293 = vmatprep.subr.bf16.mxu0 %v7211_v44  ;;  %v1781_v44 = vld [vmem:[#allocation11 + $0x570] sm:$0xff]  ;;  %v7305_v35 = vcombine.high %v1772_v19, %v1780_v20  ;;  %v7304_v59 = vcombine.low %v1772_v19, %v1780_v20 }
 0x708   :  { %v7307_v5 = vcombine.high %v1773_v22, %v1781_v44  ;;  %v7306_v52 = vcombine.low %v1773_v22, %v1781_v44 }
 0x709   :  { %5208 = vmatpush1.bf16.msra.mxu1 %v7208_v36  ;;  %v1788_v36 = vld [vmem:[#allocation11 + $0x5a8] sm:$0xff] }
 0x70a   :  { %5294 = vmatpush1.bf16.msra.mxu0 %v7210_v3  ;;  %5209 = vmatprep.subr.bf16.mxu1 %v7225_v45  ;;  %v1796_v3 = vld [vmem:[#allocation11 + $0x5e8] sm:$0xff]  ;;  %v1789_v45 = vld [vmem:[#allocation11 + $0x5b0] sm:$0xff] }
 0x70b   :  { %5295 = vmatprep.subr.bf16.mxu0 %v7227_v40  ;;  %v1797_v40 = vld [vmem:[#allocation11 + $0x5f0] sm:$0xff]  ;;  %v7321_v24 = vcombine.high %v1788_v36, %v1796_v3  ;;  %v7320_v57 = vcombine.low %v1788_v36, %v1796_v3 }
 0x70c   :  { %v7323_v12 = vcombine.high %v1789_v45, %v1797_v40  ;;  %v7322_v61 = vcombine.low %v1789_v45, %v1797_v40 }
 0x70d   :  { %5210 = vmatpush1.bf16.msra.mxu1 %v7224_v46  ;;  %v1804_v46 = vld [vmem:[#allocation11 + $0x628] sm:$0xff] }
 0x70e   :  { %5296 = vmatpush1.bf16.msra.mxu0 %v7226_v25  ;;  %5211 = vmatprep.subr.bf16.mxu1 %v7241_v42  ;;  %v1812_v25 = vld [vmem:[#allocation11 + $0x668] sm:$0xff]  ;;  %v1805_v42 = vld [vmem:[#allocation11 + $0x630] sm:$0xff] }
 0x70f   :  { %5297 = vmatprep.subr.bf16.mxu0 %v7243_v6  ;;  %v1813_v6 = vld [vmem:[#allocation11 + $0x670] sm:$0xff]  ;;  %v7337_v60 = vcombine.high %v1804_v46, %v1812_v25  ;;  %v7336_v29 = vcombine.low %v1804_v46, %v1812_v25 }
 0x710   :  { %v7339_v28 = vcombine.high %v1805_v42, %v1813_v6  ;;  %v7338_v26 = vcombine.low %v1805_v42, %v1813_v6  ;;  %v1893_v46 = vld [vmem:[#allocation11 + $0x8f0] sm:$0xff]  ;;  %v1900_v6 = vld [vmem:[#allocation11 + $0x928] sm:$0xff] }
 0x711   :  { %5212 = vmatpush1.bf16.msra.mxu1 %v7240_v33  ;;  %v1820_v33 = vld [vmem:[#allocation11 + $0x6a8] sm:$0xff] }
 0x712   :  { %5298 = vmatpush1.bf16.msra.mxu0 %v7242_v39  ;;  %5213 = vmatprep.subr.bf16.mxu1 %v7257_v31  ;;  %v1828_v39 = vld [vmem:[#allocation11 + $0x6e8] sm:$0xff]  ;;  %v1821_v31 = vld [vmem:[#allocation11 + $0x6b0] sm:$0xff] }
 0x713   :  { %5299 = vmatprep.subr.bf16.mxu0 %v7259_v15  ;;  %v1829_v15 = vld [vmem:[#allocation11 + $0x6f0] sm:$0xff]  ;;  %v7353_v58 = vcombine.high %v1820_v33, %v1828_v39  ;;  %v7352_v47 = vcombine.low %v1820_v33, %v1828_v39 }
 0x714   :  { %v7355_v49 = vcombine.high %v1821_v31, %v1829_v15  ;;  %v7354_v10 = vcombine.low %v1821_v31, %v1829_v15 }
 0x715   :  { %5214 = vmatpush1.bf16.msra.mxu1 %v7256_v63  ;;  %v1836_v63 = vld [vmem:[#allocation11 + $0x728] sm:$0xff] }
 0x716   :  { %5300 = vmatpush1.bf16.msra.mxu0 %v7258_v7  ;;  %5215 = vmatprep.subr.bf16.mxu1 %v7273_v8  ;;  %v1844_v7 = vld [vmem:[#allocation11 + $0x768] sm:$0xff]  ;;  %v1837_v8 = vld [vmem:[#allocation11 + $0x730] sm:$0xff] }
 0x717   :  { %5301 = vmatprep.subr.bf16.mxu0 %v7275_v48  ;;  %v1845_v48 = vld [vmem:[#allocation11 + $0x770] sm:$0xff]  ;;  %v7369_v13 = vcombine.high %v1836_v63, %v1844_v7  ;;  %v7368_v19 = vcombine.low %v1836_v63, %v1844_v7 }
 0x718   :  { %v7371_v4 = vcombine.high %v1837_v8, %v1845_v48  ;;  %v7370_v20 = vcombine.low %v1837_v8, %v1845_v48 }
 0x719   :  { %5216 = vmatpush1.bf16.msra.mxu1 %v7272_v55  ;;  %v1852_v55 = vld [vmem:[#allocation11 + $0x7a8] sm:$0xff] }
 0x71a   :  { %5302 = vmatpush1.bf16.msra.mxu0 %v7274_v43  ;;  %5217 = vmatprep.subr.bf16.mxu1 %v7289_v32  ;;  %v1860_v43 = vld [vmem:[#allocation11 + $0x7e8] sm:$0xff]  ;;  %v1853_v32 = vld [vmem:[#allocation11 + $0x7b0] sm:$0xff] }
 0x71b   :  { %5303 = vmatprep.subr.bf16.mxu0 %v7291_v11  ;;  %v1861_v11 = vld [vmem:[#allocation11 + $0x7f0] sm:$0xff]  ;;  %v7385_v22 = vcombine.high %v1852_v55, %v1860_v43  ;;  %v7384_v36 = vcombine.low %v1852_v55, %v1860_v43 }
 0x71c   :  { %v7387_v44 = vcombine.high %v1853_v32, %v1861_v11  ;;  %v7386_v3 = vcombine.low %v1853_v32, %v1861_v11 }
 0x71d   :  { %5218 = vmatpush1.bf16.msra.mxu1 %v7288_v23  ;;  %v1868_v23 = vld [vmem:[#allocation11 + $0x828] sm:$0xff] }
 0x71e   :  { %5304 = vmatpush1.bf16.msra.mxu0 %v7290_v34  ;;  %5219 = vmatprep.subr.bf16.mxu1 %v7305_v35  ;;  %v1876_v34 = vld [vmem:[#allocation11 + $0x868] sm:$0xff]  ;;  %v1869_v35 = vld [vmem:[#allocation11 + $0x830] sm:$0xff] }
 0x71f   :  { %5305 = vmatprep.subr.bf16.mxu0 %v7307_v5  ;;  %v1877_v5 = vld [vmem:[#allocation11 + $0x870] sm:$0xff]  ;;  %v7401_v45 = vcombine.high %v1868_v23, %v1876_v34 }
 0x720   :  { %v7403_v40 = vcombine.high %v1869_v35, %v1877_v5  ;;  %v7402_v25 = vcombine.low %v1869_v35, %v1877_v5 }
 0x721   :  { %5220 = vmatpush1.bf16.msra.mxu1 %v7304_v59  ;;  %v1884_v59 = vld [vmem:[#allocation11 + $0x8a8] sm:$0xff] }
 0x722   :  { %5306 = vmatpush1.bf16.msra.mxu0 %v7306_v52  ;;  %5221 = vmatprep.subr.bf16.mxu1 %v7321_v24  ;;  %v1892_v52 = vld [vmem:[#allocation11 + $0x8e8] sm:$0xff]  ;;  %v7400_v24 = vcombine.low %v1868_v23, %v1876_v34 }
 0x723   :  { %5307 = vmatprep.subr.bf16.mxu0 %v7323_v12  ;;  %v1885_v12 = vld [vmem:[#allocation11 + $0x8b0] sm:$0xff]  ;;  %v7417_v42 = vcombine.high %v1884_v59, %v1892_v52  ;;  %v7416_v33 = vcombine.low %v1884_v59, %v1892_v52  ;;  %v2144_v52 = vrot.slane %v9170_v9, %v8824_v2 }
 0x724   :  { %v7418_v39 = vcombine.low %v1885_v12, %v1893_v46  ;;  %v1973_v59 = vld [vmem:[#allocation11 + $0xb70] sm:$0xff] }
 0x725   :  { %5222 = vmatpush1.bf16.msra.mxu1 %v7320_v57  ;;  %v1908_v57 = vld [vmem:[#allocation11 + $0x968] sm:$0xff] }
 0x726   :  { %5308 = vmatpush1.bf16.msra.mxu0 %v7322_v61  ;;  %5223 = vmatprep.subr.bf16.mxu1 %v7337_v60  ;;  %v7419_v61 = vcombine.high %v1885_v12, %v1893_v46  ;;  %v1901_v60 = vld [vmem:[#allocation11 + $0x930] sm:$0xff]  ;;  %v7433_v31 = vcombine.high %v1900_v6, %v1908_v57  ;;  %v7432_v63 = vcombine.low %v1900_v6, %v1908_v57  ;;  %v1980_v57 = vld [vmem:[#allocation11 + $0xba8] sm:$0xff] }
 0x727   :  { %5309 = vmatprep.subr.bf16.mxu0 %v7339_v28  ;;  %v1909_v28 = vld [vmem:[#allocation11 + $0x970] sm:$0xff] }
 0x728   :  { %v7435_v15 = vcombine.high %v1901_v60, %v1909_v28  ;;  %v7434_v7 = vcombine.low %v1901_v60, %v1909_v28 }
 0x729   :  { %5224 = vmatpush1.bf16.msra.mxu1 %v7336_v29  ;;  %v1916_v29 = vld [vmem:[#allocation11 + $0x9a8] sm:$0xff] }
 0x72a   :  { %5310 = vmatpush1.bf16.msra.mxu0 %v7338_v26  ;;  %5225 = vmatprep.subr.bf16.mxu1 %v7353_v58  ;;  %v1924_v26 = vld [vmem:[#allocation11 + $0x9e8] sm:$0xff]  ;;  %v1917_v58 = vld [vmem:[#allocation11 + $0x9b0] sm:$0xff] }
 0x72b   :  { %5311 = vmatprep.subr.bf16.mxu0 %v7355_v49  ;;  %v1925_v49 = vld [vmem:[#allocation11 + $0x9f0] sm:$0xff]  ;;  %v7449_v8 = vcombine.high %v1916_v29, %v1924_v26  ;;  %v7448_v55 = vcombine.low %v1916_v29, %v1924_v26 }
 0x72c   :  { %v7451_v48 = vcombine.high %v1917_v58, %v1925_v49  ;;  %v7450_v43 = vcombine.low %v1917_v58, %v1925_v49 }
 0x72d   :  { %5226 = vmatpush1.bf16.msra.mxu1 %v7352_v47  ;;  %v1932_v47 = vld [vmem:[#allocation11 + $0xa28] sm:$0xff] }
 0x72e   :  { %5312 = vmatpush1.bf16.msra.mxu0 %v7354_v10  ;;  %5227 = vmatprep.subr.bf16.mxu1 %v7369_v13  ;;  %v1940_v10 = vld [vmem:[#allocation11 + $0xa68] sm:$0xff]  ;;  %v1933_v13 = vld [vmem:[#allocation11 + $0xa30] sm:$0xff] }
 0x72f   :  { %5313 = vmatprep.subr.bf16.mxu0 %v7371_v4  ;;  %v1941_v4 = vld [vmem:[#allocation11 + $0xa70] sm:$0xff]  ;;  %v7465_v32 = vcombine.high %v1932_v47, %v1940_v10  ;;  %v7464_v23 = vcombine.low %v1932_v47, %v1940_v10 }
 0x730   :  { %v7467_v11 = vcombine.high %v1933_v13, %v1941_v4  ;;  %v7466_v34 = vcombine.low %v1933_v13, %v1941_v4 }
 0x731   :  { %5228 = vmatpush1.bf16.msra.mxu1 %v7368_v19  ;;  %v1948_v19 = vld [vmem:[#allocation11 + $0xaa8] sm:$0xff] }
 0x732   :  { %5314 = vmatpush1.bf16.msra.mxu0 %v7370_v20  ;;  %5229 = vmatprep.subr.bf16.mxu1 %v7385_v22  ;;  %v1956_v20 = vld [vmem:[#allocation11 + $0xae8] sm:$0xff]  ;;  %v1949_v22 = vld [vmem:[#allocation11 + $0xab0] sm:$0xff] }
 0x733   :  { %5315 = vmatprep.subr.bf16.mxu0 %v7387_v44  ;;  %v1957_v44 = vld [vmem:[#allocation11 + $0xaf0] sm:$0xff]  ;;  %v7481_v35 = vcombine.high %v1948_v19, %v1956_v20 }
 0x734   :  { %v7483_v5 = vcombine.high %v1949_v22, %v1957_v44  ;;  %v7482_v12 = vcombine.low %v1949_v22, %v1957_v44 }
 0x735   :  { %5230 = vmatpush1.bf16.msra.mxu1 %v7384_v36  ;;  %v1964_v36 = vld [vmem:[#allocation11 + $0xb28] sm:$0xff] }
 0x736   :  { %5316 = vmatpush1.bf16.msra.mxu0 %v7386_v3  ;;  %5242 = vmatprep.subr.bf16.mxu1 %v7401_v45  ;;  %v1972_v3 = vld [vmem:[#allocation11 + $0xb68] sm:$0xff]  ;;  %v2140_v45 = vrot.slane %v9170_v9, %v8822_v62 }
 0x737   :  { %5328 = vmatprep.subr.bf16.mxu0 %v7403_v40  ;;  %v1965_v40 = vld [vmem:[#allocation11 + $0xb30] sm:$0xff]  ;;  %v7497_v46 = vcombine.high %v1964_v36, %v1972_v3  ;;  %v7496_v49 = vcombine.low %v1964_v36, %v1972_v3 }
 0x738   :  { %5232 = vmatmul.mubr.bf16.vlgmr.msra.gmra.mrb[44].mxu1 %v9138_v27  ;;  %v7499_v6 = vcombine.high %v1965_v40, %v1973_v59 }
 0x739   :  { %5318 = vmatmul.mubr.bf16.vlgmr.msra.gmra.mrb[56].mxu0 %v9138_v27  ;;  %5243 = vmatpush1.bf16.msra.mxu1 %v7400_v24  ;;  %v7480_v24 = vcombine.low %v1948_v19, %v1956_v20 }
 0x73a   :  { %5274 = vmatprep.mubr.bf16.mxu1 %v9144_v1  ;;  %5329 = vmatpush1.bf16.msra.mxu0 %v7402_v25 }
 0x73b   :  { %5360 = vmatprep.mubr.bf16.mxu0 %v9144_v1  ;;  %5244 = vmatprep.subr.bf16.mxu1 %v7417_v42  ;;  %v2148_v42 = vrot.slane %v9170_v9, %v8830_v18 }
 0x73c   :  { %5330 = vmatprep.subr.bf16.mxu0 %v7419_v61  ;;  %v1988_v61 = vld [vmem:[#allocation11 + $0xbe8] sm:$0xff] }
 0x73d   :  { %5245 = vmatpush1.bf16.msra.mxu1 %v7416_v33  ;;  %v7512_v47 = vcombine.low %v1980_v57, %v1988_v61  ;;  %v7513_v10 = vcombine.high %v1980_v57, %v1988_v61 }
 0x73e   :  { %5331 = vmatpush1.bf16.msra.mxu0 %v7418_v39  ;;  %5246 = vmatprep.subr.bf16.mxu1 %v7433_v31  ;;  %v2152_v39 = vrot.slane %v9170_v9, %v8832_v21  ;;  %v1981_v31 = vld [vmem:[#allocation11 + $0xbb0] sm:$0xff] }
 0x73f   :  { %5332 = vmatprep.subr.bf16.mxu0 %v7435_v15  ;;  %v1989_v15 = vld [vmem:[#allocation11 + $0xbf0] sm:$0xff] }
 0x740   :  { %v7514_v3 = vcombine.low %v1981_v31, %v1989_v15 }
 0x741   :  { %5247 = vmatpush1.bf16.msra.mxu1 %v7432_v63  ;;  %v7498_v63 = vcombine.low %v1965_v40, %v1973_v59 }
 0x742   :  { %5333 = vmatpush1.bf16.msra.mxu0 %v7434_v7  ;;  %5248 = vmatprep.subr.bf16.mxu1 %v7449_v8 }
 0x743   :  { %5334 = vmatprep.subr.bf16.mxu0 %v7451_v48 }
 0x745   :  { %5249 = vmatpush1.bf16.msra.mxu1 %v7448_v55 }
 0x746   :  { %5335 = vmatpush1.bf16.msra.mxu0 %v7450_v43  ;;  %5250 = vmatprep.subr.bf16.mxu1 %v7465_v32  ;;  %v7515_v43 = vcombine.high %v1981_v31, %v1989_v15  ;;  %v1996_v32 = vld [vmem:[#allocation11 + $0xc28] sm:$0xff]  ;;  %v2037_v31 = vld [vmem:[#allocation11 + $0xd70] sm:$0xff] }
 0x747   :  { %5336 = vmatprep.subr.bf16.mxu0 %v7467_v11  ;;  %v2004_v11 = vld [vmem:[#allocation11 + $0xc68] sm:$0xff] }
 0x748   :  { %v7529_v59 = vcombine.high %v1996_v32, %v2004_v11 }
 0x749   :  { %5251 = vmatpush1.bf16.msra.mxu1 %v7464_v23  ;;  %v1997_v23 = vld [vmem:[#allocation11 + $0xc30] sm:$0xff] }
 0x74a   :  { %5337 = vmatpush1.bf16.msra.mxu0 %v7466_v34  ;;  %5252 = vmatprep.subr.bf16.mxu1 %v7481_v35  ;;  %v2005_v34 = vld [vmem:[#allocation11 + $0xc70] sm:$0xff] }
 0x74b   :  { %v4932_v25 = vpop.f32.mrb[36].mxu1  ;;  %5338 = vmatprep.subr.bf16.mxu0 %v7483_v5  ;;  %v7530_v57 = vcombine.low %v1997_v23, %v2005_v34 }
 0x74c   :  { %v7894_v60 = vadd.f32 %v4932_v25, %v2140_v45  ;;  %v5018_v28 = vpop.f32.mrb[48].mxu0  ;;  %v4934_v33 = vpop.f32.mrb[37].mxu1  ;;  %v2013_v25 = vld [vmem:[#allocation11 + $0xcb0] sm:$0xff] }
 0x74d   :  { %v7895_v29 = vadd.f32 %v4934_v33, %v2144_v52  ;;  %v5020_v26 = vpop.f32.mrb[49].mxu0  ;;  %v4936_v58 = vpop.f32.mrb[38].mxu1  ;;  %5253 = vmatpush1.bf16.msra.mxu1 %v7480_v24  ;;  %v9196_v13 = vadd.f32 %v5018_v28, %v2148_v42  ;;  %v7531_v24 = vcombine.high %v1997_v23, %v2005_v34  ;;  %v2028_v28 = vld [vmem:[#allocation11 + $0xd28] sm:$0xff] }
 0x74e   :  { %v7896_v7 = vadd.f32 %v4936_v58, %v2140_v45  ;;  %v5022_v8 = vpop.f32.mrb[50].mxu0  ;;  %5339 = vmatpush1.bf16.msra.mxu0 %v7482_v12  ;;  %v4938_v48 = vpop.f32.mrb[39].mxu1  ;;  %5254 = vmatprep.subr.bf16.mxu1 %v7497_v46  ;;  %v5459_v19 = vmul.f32 0.088388346, %v7894_v60  ;;  %v9200_v20 = vadd.f32 %v5020_v26, %v2152_v39  ;;  %v2012_v12 = vld [vmem:[#allocation11 + $0xca8] sm:$0xff] }
 0x74f   :  { %v9198_v4 = vadd.f32 %v5022_v8, %v2148_v42  ;;  %v7897_v9 = vadd.f32 %v4938_v48, %v2144_v52  ;;  %v5024_v55 = vpop.f32.mrb[51].mxu0  ;;  %5340 = vmatprep.subr.bf16.mxu0 %v7499_v6  ;;  %v5460_v35 = vmul.f32 0.088388346, %v7895_v29  ;;  %v2020_v46 = vld [vmem:[#allocation11 + $0xce8] sm:$0xff]  ;;  %v2021_v42 = vld [vmem:[#allocation11 + $0xcf0] sm:$0xff]  ;;  %v7528_v6 = vcombine.low %v1996_v32, %v2004_v11 }
 0x750   :  { %v5463_v22 = vmul.f32 0.088388346, %v7896_v7  ;;  %v9202_v44 = vadd.f32 %v5024_v55, %v2152_v39  ;;  %v7545_v61 = vcombine.high %v2012_v12, %v2020_v46  ;;  %v7547_v60 = vcombine.high %v2013_v25, %v2021_v42  ;;  %v2036_v33 = vld [vmem:[#allocation11 + $0xd68] sm:$0xff]  ;;  %v2029_v39 = vld [vmem:[#allocation11 + $0xd30] sm:$0xff] }
 0x751   :  { %v5469_v5 = vpack.c.bf16 %v9198_v4, %v9196_v13  ;;  %v5464_v36 = vmul.f32 0.088388346, %v7897_v9  ;;  %5255 = vmatpush1.bf16.msra.mxu1 %v7496_v49  ;;  %v7544_v15 = vcombine.low %v2012_v12, %v2020_v46  ;;  %v7546_v29 = vcombine.low %v2013_v25, %v2021_v42  ;;  %v2044_v49 = vld [vmem:[#allocation11 + $0xda8] sm:$0xff]  ;;  %v2045_v7 = vld [vmem:[#allocation11 + $0xdb0] sm:$0xff] }
 0x752   :  { %v9206_v45 = vpack.c.bf16 %v5463_v22, %v5459_v19  ;;  %v5470_v40 = vpack.c.bf16 %v9202_v44, %v9200_v20  ;;  %5341 = vmatpush1.bf16.msra.mxu0 %v7498_v63  ;;  %5256 = vmatprep.subr.bf16.mxu1 %v7513_v10  ;;  %v7561_v26 = vcombine.high %v2028_v28, %v2036_v33  ;;  %v2052_v63 = vld [vmem:[#allocation11 + $0xde8] sm:$0xff]  ;;  %v2053_v8 = vld [vmem:[#allocation11 + $0xdf0] sm:$0xff]  ;;  %v1790_v44 = vld [vmem:[#allocation11 + $0x5b8] sm:$0xff] }
 0x753   :  { %v9210_v52 = vpack.c.bf16 %v5464_v36, %v5460_v35  ;;  %5342 = vmatprep.subr.bf16.mxu0 %v7515_v43  ;;  %v7563_v58 = vcombine.high %v2029_v39, %v2037_v31  ;;  %v7560_v48 = vcombine.low %v2028_v28, %v2036_v33  ;;  %v7577_v10 = vcombine.high %v2044_v49, %v2052_v63  ;;  %v2060_v55 = vld [vmem:[#allocation11 + $0xe28] sm:$0xff]  ;;  %v2061_v32 = vld [vmem:[#allocation11 + $0xe30] sm:$0xff] }
 0x754   :  { %v7579_v9 = vcombine.high %v2045_v7, %v2053_v8  ;;  %v2068_v43 = vld [vmem:[#allocation11 + $0xe68] sm:$0xff]  ;;  %v2069_v11 = vld [vmem:[#allocation11 + $0xe70] sm:$0xff]  ;;  %v7576_v19 = vcombine.low %v2044_v49, %v2052_v63  ;;  %v7578_v22 = vcombine.low %v2045_v7, %v2053_v8  ;;  %v1614_v8 = vld [vmem:[#allocation11 + $0x38] sm:$0xff] }
 0x755   :  { %5257 = vmatpush1.bf16.msra.mxu1 %v7512_v47  ;;  %v7562_v47 = vcombine.low %v2029_v39, %v2037_v31  ;;  %v7593_v23 = vcombine.high %v2060_v55, %v2068_v43  ;;  %v7595_v34 = vcombine.high %v2061_v32, %v2069_v11  ;;  %v2076_v35 = vld [vmem:[#allocation11 + $0xea8] sm:$0xff]  ;;  %v7594_v12 = vcombine.low %v2061_v32, %v2069_v11  ;;  %v1630_v32 = vld [vmem:[#allocation11 + $0xb8] sm:$0xff] }
 0x756   :  { %5343 = vmatpush1.bf16.msra.mxu0 %v7514_v3  ;;  %5258 = vmatprep.subr.bf16.mxu1 %v7529_v59  ;;  %v2084_v36 = vld [vmem:[#allocation11 + $0xee8] sm:$0xff]  ;;  %v2077_v3 = vld [vmem:[#allocation11 + $0xeb0] sm:$0xff]  ;;  %v1638_v11 = vld [vmem:[#allocation11 + $0xf8] sm:$0xff] }
 0x757   :  { %5344 = vmatprep.subr.bf16.mxu0 %v7531_v24  ;;  %v2085_v59 = vld [vmem:[#allocation11 + $0xef0] sm:$0xff]  ;;  %v7592_v24 = vcombine.low %v2060_v55, %v2068_v43  ;;  %v7609_v46 = vcombine.high %v2076_v35, %v2084_v36  ;;  %v2092_v42 = vld [vmem:[#allocation11 + $0xf28] sm:$0xff] }
 0x758   :  { %v7611_v25 = vcombine.high %v2077_v3, %v2085_v59  ;;  %v7610_v28 = vcombine.low %v2077_v3, %v2085_v59  ;;  %v2108_v31 = vld [vmem:[#allocation11 + $0xfa8] sm:$0xff] }
 0x759   :  { %5259 = vmatpush1.bf16.msra.mxu1 %v7528_v6  ;;  %v2100_v6 = vld [vmem:[#allocation11 + $0xf68] sm:$0xff] }
 0x75a   :  { %5345 = vmatpush1.bf16.msra.mxu0 %v7530_v57  ;;  %5260 = vmatprep.subr.bf16.mxu1 %v7545_v61  ;;  %v2093_v57 = vld [vmem:[#allocation11 + $0xf30] sm:$0xff]  ;;  %v7625_v33 = vcombine.high %v2092_v42, %v2100_v6 }
 0x75b   :  { %5346 = vmatprep.subr.bf16.mxu0 %v7547_v60  ;;  %v2101_v61 = vld [vmem:[#allocation11 + $0xf70] sm:$0xff]  ;;  %v7608_v60 = vcombine.low %v2076_v35, %v2084_v36  ;;  %v7164_v35 = vcombine.low %v1630_v32, %v1638_v11  ;;  %v2122_v36 = vld [vmem:[#allocation14 + $0x8] sm:$0xff] }
 0x75c   :  { %v7627_v39 = vcombine.high %v2093_v57, %v2101_v61  ;;  %v7626_v49 = vcombine.low %v2093_v57, %v2101_v61  ;;  %v1686_v57 = vld [vmem:[#allocation11 + $0x278] sm:$0xff] }
 0x75d   :  { %5261 = vmatpush1.bf16.msra.mxu1 %v7544_v15  ;;  %v2116_v15 = vld [vmem:[#allocation11 + $0xfe8] sm:$0xff] }
 0x75e   :  { %5347 = vmatpush1.bf16.msra.mxu0 %v7546_v29  ;;  %5262 = vmatprep.subr.bf16.mxu1 %v7561_v26  ;;  %v2109_v29 = vld [vmem:[#allocation11 + $0xfb0] sm:$0xff]  ;;  %v7641_v63 = vcombine.high %v2108_v31, %v2116_v15 }
 0x75f   :  { %5348 = vmatprep.subr.bf16.mxu0 %v7563_v58  ;;  %v2117_v26 = vld [vmem:[#allocation11 + $0xff0] sm:$0xff]  ;;  %v7624_v58 = vcombine.low %v2092_v42, %v2100_v6  ;;  %v1678_v6 = vld [vmem:[#allocation11 + $0x238] sm:$0xff] }
 0x760   :  { %v7643_v7 = vcombine.high %v2109_v29, %v2117_v26  ;;  %v7213_v61 = vcombine.high %v1678_v6, %v1686_v57 }
 0x761   :  { %5263 = vmatpush1.bf16.msra.mxu1 %v7560_v48  ;;  %v1622_v48 = vld [vmem:[#allocation11 + $0x78] sm:$0xff] }
 0x762   :  { %5349 = vmatpush1.bf16.msra.mxu0 %v7562_v47  ;;  %5264 = vmatprep.subr.bf16.mxu1 %v7577_v10  ;;  %v2121_v47 = vld [vmem:[#allocation14] sm:$0xff]  ;;  %v7640_v10 = vcombine.low %v2108_v31, %v2116_v15  ;;  %v7149_v55 = vcombine.high %v1614_v8, %v1622_v48  ;;  %v1710_v15 = vld [vmem:[#allocation11 + $0x338] sm:$0xff] }
 0x763   :  { %5350 = vmatprep.subr.bf16.mxu0 %v7579_v9  ;;  %v7642_v9 = vcombine.low %v2109_v29, %v2117_v26  ;;  %v9212_v43 = vcombine.high %v2121_v47, %v2121_v47  ;;  %v9219_v59 = vcombine.low %v2121_v47, %v2121_v47  ;;  %v1718_v29 = vld [vmem:[#allocation11 + $0x378] sm:$0xff] }
 0x764   :  { %v1750_v47 = vld [vmem:[#allocation11 + $0x478] sm:$0xff] }
 0x765   :  { %5265 = vmatpush1.bf16.msra.mxu1 %v7576_v19  ;;  %v7148_v19 = vcombine.low %v1614_v8, %v1622_v48  ;;  %v1742_v48 = vld [vmem:[#allocation11 + $0x438] sm:$0xff] }
 0x766   :  { %5351 = vmatpush1.bf16.msra.mxu0 %v7578_v22  ;;  %5266 = vmatprep.subr.bf16.mxu1 %v7593_v23  ;;  %v7165_v22 = vcombine.high %v1630_v32, %v1638_v11  ;;  %v1646_v23 = vld [vmem:[#allocation11 + $0x138] sm:$0xff]  ;;  %v7276_v11 = vcombine.low %v1742_v48, %v1750_v47 }
 0x767   :  { %5352 = vmatprep.subr.bf16.mxu0 %v7595_v34  ;;  %v1654_v34 = vld [vmem:[#allocation11 + $0x178] sm:$0xff] }
 0x768   :  { %v7181_v3 = vcombine.high %v1646_v23, %v1654_v34  ;;  %v1766_v32 = vld [vmem:[#allocation11 + $0x4f8] sm:$0xff] }
 0x769   :  { %5267 = vmatpush1.bf16.msra.mxu1 %v7592_v24  ;;  %v1662_v24 = vld [vmem:[#allocation11 + $0x1b8] sm:$0xff] }
 0x76a   :  { %5353 = vmatpush1.bf16.msra.mxu0 %v7594_v12  ;;  %5268 = vmatprep.subr.bf16.mxu1 %v7609_v46  ;;  %v1670_v12 = vld [vmem:[#allocation11 + $0x1f8] sm:$0xff]  ;;  %v9221_v46 = vcombine.high %v2122_v36, %v2122_v36 }
 0x76b   :  { %5354 = vmatprep.subr.bf16.mxu0 %v7611_v25  ;;  %v7180_v25 = vcombine.low %v1646_v23, %v1654_v34  ;;  %v7197_v42 = vcombine.high %v1662_v24, %v1670_v12  ;;  %v1782_v23 = vld [vmem:[#allocation11 + $0x578] sm:$0xff] }
 0x76d   :  { %5269 = vmatpush1.bf16.msra.mxu1 %v7608_v60  ;;  %v9225_v60 = vcombine.low %v2122_v36, %v2122_v36 }
 0x76e   :  { %5355 = vmatpush1.bf16.msra.mxu0 %v7610_v28  ;;  %5270 = vmatprep.subr.bf16.mxu1 %v7625_v33  ;;  %v1694_v28 = vld [vmem:[#allocation11 + $0x2b8] sm:$0xff] }
 0x76f   :  { %5356 = vmatprep.subr.bf16.mxu0 %v7627_v39  ;;  %v1702_v33 = vld [vmem:[#allocation11 + $0x2f8] sm:$0xff]  ;;  %v7212_v39 = vcombine.low %v1678_v6, %v1686_v57 }
 0x770   :  { %v7229_v31 = vcombine.high %v1694_v28, %v1702_v33  ;;  %v7228_v26 = vcombine.low %v1694_v28, %v1702_v33  ;;  %v1830_v6 = vld [vmem:[#allocation11 + $0x6f8] sm:$0xff] }
 0x771   :  { %5271 = vmatpush1.bf16.msra.mxu1 %v7624_v58  ;;  %v7245_v58 = vcombine.high %v1710_v15, %v1718_v29 }
 0x772   :  { %5357 = vmatpush1.bf16.msra.mxu0 %v7626_v49  ;;  %5272 = vmatprep.subr.bf16.mxu1 %v7641_v63  ;;  %v1726_v49 = vld [vmem:[#allocation11 + $0x3b8] sm:$0xff] }
 0x773   :  { %5358 = vmatprep.subr.bf16.mxu0 %v7643_v7  ;;  %v1734_v63 = vld [vmem:[#allocation11 + $0x3f8] sm:$0xff]  ;;  %v7244_v7 = vcombine.low %v1710_v15, %v1718_v29 }
 0x774   :  { %v7261_v8 = vcombine.high %v1726_v49, %v1734_v63 }
 0x775   :  { %5273 = vmatpush1.bf16.msra.mxu1 %v7640_v10  ;;  %v7260_v10 = vcombine.low %v1726_v49, %v1734_v63 }
 0x776   :  { %5359 = vmatpush1.bf16.msra.mxu0 %v7642_v9  ;;  %5371 = vmatprep.subr.bf16.mxu1 %v7149_v55  ;;  %v7277_v9 = vcombine.high %v1742_v48, %v1750_v47  ;;  %v1758_v55 = vld [vmem:[#allocation11 + $0x4b8] sm:$0xff] }
 0x777   :  { %5491 = vmatprep.subr.bf16.mxu0 %v9212_v43  ;;  %v7292_v34 = vcombine.low %v1758_v55, %v1766_v32 }
 0x778   :  { %5275 = vmatmul.mubr.bf16.vlgmr.msra.gmra.mrb[44].mxu1 %v9140_v51 }
 0x779   :  { %5361 = vmatmul.mubr.bf16.vlgmr.msra.gmra.mrb[56].mxu0 %v9140_v51  ;;  %5372 = vmatpush1.bf16.msra.mxu1 %v7148_v19  ;;  %v7293_v19 = vcombine.high %v1758_v55, %v1766_v32 }
 0x77a   :  { %5403 = vmatprep.mubr.bf16.mxu1 %v9142_v53  ;;  %5523 = vmatprep.mubr.bf16.mxu0 %v9178_v17  ;;  %v7196_v53 = vcombine.low %v1662_v24, %v1670_v12  ;;  %v1814_v24 = vld [vmem:[#allocation11 + $0x678] sm:$0xff] }
 0x77b   :  { %5373 = vmatprep.subr.bf16.mxu1 %v7165_v22  ;;  %v1774_v22 = vld [vmem:[#allocation11 + $0x538] sm:$0xff] }
 0x77c   :  { %v7309_v20 = vcombine.high %v1774_v22, %v1782_v23 }
 0x77d   :  { %5374 = vmatpush1.bf16.msra.mxu1 %v7164_v35  ;;  %v7308_v35 = vcombine.low %v1774_v22, %v1782_v23 }
 0x77e   :  { %5375 = vmatprep.subr.bf16.mxu1 %v7181_v3  ;;  %v1806_v3 = vld [vmem:[#allocation11 + $0x638] sm:$0xff] }
 0x77f   :  { %5492 = vmatpush1.bf16.xpose.msra.mxu0 %v9219_v59 }
 0x780   :  { %5532 = vmatprep.subr.bf16.mxu0 %v9221_v46 }
 0x781   :  { %5376 = vmatpush1.bf16.msra.mxu1 %v7180_v25  ;;  %v7341_v25 = vcombine.high %v1806_v3, %v1814_v24 }
 0x782   :  { %5377 = vmatprep.subr.bf16.mxu1 %v7197_v42  ;;  %v1822_v42 = vld [vmem:[#allocation11 + $0x6b8] sm:$0xff] }
 0x783   :  { %v7357_v57 = vcombine.high %v1822_v42, %v1830_v6  ;;  %v7356_v28 = vcombine.low %v1822_v42, %v1830_v6  ;;  %v8226_v42 = vld [vmem:[#allocation13] sm:$0xff] }
 0x784   :  { %v2156_v6 = vrot.slane %v8226_v42, %v8838_v38 }
 0x785   :  { %5378 = vmatpush1.bf16.msra.mxu1 %v7196_v53  ;;  %v1838_v53 = vld [vmem:[#allocation11 + $0x738] sm:$0xff] }
 0x786   :  { %5524 = vmatmul.mubr.bf16.vlgmr.msra.gmra.mrb[60].mxu0 %v9176_v30  ;;  %5379 = vmatprep.subr.bf16.mxu1 %v7213_v61  ;;  %v1846_v61 = vld [vmem:[#allocation11 + $0x778] sm:$0xff] }
 0x787   :  { %5533 = vmatpush1.bf16.xpose.msra.mxu0 %v9225_v60  ;;  %5564 = vmatprep.mubr.bf16.mxu0 %v9210_v52  ;;  %v7373_v33 = vcombine.high %v1838_v53, %v1846_v61  ;;  %v7372_v15 = vcombine.low %v1838_v53, %v1846_v61  ;;  %v2160_v61 = vrot.slane %v8226_v42, %v8840_v41  ;;  %v2038_v42 = vld [vmem:[#allocation11 + $0xd78] sm:$0xff] }
 0x788   :  { %7826 = vmatprep.subr.bf16.mxu0 %v8533_v50 }
 0x789   :  { %5380 = vmatpush1.bf16.msra.mxu1 %v7212_v39  ;;  %v1854_v39 = vld [vmem:[#allocation11 + $0x7b8] sm:$0xff] }
 0x78a   :  { %5381 = vmatprep.subr.bf16.mxu1 %v7229_v31  ;;  %v1862_v31 = vld [vmem:[#allocation11 + $0x7f8] sm:$0xff] }
 0x78b   :  { %v7389_v29 = vcombine.high %v1854_v39, %v1862_v31  ;;  %v7388_v49 = vcombine.low %v1854_v39, %v1862_v31 }
 0x78d   :  { %5382 = vmatpush1.bf16.msra.mxu1 %v7228_v26  ;;  %v1870_v26 = vld [vmem:[#allocation11 + $0x838] sm:$0xff] }
 0x78e   :  { %5383 = vmatprep.subr.bf16.mxu1 %v7245_v58  ;;  %v1878_v58 = vld [vmem:[#allocation11 + $0x878] sm:$0xff] }
 0x78f   :  { %v7405_v63 = vcombine.high %v1870_v26, %v1878_v58  ;;  %v7404_v48 = vcombine.low %v1870_v26, %v1878_v58 }
 0x791   :  { %5384 = vmatpush1.bf16.msra.mxu1 %v7244_v7  ;;  %v1886_v7 = vld [vmem:[#allocation11 + $0x8b8] sm:$0xff] }
 0x792   :  { %5565 = vmatmul.mubr.bf16.vlgmr.msra.gmra.mrb[60].mxu0 %v9206_v45  ;;  %5385 = vmatprep.subr.bf16.mxu1 %v7261_v8  ;;  %v1894_v8 = vld [vmem:[#allocation11 + $0x8f8] sm:$0xff] }
 0x793   :  { %7827 = vmatpush3.bf16.xpose.msra.mxu0 %v5470_v40  ;;  %7828 = vmatprep.mubr.msk.bf16.mxu0 %vm8534_vm3, %v8533_v50  ;;  %v1798_v40 = vld [vmem:[#allocation11 + $0x5f8] sm:$0xff]  ;;  %v7421_v47 = vcombine.high %v1886_v7, %v1894_v8  ;;  %v7420_v55 = vcombine.low %v1886_v7, %v1894_v8 }
 0x794   :  { %7838 = vmatprep.subr.bf16.mxu0 %v8533_v50  ;;  %v7325_v36 = vcombine.high %v1790_v44, %v1798_v40  ;;  %v7324_v12 = vcombine.low %v1790_v44, %v1798_v40 }
 0x795   :  { %5386 = vmatpush1.bf16.msra.mxu1 %v7260_v10  ;;  %v1902_v10 = vld [vmem:[#allocation11 + $0x938] sm:$0xff] }
 0x796   :  { %5387 = vmatprep.subr.bf16.mxu1 %v7277_v9  ;;  %v1910_v9 = vld [vmem:[#allocation11 + $0x978] sm:$0xff] }
 0x797   :  { %v7437_v32 = vcombine.high %v1902_v10, %v1910_v9  ;;  %v7436_v22 = vcombine.low %v1902_v10, %v1910_v9 }
 0x799   :  { %5388 = vmatpush1.bf16.msra.mxu1 %v7276_v11  ;;  %v1918_v11 = vld [vmem:[#allocation11 + $0x9b8] sm:$0xff] }
 0x79a   :  { %7829 = vmatmul.mubr.bf16.vlgmr.msra.gmra.mrb[64].mxu0 %v9178_v17  ;;  %5389 = vmatprep.subr.bf16.mxu1 %v7293_v19  ;;  %v7340_v17 = vcombine.low %v1806_v3, %v1814_v24  ;;  %v1926_v19 = vld [vmem:[#allocation11 + $0x9f8] sm:$0xff] }
 0x79b   :  { %7840 = vmatprep.mubr.msk.bf16.mxu0 %vm8534_vm3, %v8533_v50  ;;  %v7453_v23 = vcombine.high %v1918_v11, %v1926_v19  ;;  %v7452_v44 = vcombine.low %v1918_v11, %v1926_v19  ;;  %v1966_v3 = vld [vmem:[#allocation11 + $0xb38] sm:$0xff] }
 0x79c   :  { %v1974_v24 = vld [vmem:[#allocation11 + $0xb78] sm:$0xff] }
 0x79d   :  { %5390 = vmatpush1.bf16.msra.mxu1 %v7292_v34  ;;  %v1934_v34 = vld [vmem:[#allocation11 + $0xa38] sm:$0xff]  ;;  %v7500_v58 = vcombine.low %v1966_v3, %v1974_v24 }
 0x79e   :  { %5391 = vmatprep.subr.bf16.mxu1 %v7309_v20  ;;  %v1942_v20 = vld [vmem:[#allocation11 + $0xa78] sm:$0xff] }
 0x79f   :  { %v7469_v40 = vcombine.high %v1934_v34, %v1942_v20  ;;  %v1998_v11 = vld [vmem:[#allocation11 + $0xc38] sm:$0xff] }
 0x7a0   :  { %v2006_v19 = vld [vmem:[#allocation11 + $0xc78] sm:$0xff] }
 0x7a1   :  { %5392 = vmatpush1.bf16.msra.mxu1 %v7308_v35  ;;  %v1950_v35 = vld [vmem:[#allocation11 + $0xab8] sm:$0xff] }
 0x7a2   :  { %5393 = vmatprep.subr.bf16.mxu1 %v7325_v36  ;;  %v7468_v36 = vcombine.low %v1934_v34, %v1942_v20 }
 0x7a5   :  { %5394 = vmatpush1.bf16.msra.mxu1 %v7324_v12  ;;  %v9243_v12 = vld [vmem:[#allocation13 + $0x8] sm:$0xff] }
 0x7a6   :  { %5395 = vmatprep.subr.bf16.mxu1 %v7341_v25  ;;  %v2164_v53 = vrot.slane %v9243_v12, %v8816_v54  ;;  %v2176_v13 = vrot.slane %v9243_v12, %v8824_v2 }
 0x7a9   :  { %5396 = vmatpush1.bf16.msra.mxu1 %v7340_v17  ;;  %v7501_v17 = vcombine.high %v1966_v3, %v1974_v24  ;;  %v7532_v3 = vcombine.low %v1998_v11, %v2006_v19 }
 0x7aa   :  { %5397 = vmatprep.subr.bf16.mxu1 %v7357_v57 }
 0x7ad   :  { %5398 = vmatpush1.bf16.msra.mxu1 %v7356_v28  ;;  %v1982_v28 = vld [vmem:[#allocation11 + $0xbb8] sm:$0xff] }
 0x7ae   :  { %5399 = vmatprep.subr.bf16.mxu1 %v7373_v33  ;;  %v1990_v33 = vld [vmem:[#allocation11 + $0xbf8] sm:$0xff] }
 0x7b1   :  { %5400 = vmatpush1.bf16.msra.mxu1 %v7372_v15  ;;  %v2168_v15 = vrot.slane %v9243_v12, %v8818_v56 }
 0x7b2   :  { %5401 = vmatprep.subr.bf16.mxu1 %v7389_v29 }
 0x7b5   :  { %5402 = vmatpush1.bf16.msra.mxu1 %v7388_v49 }
 0x7b6   :  { %5414 = vmatprep.subr.bf16.mxu1 %v7405_v63 }
 0x7b8   :  { %5404 = vmatmul.mubr.bf16.vlgmr.msra.gmra.mrb[48].mxu1 %v9138_v27  ;;  %v1958_v27 = vld [vmem:[#allocation11 + $0xaf8] sm:$0xff] }
 0x7b9   :  { %5415 = vmatpush1.bf16.msra.mxu1 %v7404_v48  ;;  %5446 = vmatprep.mubr.bf16.mxu1 %v9144_v1  ;;  %v7485_v1 = vcombine.high %v1950_v35, %v1958_v27  ;;  %v7484_v25 = vcombine.low %v1950_v35, %v1958_v27  ;;  %v7517_v48 = vcombine.high %v1982_v28, %v1990_v33 }
 0x7ba   :  { %5416 = vmatprep.subr.bf16.mxu1 %v7421_v47  ;;  %v7533_v27 = vcombine.high %v1998_v11, %v2006_v19 }
 0x7bd   :  { %5417 = vmatpush1.bf16.msra.mxu1 %v7420_v55 }
 0x7be   :  { %5418 = vmatprep.subr.bf16.mxu1 %v7437_v32 }
 0x7c1   :  { %5419 = vmatpush1.bf16.msra.mxu1 %v7436_v22 }
 0x7c2   :  { %5420 = vmatprep.subr.bf16.mxu1 %v7453_v23 }
 0x7c5   :  { %5421 = vmatpush1.bf16.msra.mxu1 %v7452_v44 }
 0x7c6   :  { %5422 = vmatprep.subr.bf16.mxu1 %v7469_v40  ;;  %v7516_v40 = vcombine.low %v1982_v28, %v1990_v33  ;;  %v2062_v33 = vld [vmem:[#allocation11 + $0xe38] sm:$0xff] }
 0x7c9   :  { %5423 = vmatpush1.bf16.msra.mxu1 %v7468_v36  ;;  %v2014_v36 = vld [vmem:[#allocation11 + $0xcb8] sm:$0xff] }
 0x7ca   :  { %5424 = vmatprep.subr.bf16.mxu1 %v7485_v1  ;;  %v2022_v1 = vld [vmem:[#allocation11 + $0xcf8] sm:$0xff] }
 0x7cb   :  { %v5104_v57 = vpop.f32.mrb[40].mxu1  ;;  %v7549_v24 = vcombine.high %v2014_v36, %v2022_v1 }
 0x7cc   :  { %v5190_v39 = vpop.f32.mrb[52].mxu0  ;;  %v5106_v31 = vpop.f32.mrb[41].mxu1  ;;  %v7902_v49 = vadd.f32 %v5104_v57, %v2156_v6  ;;  %v2046_v57 = vld [vmem:[#allocation11 + $0xdb8] sm:$0xff] }
 0x7cd   :  { %v5192_v29 = vpop.f32.mrb[53].mxu0  ;;  %v5108_v26 = vpop.f32.mrb[42].mxu1  ;;  %5425 = vmatpush1.bf16.msra.mxu1 %v7484_v25  ;;  %v9251_v47 = vadd.f32 %v5190_v39, %v2164_v53  ;;  %v7903_v10 = vadd.f32 %v5106_v31, %v2160_v61  ;;  %v2030_v25 = vld [vmem:[#allocation11 + $0xd38] sm:$0xff] }
 0x7ce   :  { %v7904_v63 = vadd.f32 %v5108_v26, %v2156_v6  ;;  %v5194_v7 = vpop.f32.mrb[54].mxu0  ;;  %v5110_v8 = vpop.f32.mrb[43].mxu1  ;;  %5426 = vmatprep.subr.bf16.mxu1 %v7501_v17  ;;  %v9255_v22 = vadd.f32 %v5192_v29, %v2168_v15  ;;  %v7548_v6 = vcombine.low %v2014_v36, %v2022_v1  ;;  %v7565_v17 = vcombine.high %v2030_v25, %v2038_v42  ;;  %v2070_v39 = vld [vmem:[#allocation11 + $0xe78] sm:$0xff] }
 0x7cf   :  { %v9253_v9 = vadd.f32 %v5194_v7, %v2164_v53  ;;  %v7905_v55 = vadd.f32 %v5110_v8, %v2160_v61  ;;  %v5196_v32 = vpop.f32.mrb[55].mxu0  ;;  %v2054_v53 = vld [vmem:[#allocation11 + $0xdf8] sm:$0xff]  ;;  %v7564_v61 = vcombine.low %v2030_v25, %v2038_v42  ;;  %v7597_v31 = vcombine.high %v2062_v33, %v2070_v39 }
 0x7d0   :  { %v5471_v23 = vpack.c.bf16 %v7904_v63, %v7902_v49  ;;  %v9257_v34 = vadd.f32 %v5196_v32, %v2168_v15  ;;  %v7581_v28 = vcombine.high %v2046_v57, %v2054_v53  ;;  %v2078_v15 = vld [vmem:[#allocation11 + $0xeb8] sm:$0xff]  ;;  %v7596_v26 = vcombine.low %v2062_v33, %v2070_v39 }
 0x7d1   :  { %v5473_v20 = vpack.c.bf16 %v9253_v9, %v9251_v47  ;;  %v5472_v44 = vpack.c.bf16 %v7905_v55, %v7903_v10  ;;  %5427 = vmatpush1.bf16.msra.mxu1 %v7500_v58  ;;  %v2086_v29 = vld [vmem:[#allocation11 + $0xef8] sm:$0xff] }
 0x7d2   :  { %v5474_v35 = vpack.c.bf16 %v9257_v34, %v9255_v22  ;;  %7839 = vmatpush3.bf16.xpose.msra.mxu0 %v5471_v23  ;;  %5428 = vmatprep.subr.bf16.mxu1 %v7517_v48  ;;  %v2094_v58 = vld [vmem:[#allocation11 + $0xf38] sm:$0xff]  ;;  %v7612_v63 = vcombine.low %v2078_v15, %v2086_v29 }
 0x7d3   :  { %7850 = vmatprep.subr.bf16.mxu0 %v8533_v50  ;;  %v2102_v49 = vld [vmem:[#allocation11 + $0xf78] sm:$0xff] }
 0x7d4   :  { %v7629_v7 = vcombine.high %v2094_v58, %v2102_v49  ;;  %v2110_v8 = vld [vmem:[#allocation11 + $0xfb8] sm:$0xff] }
 0x7d5   :  { %5429 = vmatpush1.bf16.msra.mxu1 %v7516_v40  ;;  %v2118_v48 = vld [vmem:[#allocation11 + $0xff8] sm:$0xff] }
 0x7d6   :  { %5430 = vmatprep.subr.bf16.mxu1 %v7533_v27  ;;  %v7645_v10 = vcombine.high %v2110_v8, %v2118_v48  ;;  %v7644_v55 = vcombine.low %v2110_v8, %v2118_v48 }
 0x7d9   :  { %5431 = vmatpush1.bf16.msra.mxu1 %v7532_v3  ;;  %7841 = vmatmul.mubr.bf16.vlgmr.msra.gmra.mrb[68].mxu0 %v9206_v45  ;;  %v7580_v45 = vcombine.low %v2046_v57, %v2054_v53  ;;  %v9615_v3 = vmov 5  }
 0x7da   :  { %7851 = vmatpush3.bf16.xpose.msra.mxu0 %v5472_v44  ;;  %5432 = vmatprep.subr.bf16.mxu1 %v7549_v24  ;;  %v9616_v24 = vmov 2  }
 0x7db   :  { %7852 = vmatprep.mubr.msk.bf16.mxu0 %vm8534_vm3, %v8533_v50  ;;  %7654 = vmatprep.subr.msk.bf16.mxu0 %vm1466_vm5, %v9212_v43  ;;  %v7613_v43 = vcombine.high %v2078_v15, %v2086_v29 }
 0x7dd   :  { %5433 = vmatpush1.bf16.msra.mxu1 %v7548_v6  ;;  %v9617_v6 = vmov 1  }
 0x7de   :  { %5434 = vmatprep.subr.bf16.mxu1 %v7565_v17  ;;  %v9618_v17 = vmov 7  }
 0x7e1   :  { %5435 = vmatpush1.bf16.msra.mxu1 %v7564_v61  ;;  %7853 = vmatmul.mubr.bf16.vlgmr.msra.gmra.mrb[72].mxu0 %v9210_v52  ;;  %v7628_v52 = vcombine.low %v2094_v58, %v2102_v49  ;;  %v9619_v61 = vmov 3  }
 0x7e2   :  { %5436 = vmatprep.subr.bf16.mxu1 %v7581_v28  ;;  %6229 = vmatprep.mubr.bf16.mxu0 %v8531_v0  ;;  %v9620_v28 = vmov 6  }
 0x7e5   :  { %5437 = vmatpush1.bf16.msra.mxu1 %v7580_v45 }
 0x7e6   :  { %5438 = vmatprep.subr.bf16.mxu1 %v7597_v31 }
 0x7e9   :  { %5439 = vmatpush1.bf16.msra.mxu1 %v7596_v26 }
 0x7ea   :  { %5440 = vmatprep.subr.bf16.mxu1 %v7613_v43 }
 0x7ed   :  { %5441 = vmatpush1.bf16.msra.mxu1 %v7612_v63 }
 0x7ee   :  { %5442 = vmatprep.subr.bf16.mxu1 %v7629_v7 }
 0x7f1   :  { %5443 = vmatpush1.bf16.msra.mxu1 %v7628_v52 }
 0x7f2   :  { %5444 = vmatprep.subr.bf16.mxu1 %v7645_v10 }
 0x7f5   :  { %5445 = vmatpush1.bf16.msra.mxu1 %v7644_v55 }
 0x7f6   :  { %7814 = vmatprep.subr.bf16.mxu1 %v8533_v50 }
 0x7f8   :  { %5447 = vmatmul.mubr.bf16.vlgmr.msra.gmra.mrb[48].mxu1 %v9140_v51  ;;  %v2172_v51 = vrot.slane %v9243_v12, %v8822_v62 }
 0x7f9   :  { %7816 = vmatprep.mubr.msk.bf16.mxu1 %vm8534_vm3, %v8533_v50 }
 0x7fe   :  { %7815 = vmatpush3.bf16.xpose.msra.mxu1 %v5469_v5 }
 0x7ff   :  { %7820 = vmatprep.subr.bf16.mxu1 %v8533_v50 }
 0x805   :  { %7817 = vmatmul.mubr.bf16.vlgmr.msra.gmra.mrb[52].mxu1 %v9176_v30 }
 0x806   :  { %7821 = vmatpush3.bf16.msra.mxu1 %v5473_v20  ;;  %7822 = vmatprep.mubr.msk.bf16.mxu1 %vm8534_vm3, %v8533_v50 }
 0x807   :  { %7832 = vmatprep.subr.bf16.mxu1 %v8533_v50 }
 0x84b   :  { %v5276_v32 = vpop.f32.mrb[44].mxu1 }
 0x84c   :  { %v9290_v4 = vpop.f32.mrb[56].mxu0  ;;  %v5278_v5 = vpop.f32.mrb[45].mxu1  ;;  %v9294_v47 = vadd.f32 %v5276_v32, %v2172_v51 }
 0x84d   :  { %v9292_v30 = vpop.f32.mrb[57].mxu0  ;;  %v5280_v11 = vpop.f32.mrb[46].mxu1  ;;  %v9300_v20 = vadd.f32 %v5278_v5, %v2176_v13 }
 0x84e   :  { %v9296_v9 = vadd.f32 %v5280_v11, %v2172_v51  ;;  %v9298_v19 = vpop.f32.mrb[58].mxu0  ;;  %v5282_v23 = vpop.f32.mrb[47].mxu1  ;;  %v9340_v51 = vld [vmem:[#allocation2] sm:$0xff]  ;;  %v9343_v11 = vld [vmem:[#allocation2 + $0x10] sm:$0xff] }
 0x84f   :  { %v9302_v62 = vadd.f32 %v5282_v23, %v2176_v13  ;;  %v9304_v44 = vpop.f32.mrb[59].mxu0 }
 0x850   :  { %v5475_v2 = vpack.c.bf16 %v9296_v9, %v9294_v47 }
 0x851   :  { %v5476_v12 = vpack.c.bf16 %v9302_v62, %v9300_v20 }
 0x865   :  { %v5566_v40 = vpop.f32.mrb[60].mxu0 }
 0x866   :  { %5872 = vperm.xlu0 %8017, %v5566_v40   ;;  %5575 = vperm.xlu1 %8012, %v5566_v40   ;;  %v5568_v27 = vpop.f32.mrb[61].mxu0 }
 0x867   :  { %v5569_v36 = vpop.f32.mrb[62].mxu0 }
 0x868   :  { %v5571_v1 = vpop.f32.mrb[63].mxu0 }
 0x869   :  { %v9347_v1 = vld [vmem:[#allocation5] sm:$0xff] }
 0x86a   :  { %8025 = vset.pattern.permute.xlu0 %v9615_v3  ;;  %8014 = vset.pattern.permute.xlu1 %v9616_v24 }
 0x86b   :  { %5724 = vperm.xlu1 %8014, %v5566_v40   ;;  %5927 = vperm.xlu0 %8025, %v5569_v36  }
 0x86d   :  { %v5767_v25 = vpop.f32.mrb[64].mxu0 }
 0x86e   :  { %v7830_v42 = vpop.f32.mrb[65].mxu0 }
 0x86f   :  { %8015 = vset.pattern.permute.xlu1 %v9617_v6  ;;  %8026 = vset.pattern.permute.xlu0 %v9618_v17  ;;  %v9314_v57 = vpop.f32.mrb[66].mxu0 }
 0x870   :  { %5627 = vperm.xlu1 %8015, %v5566_v40   ;;  %6071 = vperm.xlu0 %8026, %v5566_v40   ;;  %v7831_v53 = vpop.f32.mrb[67].mxu0 }
 0x874   :  { %8016 = vset.pattern.permute.xlu1 %v9619_v61  ;;  %8030 = vset.pattern.permute.xlu0 %v9617_v6 }
 0x875   :  { %5775 = vperm.xlu1 %8016, %v5566_v40  }
 0x879   :  { %8018 = vset.pattern.permute.xlu1 %v9615_v3 }
 0x87a   :  { %5923 = vperm.xlu1 %8018, %v5566_v40  }
 0x87e   :  { %8019 = vset.pattern.permute.xlu1 %v9620_v28 }
 0x87f   :  { %6020 = vperm.xlu1 %8019, %v5566_v40  }
 0x883   :  { %8020 = vset.pattern.permute.xlu1 %v8531_v0 }
 0x884   :  { %5580 = vperm.xlu1 %8020, %v5569_v36  }
 0x888   :  { %8021 = vset.pattern.permute.xlu1 %v9616_v24 }
 0x889   :  { %5728 = vperm.xlu1 %8021, %v5569_v36  }
 0x88d   :  { %8022 = vset.pattern.permute.xlu1 %v9617_v6 }
 0x88e   :  { %5631 = vperm.xlu1 %8022, %v5569_v36  }
 0x892   :  { %8023 = vset.pattern.permute.xlu1 %v9619_v61 }
 0x893   :  { %5779 = vperm.xlu1 %8023, %v5569_v36  }
 0x897   :  { %8024 = vset.pattern.permute.xlu1 %v9614_v37 }
 0x898   :  { %5876 = vperm.xlu1 %8024, %v5569_v36  }
 0x89c   :  { %8027 = vset.pattern.permute.xlu1 %v9620_v28 }
 0x89d   :  { %6024 = vperm.xlu1 %8027, %v5569_v36  }
 0x8a1   :  { %8028 = vset.pattern.permute.xlu1 %v9618_v17 }
 0x8a2   :  { %6075 = vperm.xlu1 %8028, %v5569_v36  }
 0x8a6   :  { %8029 = vset.pattern.permute.xlu1 %v8531_v0 }
 0x8ac   :  { %v5915_v33 = vpop.f32.mrb[68].mxu0 }
 0x8ad   :  { %v7842_v39 = vpop.f32.mrb[69].mxu0 }
 0x8ae   :  { %v9328_v45 = vpop.f32.mrb[70].mxu0 }
 0x8af   :  { %v7843_v31 = vpop.f32.mrb[71].mxu0 }
 0x8b4   :  { %v6063_v15 = vpop.f32.mrb[72].mxu0 }
 0x8b5   :  { %v7854_v29 = vpop.f32.mrb[73].mxu0 }
 0x8b6   :  { %v9330_v26 = vpop.f32.mrb[74].mxu0 }
 0x8b7   :  { %v7855_v43 = vpop.f32.mrb[75].mxu0 }
 0x8cb   :  { %v9332_v37 = vpop.f32.mrb[48].mxu1 }
 0x8cc   :  { %v9334_v58 = vpop.f32.mrb[49].mxu1 }
 0x8cd   :  { %v9336_v49 = vpop.f32.mrb[50].mxu1 }
 0x8ce   :  { %v9338_v63 = vpop.f32.mrb[51].mxu1 }
 0x8d8   :  { %v5619_v7 = vpop.f32.mrb[52].mxu1 }
 0x8d9   :  { %v7818_v8 = vpop.f32.mrb[53].mxu1 }
 0x8da   :  { %v5622_v48 = vpop.f32.mrb[54].mxu1 }
 0x8db   :  { %v7819_v52 = vpop.f32.mrb[55].mxu1 }
 0x8dc   :  { %v9361_v52 = vld [vmem:[#allocation2 + $0x8] sm:$0xff] }
 0x8e5   :  { %v5576_v10 = vpop.permute.xlu1 %5575  ;;  %v5873_v29 = vpop.permute.xlu0 %5872 }
 0x8e6   :  { %v5583_v32 = vmul.f32 %v9340_v51, %v5576_v10  ;;  %v5879_v8 = vmul.f32 %v9340_v51, %v5873_v29 }
 0x8e8   :  { %v5620_v5 = vadd.f32 %v5619_v7, %v5583_v32 }
 0x8ea   :  { %v5725_v55 = vpop.permute.xlu1 %5724 }
 0x8eb   :  { %v5731_v40 = vmul.f32 %v9340_v51, %v5725_v55 }
 0x8ed   :  { %v5768_v24 = vadd.f32 %v5767_v25, %v5731_v40  ;;  %v5928_v25 = vpop.permute.xlu0 %5927  ;;  %v9366_v40 = vld [vmem:[#allocation2 + $0x18] sm:$0xff] }
 0x8ef   :  { %v5628_v13 = vpop.permute.xlu1 %5627 }
 0x8f0   :  { %v5634_v23 = vmul.f32 %v9343_v11, %v5628_v13 }
 0x8f2   :  { %v5636_v27 = vadd.f32 %v5634_v23, %v5620_v5  ;;  %v5916_v5 = vadd.f32 %v5915_v33, %v5879_v8 }
 0x8f4   :  { %v5776_v36 = vpop.permute.xlu1 %5775  ;;  %v9350_v3 = vadd.f32 %v9347_v1, %v5636_v27 }
 0x8f5   :  { %v5782_v42 = vmul.f32 %v9343_v11, %v5776_v36  ;;  %v6072_v36 = vpop.permute.xlu0 %6071 }
 0x8f6   :  { %v5640_v17 = vsel %vm913_vm4, %v9350_v3, -inf }
 0x8f7   :  { %v5784_v53 = vadd.f32 %v5782_v42, %v5768_v24  ;;  %5641 = vmax.xlane.f32.xlu1 %v5640_v17 }
 0x8f9   :  { %v5924_v61 = vpop.permute.xlu1 %5923  ;;  %v9356_v28 = vadd.f32 %v9347_v1, %v5784_v53 }
 0x8fa   :  { %v5930_v55 = vmul.f32 %v9343_v11, %v5924_v61 }
 0x8fb   :  { %v5788_v39 = vsel %vm913_vm4, %v9356_v28, -inf }
 0x8fc   :  { %5789 = vmax.xlane.f32.xlu0 %v5788_v39  ;;  %v5932_v42 = vadd.f32 %v5930_v55, %v5916_v5  ;;  %v6078_v39 = vmul.f32 %v9343_v11, %v6072_v36 }
 0x8fe   :  { %v6021_v31 = vpop.permute.xlu1 %6020  ;;  %v5934_v8 = vadd.f32 %v9347_v1, %v5932_v42 }
 0x8ff   :  { %v6027_v32 = vmul.f32 %v9340_v51, %v6021_v31 }
 0x901   :  { %v6064_v17 = vadd.f32 %v6063_v15, %v6027_v32 }
 0x903   :  { %v5581_v43 = vpop.permute.xlu1 %5580 }
 0x904   :  { %v5584_v10 = vmul.f32 %v9361_v52, %v5581_v43  ;;  %v9371_v43 = vld [vmem:[#allocation5 + $0x8] sm:$0xff] }
 0x906   :  { %v5623_v23 = vadd.f32 %v5622_v48, %v5584_v10  ;;  %v6080_v10 = vadd.f32 %v6078_v39, %v6064_v17 }
 0x908   :  { %v5729_v7 = vpop.permute.xlu1 %5728  ;;  %v6082_v5 = vadd.f32 %v9347_v1, %v6080_v10 }
 0x909   :  { %v5732_v24 = vmul.f32 %v9361_v52, %v5729_v7 }
 0x90b   :  { %v5771_v33 = vadd.f32 %v9314_v57, %v5732_v24  ;;  %v6084_v24 = vsel %vm913_vm4, %v6082_v5, -inf }
 0x90d   :  { %v5632_v13 = vpop.permute.xlu1 %5631 }
 0x90e   :  { %v5635_v27 = vmul.f32 %v9366_v40, %v5632_v13  ;;  %v5936_v13 = vsel %vm913_vm4, %v5934_v8, -inf }
 0x910   :  { %v5637_v53 = vadd.f32 %v5635_v27, %v5623_v23  ;;  %v5931_v23 = vmul.f32 %v9366_v40, %v5928_v25 }
 0x912   :  { %v5780_v29 = vpop.permute.xlu1 %5779  ;;  %v5639_v61 = vadd.f32 %v9371_v43, %v5637_v53 }
 0x913   :  { %v5783_v48 = vmul.f32 %v9366_v40, %v5780_v29 }
 0x914   :  { %v5643_v31 = vsel %vm913_vm4, %v5639_v61, -inf }
 0x915   :  { %v5785_v7 = vadd.f32 %v5783_v48, %v5771_v33  ;;  %5644 = vmax.xlane.f32.xlu0 %v5643_v31 }
 0x917   :  { %v5877_v15 = vpop.permute.xlu1 %5876  ;;  %v5787_v55 = vadd.f32 %v9371_v43, %v5785_v7 }
 0x918   :  { %v5880_v32 = vmul.f32 %v9361_v52, %v5877_v15 }
 0x919   :  { %5937 = vmax.xlane.f32.xlu0 %v5936_v13  ;;  %v5791_v57 = vsel %vm913_vm4, %v5787_v55, -inf }
 0x91a   :  { %v5919_v27 = vadd.f32 %v9328_v45, %v5880_v32  ;;  %5792 = vmax.xlane.f32.xlu1 %v5791_v57 }
 0x91c   :  { %v6025_v36 = vpop.permute.xlu1 %6024  ;;  %v5933_v42 = vadd.f32 %v5931_v23, %v5919_v27 }
 0x91d   :  { %6085 = vmax.xlane.f32.xlu0 %v6084_v24  ;;  %v6028_v17 = vmul.f32 %v9361_v52, %v6025_v36 }
 0x91e   :  { %v5935_v53 = vadd.f32 %v9371_v43, %v5933_v42 }
 0x91f   :  { %v6067_v33 = vadd.f32 %v9330_v26, %v6028_v17 }
 0x920   :  { %v5939_v39 = vsel %vm913_vm4, %v5935_v53, -inf }
 0x921   :  { %v6076_v29 = vpop.permute.xlu1 %6075  ;;  %5940 = vmax.xlane.f32.xlu1 %v5939_v39 }
 0x922   :  { %v6079_v25 = vmul.f32 %v9366_v40, %v6076_v29 }
 0x924   :  { %v6081_v48 = vadd.f32 %v6079_v25, %v6067_v33 }
 0x926   :  { %v6083_v45 = vadd.f32 %v9371_v43, %v6081_v48 }
 0x928   :  { %v6087_v31 = vsel %vm913_vm4, %v6083_v45, -inf }
 0x929   :  { %6088 = vmax.xlane.f32.xlu1 %v6087_v31 }
 0x984   :  { %v5642_v10 = vpop.xlane.xlu1 %5641 }
 0x985   :  { %v5646_v7 = vsub.f32 %v9350_v3, %v5642_v10 }
 0x987   :  { %v5648_v15 = vmul.f32 1.442695, %v5646_v7 }
 0x989   :  { %8185 = vpow2.f32 %v5648_v15  ;;  %v5790_v32 = vpop.xlane.xlu0 %5789 }
 0x98a   :  { %v5794_v13 = vsub.f32 %v9356_v28, %v5790_v32 }
 0x98c   :  { %v5796_v57 = vmul.f32 1.442695, %v5794_v13 }
 0x98e   :  { %8187 = vpow2.f32 %v5796_v57 }
 0x993   :  { %v8186_v23 = vpop.eup %8185 }
 0x994   :  { %v5652_v26 = vsel %vm913_vm4, %v8186_v23, 0.0 }
 0x995   :  { %5653 = vadd.xlane.f32.xlu0 %v5652_v26 }
 0x998   :  { %v8188_v27 = vpop.eup %8187 }
 0x999   :  { %v5800_v36 = vsel %vm913_vm4, %v8188_v27, 0.0 }
 0x99a   :  { %5801 = vadd.xlane.f32.xlu0 %v5800_v36 }
 0x9a2   :  { %v5645_v24 = vpop.xlane.xlu0 %5644 }
 0x9a3   :  { %v5647_v42 = vsub.f32 %v5639_v61, %v5645_v24 }
 0x9a5   :  { %v5650_v17 = vmul.f32 1.442695, %v5647_v42 }
 0x9a6   :  { %v5938_v39 = vpop.xlane.xlu0 %5937 }
 0x9a7   :  { %8189 = vpow2.f32 %v5650_v17  ;;  %v5942_v3 = vsub.f32 %v5934_v8, %v5938_v39  ;;  %v5793_v29 = vpop.xlane.xlu1 %5792 }
 0x9a8   :  { %v5795_v33 = vsub.f32 %v5787_v55, %v5793_v29 }
 0x9a9   :  { %v5944_v25 = vmul.f32 1.442695, %v5942_v3 }
 0x9aa   :  { %v5798_v28 = vmul.f32 1.442695, %v5795_v33  ;;  %v6086_v48 = vpop.xlane.xlu0 %6085 }
 0x9ab   :  { %8191 = vpow2.f32 %v5944_v25  ;;  %v6090_v31 = vsub.f32 %v6082_v5, %v6086_v48 }
 0x9ac   :  { %8193 = vpow2.f32 %v5798_v28 }
 0x9ad   :  { %v6092_v10 = vmul.f32 1.442695, %v6090_v31 }
 0x9ae   :  { %v5941_v7 = vpop.xlane.xlu1 %5940 }
 0x9af   :  { %8195 = vpow2.f32 %v6092_v10  ;;  %v5943_v15 = vsub.f32 %v5935_v53, %v5941_v7 }
 0x9b1   :  { %v8190_v32 = vpop.eup %8189  ;;  %v5946_v13 = vmul.f32 1.442695, %v5943_v15 }
 0x9b2   :  { %v5655_v61 = vsel %vm913_vm4, %v8190_v32, 0.0 }
 0x9b3   :  { %8197 = vpow2.f32 %v5946_v13  ;;  %5656 = vadd.xlane.f32.xlu1 %v5655_v61 }
 0x9b5   :  { %v8192_v57 = vpop.eup %8191 }
 0x9b6   :  { %v8194_v8 = vpop.eup %8193  ;;  %v6089_v26 = vpop.xlane.xlu1 %6088  ;;  %v5948_v55 = vsel %vm913_vm4, %v8192_v57, 0.0 }
 0x9b7   :  { %v6091_v36 = vsub.f32 %v6083_v45, %v6089_v26  ;;  %5949 = vadd.xlane.f32.xlu0 %v5948_v55  ;;  %v5803_v5 = vsel %vm913_vm4, %v8194_v8, 0.0 }
 0x9b8   :  { %5804 = vadd.xlane.f32.xlu1 %v5803_v5 }
 0x9b9   :  { %v8196_v24 = vpop.eup %8195  ;;  %v6094_v42 = vmul.f32 1.442695, %v6091_v36 }
 0x9ba   :  { %v6096_v53 = vsel %vm913_vm4, %v8196_v24, 0.0 }
 0x9bb   :  { %8199 = vpow2.f32 %v6094_v42  ;;  %6097 = vadd.xlane.f32.xlu0 %v6096_v53 }
 0x9bd   :  { %v9401_v17 = vpop.eup %8197 }
 0x9be   :  { %v5951_v39 = vsel %vm913_vm4, %v9401_v17, 0.0 }
 0x9bf   :  { %5952 = vadd.xlane.f32.xlu1 %v5951_v39 }
 0x9c5   :  { %v9405_v3 = vpop.eup %8199 }
 0x9c6   :  { %v6099_v45 = vsel %vm913_vm4, %v9405_v3, 0.0 }
 0x9c7   :  { %6100 = vadd.xlane.f32.xlu1 %v6099_v45 }
 0xa22   :  { %v5654_v29 = vpop.xlane.xlu0 %5653 }
 0xa23   :  { %8201 = vrcp.f32 %v5654_v29 }
 0xa27   :  { %v5802_v33 = vpop.xlane.xlu0 %5801 }
 0xa28   :  { %8203 = vrcp.f32 %v5802_v33 }
 0xa2d   :  { %v8202_v25 = vpop.eup %8201 }
 0xa2e   :  { %v5660_v28 = vmul.f32 %v8202_v25, %v8186_v23 }
 0xa30   :  { %v5707_v48 = vmul.f32 %v9340_v51, %v5660_v28  ;;  %v5715_v7 = vmul.f32 %v9343_v11, %v5660_v28 }
 0xa32   :  { %v8204_v31 = vpop.eup %8203  ;;  %v5709_v10 = vsel %vm913_vm4, %v5707_v48, 0.0  ;;  %v5717_v13 = vsel %vm913_vm4, %v5715_v7, 0.0 }
 0xa33   :  { %5710 = vadd.xlane.f32.xlu0 %v5709_v10  ;;  %v5808_v15 = vmul.f32 %v8204_v31, %v8188_v27 }
 0xa35   :  { %v5855_v61 = vmul.f32 %v9340_v51, %v5808_v15  ;;  %v5863_v55 = vmul.f32 %v9343_v11, %v5808_v15 }
 0xa37   :  { %5718 = vadd.xlane.f32.xlu0 %v5717_v13  ;;  %v5857_v26 = vsel %vm913_vm4, %v5855_v61, 0.0  ;;  %v5865_v23 = vsel %vm913_vm4, %v5863_v55, 0.0 }
 0xa3b   :  { %5858 = vadd.xlane.f32.xlu0 %v5857_v26 }
 0xa3f   :  { %5866 = vadd.xlane.f32.xlu0 %v5865_v23 }
 0xa40   :  { %v5657_v36 = vpop.xlane.xlu1 %5656 }
 0xa41   :  { %8205 = vrcp.f32 %v5657_v36 }
 0xa44   :  { %v5950_v5 = vpop.xlane.xlu0 %5949 }
 0xa45   :  { %8207 = vrcp.f32 %v5950_v5  ;;  %v5805_v42 = vpop.xlane.xlu1 %5804 }
 0xa46   :  { %8209 = vrcp.f32 %v5805_v42 }
 0xa48   :  { %v6098_v27 = vpop.xlane.xlu0 %6097 }
 0xa49   :  { %8211 = vrcp.f32 %v6098_v27 }
 0xa4b   :  { %v8206_v53 = vpop.eup %8205 }
 0xa4c   :  { %v5661_v39 = vmul.f32 %v8206_v53, %v8190_v32  ;;  %v5953_v45 = vpop.xlane.xlu1 %5952 }
 0xa4d   :  { %8213 = vrcp.f32 %v5953_v45 }
 0xa4e   :  { %v5662_v29 = vpack.c.bf16 %v5661_v39, %v5660_v28  ;;  %v5708_v33 = vmul.f32 %v9361_v52, %v5661_v39  ;;  %v5716_v7 = vmul.f32 %v9366_v40, %v5661_v39 }
 0xa4f   :  { %v8208_v25 = vpop.eup %8207 }
 0xa50   :  { %v8210_v48 = vpop.eup %8209  ;;  %7823 = vmatmul.mubr.msk.bf16.vlgmr.msra.gmra.mrb[56].mxu1 %vm913_vm4, %v5662_v29  ;;  %v5712_v31 = vsel %vm913_vm4, %v5708_v33, 0.0  ;;  %v5956_v10 = vmul.f32 %v8208_v25, %v8192_v57  ;;  %v5720_v57 = vsel %vm913_vm4, %v5716_v7, 0.0 }
 0xa51   :  { %v5809_v13 = vmul.f32 %v8210_v48, %v8194_v8  ;;  %7833 = vmatpush3.bf16.msra.mxu1 %v5474_v35  ;;  %5713 = vadd.xlane.f32.xlu1 %v5712_v31  ;;  %v6192_v48 = vsel %vm1466_vm5, %v9225_v60, 0  ;;  %v8059_v31 = vld [vmem:[#allocation16 + $0x4] ss:$8 sps:$4 sm:$0xff]  }
 0xa52   :  { %v6003_v32 = vmul.f32 %v9340_v51, %v5956_v10  ;;  %7834 = vmatprep.mubr.msk.bf16.mxu1 %vm8534_vm3, %v8533_v50  ;;  %7844 = vmatprep.subr.bf16.mxu1 %v8533_v50  ;;  %v6011_v8 = vmul.f32 %v9343_v11, %v5956_v10 }
 0xa53   :  { %v8212_v28 = vpop.eup %8211  ;;  %v5856_v22 = vmul.f32 %v9361_v52, %v5809_v13  ;;  %v5810_v34 = vpack.c.bf16 %v5809_v13, %v5808_v15  ;;  %v5864_v42 = vmul.f32 %v9366_v40, %v5809_v13 }
 0xa54   :  { %v6101_v61 = vpop.xlane.xlu1 %6100  ;;  %v6005_v26 = vsel %vm913_vm4, %v6003_v32, 0.0  ;;  %v6104_v55 = vmul.f32 %v8212_v28, %v8196_v24  ;;  %v6013_v23 = vsel %vm913_vm4, %v6011_v8, 0.0 }
 0xa55   :  { %8215 = vrcp.f32 %v6101_v61  ;;  %6006 = vadd.xlane.f32.xlu0 %v6005_v26  ;;  %5721 = vadd.xlane.f32.xlu1 %v5720_v57  ;;  %v5860_v24 = vsel %vm913_vm4, %v5856_v22, 0.0 }
 0xa56   :  { %v6151_v36 = vmul.f32 %v9340_v51, %v6104_v55  ;;  %v6159_v27 = vmul.f32 %v9343_v11, %v6104_v55 }
 0xa57   :  { %v8214_v35 = vpop.eup %8213 }
 0xa58   :  { %7835 = vmatmul.mubr.msk.bf16.vlgmr.msra.gmra.mrb[60].mxu1 %vm913_vm4, %v5810_v34  ;;  %v5957_v5 = vmul.f32 %v8214_v35, %v9401_v17  ;;  %v6153_v15 = vsel %vm913_vm4, %v6151_v36, 0.0  ;;  %v5868_v17 = vsel %vm913_vm4, %v5864_v42, 0.0  ;;  %v6161_v53 = vsel %vm913_vm4, %v6159_v27, 0.0 }
 0xa59   :  { %7845 = vmatpush3.bf16.msra.mxu1 %v5475_v2  ;;  %6014 = vadd.xlane.f32.xlu0 %v6013_v23 }
 0xa5a   :  { %5861 = vadd.xlane.f32.xlu1 %v5860_v24  ;;  %7846 = vmatprep.mubr.msk.bf16.mxu1 %vm8534_vm3, %v8533_v50  ;;  %v6004_v47 = vmul.f32 %v9361_v52, %v5957_v5  ;;  %v5958_v9 = vpack.c.bf16 %v5957_v5, %v5956_v10  ;;  %v6012_v29 = vmul.f32 %v9366_v40, %v5957_v5 }
 0xa5b   :  { %7856 = vmatprep.subr.bf16.mxu1 %v8533_v50 }
 0xa5c   :  { %v6008_v45 = vsel %vm913_vm4, %v6004_v47, 0.0  ;;  %v6016_v33 = vsel %vm913_vm4, %v6012_v29, 0.0  ;;  %v8057_v29 = vld [vmem:[#allocation16] ss:$8 sps:$4 sm:$0xff]  }
 0xa5d   :  { %6154 = vadd.xlane.f32.xlu0 %v6153_v15 }
 0xa5e   :  { %5869 = vadd.xlane.f32.xlu1 %v5868_v17 }
 0xa5f   :  { %v8216_v2 = vpop.eup %8215 }
 0xa60   :  { %7847 = vmatmul.mubr.msk.bf16.vlgmr.msra.gmra.mrb[64].mxu1 %vm913_vm4, %v5958_v9  ;;  %v6105_v39 = vmul.f32 %v8216_v2, %v9405_v3 }
 0xa61   :  { %7857 = vmatpush3.bf16.msra.mxu1 %v5476_v12  ;;  %6162 = vadd.xlane.f32.xlu0 %v6161_v53 }
 0xa62   :  { %6009 = vadd.xlane.f32.xlu1 %v6008_v45  ;;  %7858 = vmatprep.mubr.msk.bf16.mxu1 %vm8534_vm3, %v8533_v50  ;;  %v6152_v3 = vmul.f32 %v9361_v52, %v6105_v39  ;;  %v6106_v25 = vpack.c.bf16 %v6105_v39, %v6104_v55  ;;  %v6160_v62 = vmul.f32 %v9366_v40, %v6105_v39 }
 0xa63   :  { %7656 = vmatprep.subr.msk.bf16.mxu1 %vm1466_vm5, %v9221_v46  ;;  %v6186_v46 = vsel %vm1466_vm5, %v9219_v59, 0 }
 0xa64   :  { %v6156_v20 = vsel %vm913_vm4, %v6152_v3, 0.0  ;;  %v6164_v12 = vsel %vm913_vm4, %v6160_v62, 0.0  ;;  %6198 = vmatpush1.bf16.msra.mxu0 %v6186_v46  ;;  %v8062_v3 = vld [vmem:[#allocation16 + $0x14] ss:$8 sps:$4 sm:$0xff]   ;;  %v8063_v62 = vld [vmem:[#allocation16 + $0x20] ss:$8 sps:$4 sm:$0xff]  }
 0xa65   :  { %6716 = vmatprep.subr.bf16.mxu0 %v8059_v31  ;;  %v8066_v46 = vld [vmem:[#allocation16 + $0x30] ss:$8 sps:$4 sm:$0xff]   ;;  %v8069_v31 = vld [vmem:[#allocation16 + $0x40] ss:$8 sps:$4 sm:$0xff]  }
 0xa66   :  { %6017 = vadd.xlane.f32.xlu1 %v6016_v33 }
 0xa68   :  { %7859 = vmatmul.mubr.msk.bf16.vlgmr.msra.gmra.mrb[68].mxu1 %vm913_vm4, %v6106_v25  ;;  %v8060_v25 = vld [vmem:[#allocation16 + $0x10] ss:$8 sps:$4 sm:$0xff]  }
 0xa69   :  { %6272 = vmatprep.mubr.bf16.mxu1 %v8531_v0  ;;  %6241 = vmatpush1.bf16.msra.mxu1 %v6192_v48  ;;  %v8071_v48 = vld [vmem:[#allocation16 + $0x44] ss:$8 sps:$4 sm:$0xff]  }
 0xa6a   :  { %6157 = vadd.xlane.f32.xlu1 %v6156_v20  ;;  %7862 = vmatprep.subr.bf16.mxu1 %v8533_v50  ;;  %v8065_v20 = vld [vmem:[#allocation16 + $0x24] ss:$8 sps:$4 sm:$0xff]  }
 0xa6e   :  { %6165 = vadd.xlane.f32.xlu1 %v6164_v12  ;;  %v8068_v12 = vld [vmem:[#allocation16 + $0x34] ss:$8 sps:$4 sm:$0xff]  }
 0xac0   :  { %v5711_v10 = vpop.xlane.xlu0 %5710 }
 0xac4   :  { %v5719_v7 = vpop.xlane.xlu0 %5718 }
 0xac5   :  { %v6167_v60 = vsel %vm1441_vm6, %v5711_v10, %v5719_v7  ;;  %v8074_v10 = vld [vmem:[#allocation16 + $0x54] ss:$8 sps:$4 sm:$0xff]   ;;  %v8072_v7 = vld [vmem:[#allocation16 + $0x50] ss:$8 sps:$4 sm:$0xff]  }
 0xac8   :  { %v5859_v13 = vpop.xlane.xlu0 %5858 }
 0xac9   :  { %v6169_v35 = vsel %vm1444_vm7, %v6167_v60, %v5859_v13  ;;  %v8077_v13 = vld [vmem:[#allocation16 + $0x64] ss:$8 sps:$4 sm:$0xff]   ;;  %v8087_v60 = vld [vmem:[#allocation16 + $0xa0] ss:$8 sps:$4 sm:$0xff]  }
 0xacc   :  { %v5867_v28 = vpop.xlane.xlu0 %5866 }
 0xacd   :  { %v6171_v5 = vsel %vm1447_vm8, %v6169_v35, %v5867_v28  ;;  %v8078_v28 = vld [vmem:[#allocation16 + $0x70] ss:$8 sps:$4 sm:$0xff]   ;;  %v8092_v35 = vld [vmem:[#allocation16 + $0xb4] ss:$8 sps:$4 sm:$0xff]  }
 0xade   :  { %v5714_v0 = vpop.xlane.xlu1 %5713 }
 0xae2   :  { %v5722_v32 = vpop.xlane.xlu1 %5721  ;;  %v6007_v61 = vpop.xlane.xlu0 %6006 }
 0xae3   :  { %v6168_v34 = vsel %vm1441_vm6, %v5714_v0, %v5722_v32  ;;  %v6173_v42 = vsel %vm1450_vm9, %v6171_v5, %v6007_v61  ;;  %v8075_v0 = vld [vmem:[#allocation16 + $0x60] ss:$8 sps:$4 sm:$0xff]   ;;  %v8080_v32 = vld [vmem:[#allocation16 + $0x74] ss:$8 sps:$4 sm:$0xff]   ;;  %v8083_v61 = vld [vmem:[#allocation16 + $0x84] ss:$8 sps:$4 sm:$0xff]  }
 0xae4   :  { %v8095_v5 = vld [vmem:[#allocation16 + $0xc4] ss:$8 sps:$4 sm:$0xff]  }
 0xae6   :  { %v6015_v8 = vpop.xlane.xlu0 %6014 }
 0xae7   :  { %v5862_v26 = vpop.xlane.xlu1 %5861  ;;  %v6175_v17 = vsel %vm330_vm2, %v6173_v42, %v6015_v8  ;;  %v8084_v8 = vld [vmem:[#allocation16 + $0x90] ss:$8 sps:$4 sm:$0xff]  }
 0xae8   :  { %v6170_v23 = vsel %vm1444_vm7, %v6168_v34, %v5862_v26  ;;  %v8081_v26 = vld [vmem:[#allocation16 + $0x80] ss:$8 sps:$4 sm:$0xff]  }
 0xaea   :  { %v6155_v55 = vpop.xlane.xlu0 %6154 }
 0xaeb   :  { %v5870_v57 = vpop.xlane.xlu1 %5869  ;;  %v6177_v9 = vsel %vm1455_vm10, %v6175_v17, %v6155_v55 }
 0xaec   :  { %v6172_v24 = vsel %vm1447_vm8, %v6170_v23, %v5870_v57  ;;  %v8086_v57 = vld [vmem:[#allocation16 + $0x94] ss:$8 sps:$4 sm:$0xff]  }
 0xaee   :  { %v6163_v15 = vpop.xlane.xlu0 %6162 }
 0xaef   :  { %v6010_v59 = vpop.xlane.xlu1 %6009  ;;  %v6179_v39 = vsel %vm1458_vm11, %v6177_v9, %v6163_v15  ;;  %v8093_v15 = vld [vmem:[#allocation16 + $0xc0] ss:$8 sps:$4 sm:$0xff]  }
 0xaf0   :  { %v6174_v27 = vsel %vm1450_vm9, %v6172_v24, %v6010_v59  ;;  %v8089_v59 = vld [vmem:[#allocation16 + $0xa4] ss:$8 sps:$4 sm:$0xff]  }
 0xaf3   :  { %v6018_v22 = vpop.xlane.xlu1 %6017 }
 0xaf4   :  { %v6176_v47 = vsel %vm330_vm2, %v6174_v27, %v6018_v22 }
 0xaf7   :  { %v6158_v36 = vpop.xlane.xlu1 %6157 }
 0xaf8   :  { %v6178_v2 = vsel %vm1455_vm10, %v6176_v47, %v6158_v36  ;;  %v8090_v36 = vld [vmem:[#allocation16 + $0xb0] ss:$8 sps:$4 sm:$0xff]  }
 0xafb   :  { %v6166_v53 = vpop.xlane.xlu1 %6165 }
 0xafc   :  { %v6180_v45 = vsel %vm1458_vm11, %v6178_v2, %v6166_v53 }
 0xafd   :  { %v6181_v33 = vpack.c.bf16 %v6180_v45, %v6179_v39 }
 0xaff   :  { %7655 = vmatmul.mubr.msk.bf16.vlgmr.msra.gmra.mrb[76].mxu0 %vm1462_vm12, %v6181_v33  ;;  %7657 = vmatmul.mubr.msk.bf16.vlgmr.msra.gmra.mrb[72].mxu1 %vm1462_vm12, %v6181_v33 }
 0xb00   :  { %6717 = vmatpush1.bf16.msra.mxu0 %v8057_v29  ;;  %7864 = vmatprep.mubr.msk.bf16.mxu1 %vm8534_vm3, %v8533_v50 }
 0xb01   :  { %6718 = vmatprep.subr.bf16.mxu0 %v8062_v3  ;;  %v8098_v3 = vld [vmem:[#allocation16 + $0xd4] ss:$8 sps:$4 sm:$0xff]  }
 0xb04   :  { %6719 = vmatpush1.bf16.msra.mxu0 %v8060_v25  ;;  %v8096_v25 = vld [vmem:[#allocation16 + $0xd0] ss:$8 sps:$4 sm:$0xff]  }
 0xb05   :  { %6720 = vmatprep.subr.bf16.mxu0 %v8065_v20  ;;  %v8101_v20 = vld [vmem:[#allocation16 + $0xe4] ss:$8 sps:$4 sm:$0xff]  }
 0xb08   :  { %6721 = vmatpush1.bf16.msra.mxu0 %v8063_v62  ;;  %v8099_v62 = vld [vmem:[#allocation16 + $0xe0] ss:$8 sps:$4 sm:$0xff]  }
 0xb09   :  { %6722 = vmatprep.subr.bf16.mxu0 %v8068_v12  ;;  %v8104_v12 = vld [vmem:[#allocation16 + $0xf4] ss:$8 sps:$4 sm:$0xff]  }
 0xb0c   :  { %6723 = vmatpush1.bf16.msra.mxu0 %v8066_v46  ;;  %v8102_v46 = vld [vmem:[#allocation16 + $0xf0] ss:$8 sps:$4 sm:$0xff]  }
 0xb0d   :  { %6724 = vmatprep.subr.bf16.mxu0 %v8071_v48  ;;  %v8107_v48 = vld [vmem:[#allocation16 + $0x104] ss:$8 sps:$4 sm:$0xff]  }
 0xb10   :  { %6725 = vmatpush1.bf16.msra.mxu0 %v8069_v31  ;;  %v8233_v31 = vld [vmem:[#allocation13 + $0x8] sm:$0xff] }
 0xb11   :  { %6726 = vmatprep.subr.bf16.mxu0 %v8074_v10  ;;  %v2180_v10 = vrot.slane %v8233_v31, %v8830_v18 }
 0xb14   :  { %6727 = vmatpush1.bf16.msra.mxu0 %v8072_v7  ;;  %v2184_v7 = vrot.slane %v8233_v31, %v8832_v21 }
 0xb15   :  { %6728 = vmatprep.subr.bf16.mxu0 %v8077_v13  ;;  %v2188_v13 = vrot.slane %v8233_v31, %v8838_v38 }
 0xb18   :  { %6729 = vmatpush1.bf16.msra.mxu0 %v8075_v0  ;;  %v2192_v0 = vrot.slane %v8233_v31, %v8840_v41  ;;  %v7920_v41 = vadd.f32 %v9336_v49, %v2188_v13 }
 0xb19   :  { %6730 = vmatprep.subr.bf16.mxu0 %v8080_v32  ;;  %v7914_v32 = vadd.f32 %v9290_v4, %v2180_v10 }
 0xb1a   :  { %v7919_v18 = vadd.f32 %v9334_v58, %v2192_v0  ;;  %v7921_v4 = vadd.f32 %v9338_v63, %v2192_v0  ;;  %v8105_v0 = vld [vmem:[#allocation16 + $0x100] ss:$8 sps:$4 sm:$0xff]  }
 0xb1c   :  { %6731 = vmatpush1.bf16.msra.mxu0 %v8078_v28  ;;  %v7915_v28 = vadd.f32 %v9292_v30, %v2184_v7 }
 0xb1d   :  { %6732 = vmatprep.subr.bf16.mxu0 %v8083_v61  ;;  %v7916_v61 = vadd.f32 %v9298_v19, %v2180_v10 }
 0xb20   :  { %6733 = vmatpush1.bf16.msra.mxu0 %v8081_v26  ;;  %v7917_v26 = vadd.f32 %v9304_v44, %v2184_v7 }
 0xb21   :  { %6734 = vmatprep.subr.bf16.mxu0 %v8086_v57 }
 0xb23   :  { %v5700_v55 = vpop.f32.mrb[56].mxu1 }
 0xb24   :  { %v7824_v22 = vpop.f32.mrb[57].mxu1  ;;  %6735 = vmatpush1.bf16.msra.mxu0 %v8084_v8 }
 0xb25   :  { %v9490_v34 = vpop.f32.mrb[58].mxu1  ;;  %6736 = vmatprep.subr.bf16.mxu0 %v8089_v59  ;;  %v7918_v59 = vadd.f32 %v9332_v37, %v2188_v13 }
 0xb26   :  { %v7825_v23 = vpop.f32.mrb[59].mxu1 }
 0xb28   :  { %6737 = vmatpush1.bf16.msra.mxu0 %v8087_v60 }
 0xb29   :  { %6738 = vmatprep.subr.bf16.mxu0 %v8092_v35 }
 0xb2b   :  { %v5848_v24 = vpop.f32.mrb[60].mxu1 }
 0xb2c   :  { %v7836_v42 = vpop.f32.mrb[61].mxu1  ;;  %6739 = vmatpush1.bf16.msra.mxu0 %v8090_v36 }
 0xb2d   :  { %v5851_v27 = vpop.f32.mrb[62].mxu1  ;;  %6740 = vmatprep.subr.bf16.mxu0 %v8095_v5 }
 0xb2e   :  { %v7837_v17 = vpop.f32.mrb[63].mxu1 }
 0xb30   :  { %6741 = vmatpush1.bf16.msra.mxu0 %v8093_v15 }
 0xb31   :  { %6742 = vmatprep.subr.bf16.mxu0 %v8098_v3 }
 0xb33   :  { %v5996_v47 = vpop.f32.mrb[64].mxu1 }
 0xb34   :  { %v7848_v9 = vpop.f32.mrb[65].mxu1  ;;  %6743 = vmatpush1.bf16.msra.mxu0 %v8096_v25 }
 0xb35   :  { %v5999_v2 = vpop.f32.mrb[66].mxu1  ;;  %6744 = vmatprep.subr.bf16.mxu0 %v8101_v20 }
 0xb36   :  { %v7849_v53 = vpop.f32.mrb[67].mxu1 }
 0xb38   :  { %6745 = vmatpush1.bf16.msra.mxu0 %v8099_v62 }
 0xb39   :  { %6746 = vmatprep.subr.bf16.mxu0 %v8104_v12 }
 0xb3b   :  { %v6144_v39 = vpop.f32.mrb[68].mxu1 }
 0xb3c   :  { %v7860_v45 = vpop.f32.mrb[69].mxu1  ;;  %6747 = vmatpush1.bf16.msra.mxu0 %v8102_v46 }
 0xb3d   :  { %v6147_v29 = vpop.f32.mrb[70].mxu1  ;;  %6759 = vmatprep.subr.bf16.mxu0 %v8107_v48 }
 0xb3e   :  { %v7861_v33 = vpop.f32.mrb[71].mxu1 }
 0xbd2   :  { %v6231_v57 = vpop.f32.mrb[76].mxu0  ;;  %v6274_v8 = vpop.f32.mrb[72].mxu1 }
 0xbd3   :  { %v6283_v22 = vadd.f32 %v6231_v57, %v5700_v55  ;;  %v6285_v21 = vadd.f32 %v6274_v8, %v5996_v47  ;;  %v6233_v60 = vpop.f32.mrb[77].mxu0  ;;  %v6276_v38 = vpop.f32.mrb[73].mxu1  ;;  %v8111_v57 = vld [vmem:[#allocation16 + $0x120] ss:$8 sps:$4 sm:$0xff]   ;;  %v8116_v8 = vld [vmem:[#allocation16 + $0x134] ss:$8 sps:$4 sm:$0xff]  }
 0xbd4   :  { %v6284_v35 = vadd.f32 %v6233_v60, %v5848_v24  ;;  %v6286_v30 = vadd.f32 %v6276_v38, %v6144_v39  ;;  %v6235_v23 = vpop.f32.mrb[78].mxu0  ;;  %v6278_v19 = vpop.f32.mrb[74].mxu1  ;;  %v8120_v60 = vld [vmem:[#allocation16 + $0x150] ss:$8 sps:$4 sm:$0xff]   ;;  %v8125_v38 = vld [vmem:[#allocation16 + $0x164] ss:$8 sps:$4 sm:$0xff]  }
 0xbd5   :  { %v6291_v44 = vmul.f32 %v6283_v22, %v9110_v14  ;;  %v6293_v36 = vmul.f32 %v6285_v21, %v9110_v14  ;;  %v6287_v37 = vadd.f32 %v6235_v23, %v9490_v34  ;;  %v6289_v5 = vadd.f32 %v6278_v19, %v5999_v2  ;;  %v6237_v58 = vpop.f32.mrb[79].mxu0  ;;  %v6280_v55 = vpop.f32.mrb[75].mxu1  ;;  %v8117_v22 = vld [vmem:[#allocation16 + $0x140] ss:$8 sps:$4 sm:$0xff]   ;;  %v8122_v21 = vld [vmem:[#allocation16 + $0x154] ss:$8 sps:$4 sm:$0xff]  }
 0xbd6   :  { %v6292_v42 = vmul.f32 %v6284_v35, %v9110_v14  ;;  %v6294_v15 = vmul.f32 %v6286_v30, %v9110_v14  ;;  %v6288_v49 = vadd.f32 %v6237_v58, %v5851_v27  ;;  %v6290_v17 = vadd.f32 %v6280_v55, %v6147_v29  ;;  %v8126_v35 = vld [vmem:[#allocation16 + $0x170] ss:$8 sps:$4 sm:$0xff]   ;;  %v8131_v30 = vld [vmem:[#allocation16 + $0x184] ss:$8 sps:$4 sm:$0xff]   ;;  %v8129_v23 = vld [vmem:[#allocation16 + $0x180] ss:$8 sps:$4 sm:$0xff]  }
 0xbd7   :  { %v6299_v63 = vadd.f32 %v7914_v32, %v6291_v44  ;;  %v6301_v24 = vadd.f32 %v7918_v59, %v6293_v36  ;;  %v6295_v47 = vmul.f32 %v6287_v37, %v9112_v16  ;;  %v6297_v9 = vmul.f32 %v6289_v5, %v9112_v16  ;;  %v8114_v59 = vld [vmem:[#allocation16 + $0x130] ss:$8 sps:$4 sm:$0xff]   ;;  %v8134_v19 = vld [vmem:[#allocation16 + $0x194] ss:$8 sps:$4 sm:$0xff]   ;;  %v8137_v36 = vld [vmem:[#allocation16 + $0x1a4] ss:$8 sps:$4 sm:$0xff]  }
 0xbd8   :  { %v6300_v53 = vadd.f32 %v7915_v28, %v6292_v42  ;;  %v6302_v39 = vadd.f32 %v7919_v18, %v6294_v15  ;;  %v6296_v45 = vmul.f32 %v6288_v49, %v9112_v16  ;;  %v6298_v34 = vmul.f32 %v6290_v17, %v9112_v16  ;;  %v8110_v28 = vld [vmem:[#allocation16 + $0x114] ss:$8 sps:$4 sm:$0xff]   ;;  %v8119_v18 = vld [vmem:[#allocation16 + $0x144] ss:$8 sps:$4 sm:$0xff]   ;;  %v8132_v44 = vld [vmem:[#allocation16 + $0x190] ss:$8 sps:$4 sm:$0xff]  }
 0xbd9   :  { %v6303_v2 = vadd.f32 %v7916_v61, %v6295_v47  ;;  %v6305_v33 = vadd.f32 %v7920_v41, %v6297_v9  ;;  %v6307_v20 = vmax.f32 %v6299_v63, 0.0  ;;  %v6309_v62 = vmax.f32 %v6301_v24, 0.0  ;;  %v8108_v61 = vld [vmem:[#allocation16 + $0x110] ss:$8 sps:$4 sm:$0xff]   ;;  %v8123_v41 = vld [vmem:[#allocation16 + $0x160] ss:$8 sps:$4 sm:$0xff]  }
 0xbda   :  { %v6304_v3 = vadd.f32 %v7917_v26, %v6296_v45  ;;  %v6306_v25 = vadd.f32 %v7921_v4, %v6298_v34  ;;  %v6308_v12 = vmax.f32 %v6300_v53, 0.0  ;;  %v6310_v46 = vmax.f32 %v6302_v39, 0.0  ;;  %v8113_v26 = vld [vmem:[#allocation16 + $0x124] ss:$8 sps:$4 sm:$0xff]   ;;  %v8128_v4 = vld [vmem:[#allocation16 + $0x174] ss:$8 sps:$4 sm:$0xff]  }
 0xbdb   :  { %v6311_v27 = vmax.f32 %v6303_v2, 0.0  ;;  %v6313_v29 = vmax.f32 %v6305_v33, 0.0  ;;  %v8135_v37 = vld [vmem:[#allocation16 + $0x1a0] ss:$8 sps:$4 sm:$0xff]   ;;  %v8140_v5 = vld [vmem:[#allocation16 + $0x1b4] ss:$8 sps:$4 sm:$0xff]  }
 0xbdc   :  { %v6312_v48 = vmax.f32 %v6304_v3, 0.0  ;;  %v6314_v31 = vmax.f32 %v6306_v25, 0.0  ;;  %v8138_v58 = vld [vmem:[#allocation16 + $0x1b0] ss:$8 sps:$4 sm:$0xff]   ;;  %v8143_v55 = vld [vmem:[#allocation16 + $0x1c4] ss:$8 sps:$4 sm:$0xff]  }
 0xbdd   :  { %v6381_v10 = vpack.c.bf16 %v6311_v27, %v6307_v20  ;;  %v9513_v7 = vpack.c.bf16 %v6313_v29, %v6309_v62  ;;  %v8141_v42 = vld [vmem:[#allocation16 + $0x1c0] ss:$8 sps:$4 sm:$0xff]   ;;  %v8146_v15 = vld [vmem:[#allocation16 + $0x1d4] ss:$8 sps:$4 sm:$0xff]   ;;  %v8144_v49 = vld [vmem:[#allocation16 + $0x1d0] ss:$8 sps:$4 sm:$0xff]  }
 0xbde   :  { %v6382_v13 = vpack.c.bf16 %v6312_v48, %v6308_v12  ;;  %v6384_v32 = vpack.c.bf16 %v6314_v31, %v6310_v46  ;;  %v8149_v17 = vld [vmem:[#allocation16 + $0x1e4] ss:$8 sps:$4 sm:$0xff]   ;;  %v8147_v63 = vld [vmem:[#allocation16 + $0x1e0] ss:$8 sps:$4 sm:$0xff]   ;;  %v8152_v24 = vld [vmem:[#allocation16 + $0x1f4] ss:$8 sps:$4 sm:$0xff]  }
 0xbdf   :  { %v8150_v47 = vld [vmem:[#allocation16 + $0x1f0] ss:$8 sps:$4 sm:$0xff]   ;;  %v9516_v9 = vld [vmem:[#allocation19] sm:$0x1]  ;;  %v9521_v39 = vld [vmem:[#allocation17] sm:$0x3] }
 0xbe0   :  { %6748 = vmatprep.mubr.bf16.mxu0 %v6382_v13  ;;  %v6812_v53 = vsel %vm6807_vm13, %v9516_v9, 0  ;;  %v6389_v45 = vrot.slane %v9521_v39, %v8816_v54 }
 0xbe1   :  { %6749 = vmatmul.mubr.bf16.vlgmr.msra.gmra.mrb[80].mxu0 %v6381_v10  ;;  %7863 = vmatpush3.bf16.xpose.msra.mxu1 %v6812_v53 }
 0xbe2   :  { %6760 = vmatpush1.bf16.msra.mxu0 %v8105_v0  ;;  %6791 = vmatprep.mubr.bf16.mxu0 %v6384_v32 }
 0xbe3   :  { %6761 = vmatprep.subr.bf16.mxu0 %v8110_v28  ;;  %7868 = vmatprep.subr.bf16.mxu1 %v8533_v50 }
 0xbe6   :  { %6762 = vmatpush1.bf16.msra.mxu0 %v8108_v61 }
 0xbe7   :  { %6763 = vmatprep.subr.bf16.mxu0 %v8113_v26 }
 0xbea   :  { %6764 = vmatpush1.bf16.msra.mxu0 %v8111_v57 }
 0xbeb   :  { %6765 = vmatprep.subr.bf16.mxu0 %v8116_v8 }
 0xbee   :  { %6766 = vmatpush1.bf16.msra.mxu0 %v8114_v59 }
 0xbef   :  { %6767 = vmatprep.subr.bf16.mxu0 %v8119_v18 }
 0xbf2   :  { %6768 = vmatpush1.bf16.msra.mxu0 %v8117_v22 }
 0xbf3   :  { %6769 = vmatprep.subr.bf16.mxu0 %v8122_v21 }
 0xbf6   :  { %6770 = vmatpush1.bf16.msra.mxu0 %v8120_v60 }
 0xbf7   :  { %6771 = vmatprep.subr.bf16.mxu0 %v8125_v38 }
 0xbfa   :  { %6772 = vmatpush1.bf16.msra.mxu0 %v8123_v41 }
 0xbfb   :  { %6773 = vmatprep.subr.bf16.mxu0 %v8128_v4 }
 0xbfe   :  { %6774 = vmatpush1.bf16.msra.mxu0 %v8126_v35 }
 0xbff   :  { %6775 = vmatprep.subr.bf16.mxu0 %v8131_v30 }
 0xc02   :  { %6776 = vmatpush1.bf16.msra.mxu0 %v8129_v23 }
 0xc03   :  { %6777 = vmatprep.subr.bf16.mxu0 %v8134_v19 }
 0xc06   :  { %6778 = vmatpush1.bf16.msra.mxu0 %v8132_v44 }
 0xc07   :  { %6779 = vmatprep.subr.bf16.mxu0 %v8137_v36 }
 0xc0a   :  { %6780 = vmatpush1.bf16.msra.mxu0 %v8135_v37 }
 0xc0b   :  { %6781 = vmatprep.subr.bf16.mxu0 %v8140_v5 }
 0xc0e   :  { %6782 = vmatpush1.bf16.msra.mxu0 %v8138_v58 }
 0xc0f   :  { %6783 = vmatprep.subr.bf16.mxu0 %v8143_v55 }
 0xc12   :  { %6784 = vmatpush1.bf16.msra.mxu0 %v8141_v42 }
 0xc13   :  { %6785 = vmatprep.subr.bf16.mxu0 %v8146_v15  ;;  %v8234_v15 = vld [vmem:[#allocation2] sm:$0xff] }
 0xc16   :  { %6786 = vmatpush1.bf16.msra.mxu0 %v8144_v49 }
 0xc17   :  { %6787 = vmatprep.subr.bf16.mxu0 %v8149_v17 }
 0xc1a   :  { %6788 = vmatpush1.bf16.msra.mxu0 %v8147_v63  ;;  %v8235_v63 = vld [vmem:[#allocation2 + $0x10] sm:$0xff] }
 0xc1b   :  { %6789 = vmatprep.subr.bf16.mxu0 %v8152_v24 }
 0xc1e   :  { %6790 = vmatpush1.bf16.msra.mxu0 %v8150_v47 }
 0xc21   :  { %6792 = vmatmul.mubr.bf16.vlgmr.msra.gmra.mrb[80].mxu0 %v9513_v7 }
 0xcf4   :  { %v6793_v34 = vpop.f32.mrb[80].mxu0 }
 0xcf5   :  { %v7922_v2 = vadd.f32 %v6793_v34, %v6389_v45  ;;  %v9525_v33 = vpop.f32.mrb[81].mxu0  ;;  %v8236_v34 = vld [vmem:[#allocation2 + $0x8] sm:$0xff] }
 0xcf6   :  { %v6797_v3 = vpop.f32.mrb[82].mxu0 }
 0xcf7   :  { %v7924_v25 = vadd.f32 %v6797_v3, %v6389_v45  ;;  %v9527_v20 = vpop.f32.mrb[83].mxu0  ;;  %v6802_v62 = vmul.f32 0.125, %v7922_v2 }
 0xcf9   :  { %v6803_v27 = vmul.f32 0.125, %v7924_v25  ;;  %v6805_v29 = vpack.c.bf16 %v7924_v25, %v7922_v2 }
 0xcfb   :  { %v6804_v12 = vpack.c.bf16 %v6803_v27, %v6802_v62  ;;  %6868 = vrot.lane.b32.xlu0 %v6805_v29, %s8522_s28  ;;  %v8237_v62 = vld [vmem:[#allocation2 + $0x18] sm:$0xff] }
 0xcfd   :  { %7865 = vmatmul.mubr.msk.bf16.vlgmr.msra.gmra.mrb[76].mxu1 %vm6807_vm13, %v6804_v12 }
 0xcfe   :  { %7870 = vmatprep.mubr.msk.bf16.mxu1 %vm8534_vm3, %v8533_v50 }
 0xd6d   :  { %v6869_v54 = vpop.permute.xlu0 %6868 }
 0xd6e   :  { %v6871_v46 = vsel %vm6807_vm13, %v6869_v54, 0  ;;  %v6974_v54 = vsel %vm6973_vm14, %v9516_v9, 0 }
 0xd6f   :  { %7869 = vmatpush3.bf16.xpose.msra.mxu1 %v6871_v46 }
 0xd70   :  { %7874 = vmatprep.subr.bf16.mxu1 %v8533_v50 }
 0xd76   :  { %7871 = vmatmul.mubr.msk.bf16.vlgmr.msra.gmra.mrb[80].mxu1 %vm6807_vm13, %v6804_v12  ;;  %v6393_v12 = vrot.slane %v9521_v39, %v8818_v56 }
 0xd77   :  { %7876 = vmatprep.mubr.msk.bf16.mxu1 %vm8534_vm3, %v8533_v50  ;;  %7875 = vmatpush3.bf16.msra.mxu1 %v6974_v54 }
 0xd78   :  { %7880 = vmatprep.subr.bf16.mxu1 %v8533_v50  ;;  %v7923_v46 = vadd.f32 %v9525_v33, %v6393_v12 }
 0xdd0   :  { %v6848_v48 = vpop.f32.mrb[76].mxu1 }
 0xdd1   :  { %6915 = vperm.xlu0 %8030, %v6848_v48   ;;  %6857 = vperm.xlu1 %8029, %v6848_v48   ;;  %v7866_v31 = vpop.f32.mrb[77].mxu1  ;;  %v7925_v48 = vadd.f32 %v9527_v20, %v6393_v12 }
 0xdd2   :  { %v6851_v10 = vpop.f32.mrb[78].mxu1 }
 0xdd3   :  { %v7867_v7 = vpop.f32.mrb[79].mxu1 }
 0xdd5   :  { %6862 = vperm.xlu1 %8029, %v6851_v10  }
 0xdd9   :  { %8031 = vset.pattern.permute.xlu1 %v9617_v6 }
 0xdda   :  { %6919 = vperm.xlu1 %8031, %v6851_v10  }
 0xe49   :  { %v6907_v13 = vpop.f32.mrb[80].mxu1 }
 0xe4a   :  { %v7872_v0 = vpop.f32.mrb[81].mxu1 }
 0xe4b   :  { %v6910_v32 = vpop.f32.mrb[82].mxu1  ;;  %v6806_v0 = vpack.c.bf16 %v7925_v48, %v7923_v46 }
 0xe4c   :  { %v7873_v28 = vpop.f32.mrb[83].mxu1 }
 0xe50   :  { %v6916_v61 = vpop.permute.xlu0 %6915  ;;  %v6858_v26 = vpop.permute.xlu1 %6857 }
 0xe51   :  { %v6865_v57 = vmul.f32 %v9340_v51, %v6858_v26  ;;  %v6922_v8 = vmul.f32 %v9343_v11, %v6916_v61 }
 0xe53   :  { %v6908_v59 = vadd.f32 %v6907_v13, %v6865_v57 }
 0xe54   :  { %v6863_v18 = vpop.permute.xlu1 %6862 }
 0xe55   :  { %v6924_v22 = vadd.f32 %v6922_v8, %v6908_v59  ;;  %v6866_v21 = vmul.f32 %v9361_v52, %v6863_v18 }
 0xe57   :  { %v6926_v60 = vadd.f32 %v9347_v1, %v6924_v22  ;;  %v6911_v41 = vadd.f32 %v6910_v32, %v6866_v21 }
 0xe59   :  { %v6920_v38 = vpop.permute.xlu1 %6919  ;;  %v6928_v6 = vsel %vm913_vm4, %v6926_v60, -inf }
 0xe5a   :  { %v6923_v4 = vmul.f32 %v9366_v40, %v6920_v38  ;;  %6929 = vmax.xlane.f32.xlu1 %v6928_v6 }
 0xe5c   :  { %v6925_v35 = vadd.f32 %v6923_v4, %v6911_v41 }
 0xe5e   :  { %v6927_v30 = vadd.f32 %v9371_v43, %v6925_v35 }
 0xe60   :  { %v6931_v51 = vsel %vm913_vm4, %v6927_v30, -inf }
 0xe61   :  { %6932 = vmax.xlane.f32.xlu0 %v6931_v51 }
 0xee7   :  { %v6930_v11 = vpop.xlane.xlu1 %6929 }
 0xee8   :  { %v6934_v23 = vsub.f32 %v6926_v60, %v6930_v11 }
 0xeea   :  { %v6936_v19 = vmul.f32 1.442695, %v6934_v23 }
 0xeec   :  { %8217 = vpow2.f32 %v6936_v19 }
 0xeee   :  { %v6933_v52 = vpop.xlane.xlu0 %6932 }
 0xeef   :  { %v6935_v44 = vsub.f32 %v6927_v30, %v6933_v52 }
 0xef1   :  { %v6938_v1 = vmul.f32 1.442695, %v6935_v44 }
 0xef3   :  { %8219 = vpow2.f32 %v6938_v1 }
 0xef6   :  { %v8218_v36 = vpop.eup %8217 }
 0xef7   :  { %v6940_v37 = vsel %vm913_vm4, %v8218_v36, 0.0 }
 0xef8   :  { %6941 = vadd.xlane.f32.xlu0 %v6940_v37 }
 0xefd   :  { %v8220_v40 = vpop.eup %8219 }
 0xefe   :  { %v6943_v5 = vsel %vm913_vm4, %v8220_v40, 0.0 }
 0xeff   :  { %6944 = vadd.xlane.f32.xlu1 %v6943_v5 }
 0xf85   :  { %v6942_v43 = vpop.xlane.xlu0 %6941 }
 0xf86   :  { %8221 = vrcp.f32 %v6942_v43 }
 0xf8c   :  { %v6945_v58 = vpop.xlane.xlu1 %6944 }
 0xf8d   :  { %8223 = vrcp.f32 %v6945_v58 }
 0xf90   :  { %v8222_v55 = vpop.eup %8221 }
 0xf91   :  { %v6948_v42 = vmul.f32 %v8222_v55, %v8218_v36 }
 0xf93   :  { %v6951_v49 = vmul.f32 %v8234_v15, %v6948_v42  ;;  %v6959_v24 = vmul.f32 %v8235_v63, %v6948_v42 }
 0xf95   :  { %v6953_v17 = vsel %vm913_vm4, %v6951_v49, 0.0  ;;  %v6961_v45 = vsel %vm913_vm4, %v6959_v24, 0.0 }
 0xf96   :  { %6954 = vadd.xlane.f32.xlu0 %v6953_v17 }
 0xf97   :  { %v8224_v47 = vpop.eup %8223 }
 0xf98   :  { %v6949_v53 = vmul.f32 %v8224_v47, %v8220_v40 }
 0xf9a   :  { %6962 = vadd.xlane.f32.xlu0 %v6961_v45  ;;  %v6952_v2 = vmul.f32 %v8236_v34, %v6949_v53  ;;  %v6950_v3 = vpack.c.bf16 %v6949_v53, %v6948_v42  ;;  %v6960_v27 = vmul.f32 %v8237_v62, %v6949_v53 }
 0xf9c   :  { %v6956_v25 = vsel %vm913_vm4, %v6952_v2, 0.0  ;;  %v6964_v29 = vsel %vm913_vm4, %v6960_v27, 0.0 }
 0xf9d   :  { %6957 = vadd.xlane.f32.xlu1 %v6956_v25 }
 0xfa1   :  { %6965 = vadd.xlane.f32.xlu1 %v6964_v29 }
 0xfb0   :  { %7065 = vrot.lane.b32.xlu0 %v7923_v46, %s8522_s28 }
 0xfb2   :  { %7067 = vrot.lane.b32.xlu1 %v7925_v48, %s8522_s28  ;;  %s7080_s28 = sshll.u32 %s8542_s3, 4  ;;  %s7081_s28 = int_to_ptr.vmem [resolvable:$true] %s7080_s28 }
 0xfb3   :  { %s8480_s26 = scalar_lea.vmem %s7081_s28, 256  ;;  %p8485_p5 = scmp.lt.s32.totalorder %s7081_s28, %s7081_s28 }
 0xfb4   :  { %p8481_p4 = scmp.ne.s32.totalorder %s7081_s28, %s8480_s26  ;;  %p8486_p6 = scmp.lt.s32.totalorder %s8480_s26, %s8480_s26 }
 0xfb6   :  { %p8487_p7 = por %p8486_p6, %p8485_p5 }
 0xfb8   :  { %p8488_p8 = pnand %p8487_p7, %p8481_p4 }
0x1023   :  { %v6955_v31 = vpop.xlane.xlu0 %6954 }
0x1027   :  { %v6963_v7 = vpop.xlane.xlu0 %6962 }
0x1028   :  { %v6967_v56 = vsel %vm1441_vm6, %v6955_v31, %v6963_v7 }
0x102a   :  { %v6958_v10 = vpop.xlane.xlu1 %6957 }
0x102b   :  { %v7066_v28 = vpop.permute.xlu0 %7065 }
0x102e   :  { %v6966_v13 = vpop.xlane.xlu1 %6965 }
0x102f   :  { %v6968_v39 = vsel %vm1441_vm6, %v6958_v10, %v6966_v13 }
0x1030   :  { %v6969_v9 = vpack.c.bf16 %v6968_v39, %v6967_v56 }
0x1032   :  { %7877 = vmatmul.mubr.msk.bf16.vlgmr.msra.gmra.mrb[84].mxu1 %vm1444_vm7, %v6969_v9  ;;  %v7068_v59 = vpop.permute.xlu1 %7067 }
0x1033   :  { %7881 = vmatpush3.bf16.msra.mxu1 %v6806_v0  ;;  %7882 = vmatprep.mubr.msk.bf16.mxu1 %vm8534_vm3, %v8533_v50 }
0x103e   :  { %7883 = vmatmul.mubr.msk.bf16.vlgmr.msra.gmra.mrb[84].mxu1 %vm913_vm4, %v6950_v3 }
0x1111   :  { %v7054_v33 = vpop.f32.mrb[84].mxu1 }
0x1112   :  { %v7061_v20 = vmul.f32 %v7054_v33, %v9110_v14  ;;  %v7884_v32 = vpop.f32.mrb[85].mxu1 }
0x1113   :  { %v7057_v61 = vpop.f32.mrb[86].mxu1 }
0x1114   :  { %v7071_v26 = vadd.f32 %v7066_v28, %v7061_v20  ;;  %v7062_v57 = vmul.f32 %v7057_v61, %v9112_v16  ;;  %v7885_v8 = vpop.f32.mrb[87].mxu1 }
0x1116   :  { %7073 = vst.msk [vmem:[#allocation20] sm:$0xff] %vm6807_vm13, %v7071_v26  ;;  %v7072_v18 = vadd.f32 %v7068_v59, %v7062_v57 }
0x1118   :  { %7074 = vst.msk [vmem:[#allocation20 + $0x8] sm:$0xff] %vm6807_vm13, %v7072_v18 }
0x1119   :  { %8491 = shalt.err (!%p8488_p8)
}
0x111a   :  { %s8492_s4 = scalar_lea.hbm %s9599_s13, 256 }
0x111b   :  { %p8493_p9 = scmp.ne.s32.totalorder %s9599_s13, %s8492_s4  ;;  %p8496_p10 = scmp.lt.u32.totalorder %s8492_s4, %s9599_s13 }
0x111d   :  { %p8498_p11 = pnand %p8496_p10, %p8493_p9 }
0x111f   :  { %8501 = shalt.err (!%p8498_p11)
}
0x1120   :  { %7086 = dma.vmem_to_hbm [thread:$0]  %s7081_s28, 256, %s9599_s13, [#allocation4], %s8518_s20, %s8518_s20, %s8519_s21  }
0x1121   :  { %8514 = dma.done.wait [#allocation4], 256  }
0x1122   :  { %8515 = vsyncadd [#allocation4], 4294967040 }
0x1123   :  { %7090 = vsyncpa [#allocation3], 1 }
0x1124   :  { %7091 = vsyncpa [#allocation6], 1 }
0x1125   :  { %7092 = vsyncpa [#allocation9], 1 }
0x1126   :  { %7093 = vsyncpa [#allocation12], 1 }
0x1127   :  { %7094 = vsyncpa [#allocation15], 1 }
0x1128   :  { %7095 = vsyncpa [#allocation18], 1 }
0x1129   :  { %7096 = vsyncpa [#allocation4], 1 }

</bundles_post_ra>
